<compile_context>
chip_gen: v5e
topology: v5e:2x2
jax: 0.10.0
libtpu: 0.0.40
codegen_flags: <defaults>
</compile_context>

<pallas_src>
import math

import jax
import jax.numpy as jnp
from jax.experimental import pallas as pl
from jax.experimental.pallas import tpu as pltpu

EPS = 1e-5

VMEM_SPEC = pl.BlockSpec(memory_space=pltpu.MemorySpace.VMEM)
SMEM_SPEC = pl.BlockSpec(memory_space=pltpu.MemorySpace.SMEM)
CPARAMS = pltpu.CompilerParams(vmem_limit_bytes=32 * 1024 * 1024)


# ----------------------------- kernel factories ------------------------------

def _make_enc_kernel(N, H, W, CIN, CF, POOL):
    """Fused: (+t) -> conv3x3 -> BN -> ReLU -> conv3x3 -> BN -> ReLU [-> pool]."""
    L = W * CF
    m = float(N * H * W)

    def kernel(*refs):
        if POOL:
            (x_ref, t_ref, w1_ref, w2_ref, g1_ref, b1_ref, g2_ref, b2_ref,
             p_ref, re_ref, ro_ref, se_ref, so_ref,
             out_ref, pool_ref, pad1, pad2, acc1, acc2) = refs
        else:
            (x_ref, t_ref, w1_ref, w2_ref, g1_ref, b1_ref, g2_ref, b2_ref,
             p_ref, out_ref, pad1, pad2, acc1, acc2) = refs

        pad1[...] = jnp.zeros(pad1.shape, pad1.dtype)
        pad2[...] = jnp.zeros(pad2.shape, pad2.dtype)

        # ---------------- conv1 (+t) + per-channel stats ----------------
        s1 = jnp.zeros((1, L), jnp.float32)
        q1 = jnp.zeros((1, L), jnp.float32)
        for nn in range(N):
            t_n = t_ref[nn]
            pad1[1:H + 1, CIN:(W + 1) * CIN] = (
                x_ref[nn].astype(jnp.float32) + t_n).astype(jnp.bfloat16)
            acc = jnp.zeros((H, L), jnp.float32)
            for dy in range(3):
                for dx in range(3):
                    lhs = pad1[dy:dy + H, dx * CIN:(dx + W) * CIN]
                    acc = acc + jnp.dot(lhs, w1_ref[dy * 3 + dx],
                                        preferred_element_type=jnp.float32)
            acc1[nn] = acc
            s1 = s1 + jnp.sum(acc, axis=0, keepdims=True)
            q1 = q1 + jnp.sum(acc * acc, axis=0, keepdims=True)

        sum_t = jnp.dot(s1, p_ref[...], preferred_element_type=jnp.float32)
        sq_t = jnp.dot(q1, p_ref[...], preferred_element_type=jnp.float32)
        mean_t = sum_t / m
        var_t = jnp.maximum(sq_t / m - mean_t * mean_t, 0.0)
        scale1 = g1_ref[...] * jax.lax.rsqrt(var_t + EPS)
        shift1 = b1_ref[...] - mean_t * scale1

        # ---------------- BN1 + ReLU + conv2 + stats ----------------
        s2 = jnp.zeros((1, L), jnp.float32)
        q2 = jnp.zeros((1, L), jnp.float32)
        for nn in range(N):
            y1 = jnp.maximum(acc1[nn] * scale1 + shift1, 0.0)
            pad2[1:H + 1, CF:(W + 1) * CF] = y1.astype(jnp.bfloat16)
            acc = jnp.zeros((H, L), jnp.float32)
            for dy in range(3):
                for dx in range(3):
                    lhs = pad2[dy:dy + H, dx * CF:(dx + W) * CF]
                    acc = acc + jnp.dot(lhs, w2_ref[dy * 3 + dx],
                                        preferred_element_type=jnp.float32)
            acc2[nn] = acc
            s2 = s2 + jnp.sum(acc, axis=0, keepdims=True)
            q2 = q2 + jnp.sum(acc * acc, axis=0, keepdims=True)

        sum_t = jnp.dot(s2, p_ref[...], preferred_element_type=jnp.float32)
        sq_t = jnp.dot(q2, p_ref[...], preferred_element_type=jnp.float32)
        mean_t = sum_t / m
        var_t = jnp.maximum(sq_t / m - mean_t * mean_t, 0.0)
        scale2 = g2_ref[...] * jax.lax.rsqrt(var_t + EPS)
        shift2 = b2_ref[...] - mean_t * scale2

        # ---------------- BN2 + ReLU (+ fused 2x2 maxpool) ----------------
        for nn in range(N):
            y2 = jnp.maximum(acc2[nn] * scale2 + shift2, 0.0)
            y2b = y2.astype(out_ref.dtype)
            out_ref[nn] = y2b
            if POOL:
                rmax = jnp.maximum(
                    jnp.dot(re_ref[...], y2b, preferred_element_type=jnp.float32),
                    jnp.dot(ro_ref[...], y2b, preferred_element_type=jnp.float32),
                ).astype(jnp.bfloat16)
                pmax = jnp.maximum(
                    jnp.dot(rmax, se_ref[...], preferred_element_type=jnp.float32),
                    jnp.dot(rmax, so_ref[...], preferred_element_type=jnp.float32),
                )
                pool_ref[nn] = pmax.astype(pool_ref.dtype)

    return kernel


def _make_dec_kernel(N, HI, WI, CIN, CF):
    """Fused: convT2x2 (+bias,+t) & skip(+t) -> conv3x3 -> BN -> ReLU -> conv3x3 -> BN -> ReLU."""
    HO, WO = 2 * HI, 2 * WI
    L = WO * CF
    m = float(N * HO * WO)

    def kernel(d_ref, s_ref, t_ref, wu_ref, bu_ref, w1a_ref, w1b_ref, w2_ref,
               g1_ref, b1_ref, g2_ref, b2_ref, p_ref,
               out_ref, up_pad, sk_pad, pad2, acc1, acc2):
        up_pad[...] = jnp.zeros(up_pad.shape, up_pad.dtype)
        sk_pad[...] = jnp.zeros(sk_pad.shape, sk_pad.dtype)
        pad2[...] = jnp.zeros(pad2.shape, pad2.dtype)

        # ------------- upconv (row interleave in VMEM) + skip + conv1 -------------
        s1 = jnp.zeros((1, L), jnp.float32)
        q1 = jnp.zeros((1, L), jnp.float32)
        for nn in range(N):
            t_n = t_ref[nn]
            d_n = d_ref[nn]                                     # (HI, WI*CIN) bf16
            for dy in range(2):
                u = jnp.dot(d_n, wu_ref[dy], preferred_element_type=jnp.float32)
                u = (u + bu_ref[...] + t_n).astype(jnp.bfloat16)      # (HI, L)
                for yy in range(HI):                            # rows 2*yy + dy
                    up_pad[1 + 2 * yy + dy:2 + 2 * yy + dy,
                           CF:(WO + 1) * CF] = u[yy:yy + 1, :]
            sk_pad[1:HO + 1, CF:(WO + 1) * CF] = (
                s_ref[nn].astype(jnp.float32) + t_n).astype(jnp.bfloat16)

            acc = jnp.zeros((HO, L), jnp.float32)
            for dy in range(3):
                for dx in range(3):
                    k = dy * 3 + dx
                    acc = acc + jnp.dot(up_pad[dy:dy + HO, dx * CF:(dx + WO) * CF],
                                        w1a_ref[k], preferred_element_type=jnp.float32)
                    acc = acc + jnp.dot(sk_pad[dy:dy + HO, dx * CF:(dx + WO) * CF],
                                        w1b_ref[k], preferred_element_type=jnp.float32)
            acc1[nn] = acc
            s1 = s1 + jnp.sum(acc, axis=0, keepdims=True)
            q1 = q1 + jnp.sum(acc * acc, axis=0, keepdims=True)

        sum_t = jnp.dot(s1, p_ref[...], preferred_element_type=jnp.float32)
        sq_t = jnp.dot(q1, p_ref[...], preferred_element_type=jnp.float32)
        mean_t = sum_t / m
        var_t = jnp.maximum(sq_t / m - mean_t * mean_t, 0.0)
        scale1 = g1_ref[...] * jax.lax.rsqrt(var_t + EPS)
        shift1 = b1_ref[...] - mean_t * scale1

        # ------------- BN1 + ReLU + conv2 -------------
        s2 = jnp.zeros((1, L), jnp.float32)
        q2 = jnp.zeros((1, L), jnp.float32)
        for nn in range(N):
            y1 = jnp.maximum(acc1[nn] * scale1 + shift1, 0.0)
            pad2[1:HO + 1, CF:(WO + 1) * CF] = y1.astype(jnp.bfloat16)
            acc = jnp.zeros((HO, L), jnp.float32)
            for dy in range(3):
                for dx in range(3):
                    acc = acc + jnp.dot(pad2[dy:dy + HO, dx * CF:(dx + WO) * CF],
                                        w2_ref[dy * 3 + dx],
                                        preferred_element_type=jnp.float32)
            acc2[nn] = acc
            s2 = s2 + jnp.sum(acc, axis=0, keepdims=True)
            q2 = q2 + jnp.sum(acc * acc, axis=0, keepdims=True)

        sum_t = jnp.dot(s2, p_ref[...], preferred_element_type=jnp.float32)
        sq_t = jnp.dot(q2, p_ref[...], preferred_element_type=jnp.float32)
        mean_t = sum_t / m
        var_t = jnp.maximum(sq_t / m - mean_t * mean_t, 0.0)
        scale2 = g2_ref[...] * jax.lax.rsqrt(var_t + EPS)
        shift2 = b2_ref[...] - mean_t * scale2

        for nn in range(N):
            y2 = jnp.maximum(acc2[nn] * scale2 + shift2, 0.0)
            out_ref[nn] = y2.astype(out_ref.dtype)

    return kernel


def _make_final_kernel(N):
    def kernel(x_ref, w_ref, b_ref, o_ref):
        for nn in range(N):
            o_ref[nn] = jnp.dot(x_ref[nn], w_ref[...],
                                preferred_element_type=jnp.float32) + b_ref[...]
    return kernel


# ----------------------------- stage wrappers ------------------------------

def _bytes_of(arrs):
    return int(sum(int(a.size) * a.dtype.itemsize for a in arrs))


def _enc_stage(x, t, p, pool):
    N, H, LIN = x.shape
    cfg = p["cfg"]
    CIN, CF, W = cfg["cin"], cfg["cf"], cfg["w"]
    assert LIN == W * CIN
    L = W * CF
    HP, WP = H // 2, W // 2

    kern = _make_enc_kernel(N, H, W, CIN, CF, pool)
    args = [x, t, p["w1"], p["w2"], p["g1"], p["b1"], p["g2"], p["b2"], p["P"]]
    in_specs = [VMEM_SPEC, SMEM_SPEC] + [VMEM_SPEC] * 7
    out_bytes = N * H * L * 2
    if pool:
        args += [p["Re"], p["Ro"], p["Se"], p["So"]]
        in_specs += [VMEM_SPEC] * 4
        out_shape = (jax.ShapeDtypeStruct((N, H, L), jnp.bfloat16),
                     jax.ShapeDtypeStruct((N, HP, WP * CF), jnp.bfloat16))
        out_specs = (VMEM_SPEC, VMEM_SPEC)
        out_bytes += N * HP * WP * CF * 2
    else:
        out_shape = jax.ShapeDtypeStruct((N, H, L), jnp.bfloat16)
        out_specs = VMEM_SPEC

    scratch = [pltpu.VMEM((H + 2, (W + 2) * CIN), jnp.bfloat16),
               pltpu.VMEM((H + 2, (W + 2) * CF), jnp.bfloat16),
               pltpu.VMEM((N, H, L), jnp.float32),
               pltpu.VMEM((N, H, L), jnp.float32)]

    flops = 2 * N * 9 * H * (W * W * CF * (CIN + CF))
    cost = pl.CostEstimate(flops=int(flops), transcendentals=int(2 * L),
                           bytes_accessed=_bytes_of(args) + out_bytes)

    return pl.pallas_call(
        kern,
        out_shape=out_shape,
        in_specs=in_specs,
        out_specs=out_specs,
        scratch_shapes=scratch,
        compiler_params=CPARAMS,
        cost_estimate=cost,
    )(*args)


def _dec_stage(d, skip, t, p):
    N, HI, LIN = d.shape
    cfg = p["cfg"]
    CIN, CF, WI = cfg["cin"], cfg["cf"], cfg["wi"]
    assert LIN == WI * CIN
    HO, WO = 2 * HI, 2 * WI
    L = WO * CF

    kern = _make_dec_kernel(N, HI, WI, CIN, CF)
    args = [d, skip, t, p["wu"], p["bu"], p["w1a"], p["w1b"], p["w2"],
            p["g1"], p["b1"], p["g2"], p["b2"], p["P"]]
    in_specs = [VMEM_SPEC, VMEM_SPEC, SMEM_SPEC] + [VMEM_SPEC] * 10

    scratch = [pltpu.VMEM((HO + 2, (WO + 2) * CF), jnp.bfloat16),   # up (interleaved)
               pltpu.VMEM((HO + 2, (WO + 2) * CF), jnp.bfloat16),   # skip
               pltpu.VMEM((HO + 2, (WO + 2) * CF), jnp.bfloat16),   # conv2 input
               pltpu.VMEM((N, HO, L), jnp.float32),
               pltpu.VMEM((N, HO, L), jnp.float32)]

    flops = 2 * N * (2 * HI * LIN * L + 9 * HO * L * L * 3)
    cost = pl.CostEstimate(flops=int(flops), transcendentals=int(2 * L),
                           bytes_accessed=_bytes_of(args) + N * HO * L * 2)

    return pl.pallas_call(
        kern,
        out_shape=jax.ShapeDtypeStruct((N, HO, L), jnp.bfloat16),
        in_specs=in_specs,
        out_specs=VMEM_SPEC,
        scratch_shapes=scratch,
        compiler_params=CPARAMS,
        cost_estimate=cost,
    )(*args)


def _final_stage(d, p):
    N, H, LIN = d.shape
    cfg = p["cfg"]
    COUT, W = cfg["cout"], cfg["w"]
    L = W * COUT
    kern = _make_final_kernel(N)
    cost = pl.CostEstimate(flops=int(2 * N * H * LIN * L), transcendentals=0,
                           bytes_accessed=_bytes_of([d, p["w"], p["b"]]) + N * H * L * 4)
    return pl.pallas_call(
        kern,
        out_shape=jax.ShapeDtypeStruct((N, H, L), jnp.float32),
        in_specs=[VMEM_SPEC] * 3,
        out_specs=VMEM_SPEC,
        compiler_params=CPARAMS,
        cost_estimate=cost,
    )(d, p["w"], p["b"])


# ----------------------------- parameters ------------------------------

def _bd_from_base(base, w):
    """(3,3,cin,cout) -> stacked (9, w*cin, w*cout) block-diagonal bf16 matrices."""
    eye = jnp.eye(w, dtype=jnp.float32)
    taps = [jnp.kron(eye, base[dy, dx]) for dy in range(3) for dx in range(3)]
    return jnp.stack(taps).astype(jnp.bfloat16)


def _conv_bd(key, cin, cout, w):
    base = jax.random.normal(key, (3, 3, cin, cout), jnp.float32) / math.sqrt(9.0 * cin)
    return _bd_from_base(base, w)


def _group_sum_mat(w, c):
    """(w*c, w*c) matrix that sums each channel across the w lane-groups (tiled)."""
    return jnp.kron(jnp.ones((w, w), jnp.float32), jnp.eye(c, dtype=jnp.float32))


def _pool_mats(h, w, c):
    hp, wp = h // 2, w // 2
    re = jnp.zeros((hp, h), jnp.float32).at[jnp.arange(hp), 2 * jnp.arange(hp)].set(1.0)
    ro = jnp.zeros((hp, h), jnp.float32).at[jnp.arange(hp), 2 * jnp.arange(hp) + 1].set(1.0)
    ee = jnp.zeros((w, wp), jnp.float32).at[2 * jnp.arange(wp), jnp.arange(wp)].set(1.0)
    eo = jnp.zeros((w, wp), jnp.float32).at[2 * jnp.arange(wp) + 1, jnp.arange(wp)].set(1.0)
    eyec = jnp.eye(c, dtype=jnp.float32)
    return dict(Re=re.astype(jnp.bfloat16), Ro=ro.astype(jnp.bfloat16),
                Se=jnp.kron(ee, eyec).astype(jnp.bfloat16),
                So=jnp.kron(eo, eyec).astype(jnp.bfloat16))


def _upconv_bd(key, cin, cout, wi):
    """ConvTranspose2d(k=2,s=2) weights -> 2 per-row-phase (wi*cin, 2*wi*cout) matrices."""
    base = jax.random.normal(key, (cin, 2, 2, cout), jnp.float32) / math.sqrt(4.0 * cin)
    bias = jnp.zeros((cout,), jnp.float32)
    mats = []
    for dy in range(2):
        m = jnp.zeros((wi * cin, 2 * wi * cout), jnp.float32)
        for dx in range(2):
            p = jnp.zeros((wi, 2 * wi), jnp.float32).at[
                jnp.arange(wi), 2 * jnp.arange(wi) + dx].set(1.0)
            m = m + jnp.kron(p, base[:, dy, dx, :])
        mats.append(m)
    wu = jnp.stack(mats).astype(jnp.bfloat16)
    bu = jnp.tile(bias, 2 * wi)[None, :].astype(jnp.float32)
    return wu, bu


def init_params(key, in_channels, out_channels, features, height, width):
    assert height % 16 == 0 and width % 16 == 0
    f = features
    keys = iter(jax.random.split(key, 32))
    params = {}

    enc_defs = [
        ("enc1", in_channels, f, height, width, True),
        ("enc2", f, 2 * f, height // 2, width // 2, True),
        ("enc3", 2 * f, 4 * f, height // 4, width // 4, True),
        ("enc4", 4 * f, 8 * f, height // 8, width // 8, True),
        ("bottleneck", 8 * f, 16 * f, height // 16, width // 16, False),
    ]
    for name, cin, cf, h, w, pool in enc_defs:
        k1, k2 = jax.random.split(next(keys))
        blk = dict(
            cfg=dict(cin=cin, cf=cf, h=h, w=w),
            w1=_conv_bd(k1, cin, cf, w),
            w2=_conv_bd(k2, cf, cf, w),
            g1=jnp.ones((1, w * cf), jnp.float32),
            b1=jnp.zeros((1, w * cf), jnp.float32),
            g2=jnp.ones((1, w * cf), jnp.float32),
            b2=jnp.zeros((1, w * cf), jnp.float32),
            P=_group_sum_mat(w, cf),
        )
        if pool:
            blk.update(_pool_mats(h, w, cf))
        params[name] = blk

    dec_defs = [
        ("dec4", 16 * f, 8 * f, height // 16, width // 16),
        ("dec3", 8 * f, 4 * f, height // 8, width // 8),
        ("dec2", 4 * f, 2 * f, height // 4, width // 4),
        ("dec1", 2 * f, f, height // 2, width // 2),
    ]
    for name, cin, cf, hi, wi in dec_defs:
        k1, k2, k3 = jax.random.split(next(keys), 3)
        wo = 2 * wi
        wu, bu = _upconv_bd(k1, cin, cf, wi)
        base1 = jax.random.normal(k2, (3, 3, 2 * cf, cf), jnp.float32) / math.sqrt(9.0 * 2 * cf)
        params[name] = dict(
            cfg=dict(cin=cin, cf=cf, hi=hi, wi=wi),
            wu=wu, bu=bu,
            w1a=_bd_from_base(base1[:, :, :cf, :], wo),     # 'up' half of the concat
            w1b=_bd_from_base(base1[:, :, cf:, :], wo),     # skip half of the concat
            w2=_conv_bd(k3, cf, cf, wo),
            g1=jnp.ones((1, wo * cf), jnp.float32),
            b1=jnp.zeros((1, wo * cf), jnp.float32),
            g2=jnp.ones((1, wo * cf), jnp.float32),
            b2=jnp.zeros((1, wo * cf), jnp.float32),
            P=_group_sum_mat(wo, cf),
        )

    kf1, kf2 = jax.random.split(next(keys))
    wf = jax.random.normal(kf1, (f, out_channels), jnp.float32) / math.sqrt(float(f))
    bf = jax.random.normal(kf2, (out_channels,), jnp.float32) * 0.01
    params["final"] = dict(
        cfg=dict(cin=f, cout=out_channels, w=width),
        w=jnp.kron(jnp.eye(width, dtype=jnp.float32), wf).astype(jnp.bfloat16),
        b=jnp.tile(bf, width)[None, :].astype(jnp.float32),
    )
    return params


# ----------------------------- forward pass ------------------------------

def forward(params, x_nchw, time_emb):
    """x_nchw: (B, Cin, H, W); time_emb: (B, 1). Returns (B, Cout, H, W)."""
    assert time_emb.shape[1] == 1, (
        "time_embedding_dim must be 1 for the reference x + t broadcast to be valid")
    N, CIN, H, W = x_nchw.shape
    x = jnp.transpose(x_nchw, (0, 2, 3, 1)).reshape(N, H, W * CIN).astype(jnp.bfloat16)
    t = time_emb[:, 0].astype(jnp.float32)                 # (B,) scalars -> SMEM

    enc1, p1 = _enc_stage(x, t, params["enc1"], pool=True)
    enc2, p2 = _enc_stage(p1, t, params["enc2"], pool=True)
    enc3, p3 = _enc_stage(p2, t, params["enc3"], pool=True)
    enc4, p4 = _enc_stage(p3, t, params["enc4"], pool=True)
    bott = _enc_stage(p4, t, params["bottleneck"], pool=False)

    d4 = _dec_stage(bott, enc4, t, params["dec4"])
    d3 = _dec_stage(d4, enc3, t, params["dec3"])
    d2 = _dec_stage(d3, enc2, t, params["dec2"])
    d1 = _dec_stage(d2, enc1, t, params["dec1"])

    out = _final_stage(d1, params["final"])                # (N, H, W*OUTC) f32
    outc = params["final"]["cfg"]["cout"]
    out = out.reshape(N, H, W, outc)
    return jnp.transpose(out, (0, 3, 1, 2))                # NHWC -> NCHW


if __name__ == "__main__":
    B, IN_CH, OUT_CH, H, W = 2, 4, 4, 16, 16
    FEATURES = 8
    TIME_DIM = 1   # required by the reference module's broadcasting

    key = jax.random.PRNGKey(0)
    k_params, k_x, k_t = jax.random.split(key, 3)

    params = init_params(k_params, IN_CH, OUT_CH, FEATURES, H, W)
    x = jax.random.normal(k_x, (B, IN_CH, H, W), jnp.float32)
    time_emb = jax.random.normal(k_t, (B, TIME_DIM), jnp.float32)

    out = forward(params, x, time_emb)
    out = jax.block_until_ready(out)
    assert out.shape == (B, OUT_CH, H, W), out.shape
    assert bool(jnp.all(jnp.isfinite(out)))
    print("KERNEL_OK")
</pallas_src>

<mosaic_0001>
module attributes {stable_mosaic.version = 11 : i64} {
  func.func @kernel(%arg0: memref<2x16x64xbf16, #tpu.memory_space<vmem>>, %arg1: memref<2xf32, #tpu.memory_space<smem>>, %arg2: memref<9x64x128xbf16, #tpu.memory_space<vmem>>, %arg3: memref<9x128x128xbf16, #tpu.memory_space<vmem>>, %arg4: memref<1x128xf32, #tpu.memory_space<vmem>>, %arg5: memref<1x128xf32, #tpu.memory_space<vmem>>, %arg6: memref<1x128xf32, #tpu.memory_space<vmem>>, %arg7: memref<1x128xf32, #tpu.memory_space<vmem>>, %arg8: memref<128x128xf32, #tpu.memory_space<vmem>>, %arg9: memref<8x16xbf16, #tpu.memory_space<vmem>>, %arg10: memref<8x16xbf16, #tpu.memory_space<vmem>>, %arg11: memref<128x64xbf16, #tpu.memory_space<vmem>>, %arg12: memref<128x64xbf16, #tpu.memory_space<vmem>>, %arg13: memref<2x16x128xbf16, #tpu.memory_space<vmem>>, %arg14: memref<2x8x64xbf16, #tpu.memory_space<vmem>>, %arg15: memref<18x72xbf16, #tpu.memory_space<vmem>>, %arg16: memref<18x144xbf16, #tpu.memory_space<vmem>>, %arg17: memref<2x16x128xf32, #tpu.memory_space<vmem>>, %arg18: memref<2x16x128xf32, #tpu.memory_space<vmem>>) attributes {dimension_semantics = [], scalar_prefetch = 0 : i64, scratch_operands = 4 : i64, tpu.core_type = #tpu.core_type<tc>} {
    %cst = arith.constant 0.000000e+00 : bf16
    %0 = vector.broadcast %cst : bf16 to vector<18x72xbf16>
    %c0 = arith.constant 0 : index
    %c0_0 = arith.constant 0 : index
    %1 = vector.load %arg15[%c0, %c0_0] : memref<18x72xbf16, #tpu.memory_space<vmem>>, vector<18x72xbf16>
    tpu.vector_store %arg15[%c0, %c0_0], %0 {strides = array<i32>} : memref<18x72xbf16, #tpu.memory_space<vmem>>, vector<18x72xbf16>,
    %cst_1 = arith.constant 0.000000e+00 : bf16
    %2 = vector.broadcast %cst_1 : bf16 to vector<18x144xbf16>
    %c0_2 = arith.constant 0 : index
    %c0_3 = arith.constant 0 : index
    %3 = vector.load %arg16[%c0_2, %c0_3] : memref<18x144xbf16, #tpu.memory_space<vmem>>, vector<18x144xbf16>
    tpu.vector_store %arg16[%c0_2, %c0_3], %2 {strides = array<i32>} : memref<18x144xbf16, #tpu.memory_space<vmem>>, vector<18x144xbf16>,
    %cst_4 = arith.constant 0.000000e+00 : f32
    %4 = vector.broadcast %cst_4 : f32 to vector<1x128xf32>
    %cst_5 = arith.constant 0.000000e+00 : f32
    %5 = vector.broadcast %cst_5 : f32 to vector<1x128xf32>
    %c0_6 = arith.constant 0 : index
    %6 = memref.load %arg1[%c0_6] : memref<2xf32, #tpu.memory_space<smem>>
    %c0_7 = arith.constant 0 : index
    %c0_8 = arith.constant 0 : index
    %c0_9 = arith.constant 0 : index
    %7 = vector.load %arg0[%c0_7, %c0_8, %c0_9] : memref<2x16x64xbf16, #tpu.memory_space<vmem>>, vector<1x16x64xbf16>
    %8 = vector.shape_cast %7 : vector<1x16x64xbf16> to vector<16x64xbf16>
    %9 = arith.extf %8 : vector<16x64xbf16> to vector<16x64xf32>
    %10 = vector.broadcast %6 : f32 to vector<16x64xf32>
    %11 = arith.addf %9, %10 : vector<16x64xf32>
    %12 = arith.truncf %11 : vector<16x64xf32> to vector<16x64xbf16>
    %c1 = arith.constant 1 : index
    %c4 = arith.constant 4 : index
    %13 = vector.load %arg15[%c1, %c4] : memref<18x72xbf16, #tpu.memory_space<vmem>>, vector<16x64xbf16>
    tpu.vector_store %arg15[%c1, %c4], %12 {strides = array<i32>} : memref<18x72xbf16, #tpu.memory_space<vmem>>, vector<16x64xbf16>,
    %cst_10 = arith.constant 0.000000e+00 : f32
    %14 = vector.broadcast %cst_10 : f32 to vector<16x128xf32>
    %c0_11 = arith.constant 0 : index
    %c0_12 = arith.constant 0 : index
    %15 = vector.load %arg15[%c0_11, %c0_12] : memref<18x72xbf16, #tpu.memory_space<vmem>>, vector<16x64xbf16>
    %c0_13 = arith.constant 0 : index
    %c0_14 = arith.constant 0 : index
    %c0_15 = arith.constant 0 : index
    %16 = vector.load %arg2[%c0_13, %c0_14, %c0_15] : memref<9x64x128xbf16, #tpu.memory_space<vmem>>, vector<1x64x128xbf16>
    %17 = vector.shape_cast %16 : vector<1x64x128xbf16> to vector<64x128xbf16>
    %cst_16 = arith.constant dense<0.000000e+00> : vector<16x128xf32>
    %18 = tpu.matmul %15, %17, %cst_16 {dimension_numbers = #tpu.dot_dimension_numbers<[1], [0], [0], [1], [0, 0, 1, 1], [], []>} : vector<16x64xbf16>, vector<64x128xbf16>, vector<16x128xf32> -> vector<16x128xf32>
    %19 = arith.addf %14, %18 : vector<16x128xf32>
    %c0_17 = arith.constant 0 : index
    %c4_18 = arith.constant 4 : index
    %20 = vector.load %arg15[%c0_17, %c4_18] : memref<18x72xbf16, #tpu.memory_space<vmem>>, vector<16x64xbf16>
    %c1_19 = arith.constant 1 : index
    %c0_20 = arith.constant 0 : index
    %c0_21 = arith.constant 0 : index
    %21 = vector.load %arg2[%c1_19, %c0_20, %c0_21] : memref<9x64x128xbf16, #tpu.memory_space<vmem>>, vector<1x64x128xbf16>
    %22 = vector.shape_cast %21 : vector<1x64x128xbf16> to vector<64x128xbf16>
    %cst_22 = arith.constant dense<0.000000e+00> : vector<16x128xf32>
    %23 = tpu.matmul %20, %22, %cst_22 {dimension_numbers = #tpu.dot_dimension_numbers<[1], [0], [0], [1], [0, 0, 1, 1], [], []>} : vector<16x64xbf16>, vector<64x128xbf16>, vector<16x128xf32> -> vector<16x128xf32>
    %24 = arith.addf %19, %23 : vector<16x128xf32>
    %c0_23 = arith.constant 0 : index
    %c8 = arith.constant 8 : index
    %25 = vector.load %arg15[%c0_23, %c8] : memref<18x72xbf16, #tpu.memory_space<vmem>>, vector<16x64xbf16>
    %c2 = arith.constant 2 : index
    %c0_24 = arith.constant 0 : index
    %c0_25 = arith.constant 0 : index
    %26 = vector.load %arg2[%c2, %c0_24, %c0_25] : memref<9x64x128xbf16, #tpu.memory_space<vmem>>, vector<1x64x128xbf16>
    %27 = vector.shape_cast %26 : vector<1x64x128xbf16> to vector<64x128xbf16>
    %cst_26 = arith.constant dense<0.000000e+00> : vector<16x128xf32>
    %28 = tpu.matmul %25, %27, %cst_26 {dimension_numbers = #tpu.dot_dimension_numbers<[1], [0], [0], [1], [0, 0, 1, 1], [], []>} : vector<16x64xbf16>, vector<64x128xbf16>, vector<16x128xf32> -> vector<16x128xf32>
    %29 = arith.addf %24, %28 : vector<16x128xf32>
    %c1_27 = arith.constant 1 : index
    %c0_28 = arith.constant 0 : index
    %30 = vector.load %arg15[%c1_27, %c0_28] : memref<18x72xbf16, #tpu.memory_space<vmem>>, vector<16x64xbf16>
    %c3 = arith.constant 3 : index
    %c0_29 = arith.constant 0 : index
    %c0_30 = arith.constant 0 : index
    %31 = vector.load %arg2[%c3, %c0_29, %c0_30] : memref<9x64x128xbf16, #tpu.memory_space<vmem>>, vector<1x64x128xbf16>
    %32 = vector.shape_cast %31 : vector<1x64x128xbf16> to vector<64x128xbf16>
    %cst_31 = arith.constant dense<0.000000e+00> : vector<16x128xf32>
    %33 = tpu.matmul %30, %32, %cst_31 {dimension_numbers = #tpu.dot_dimension_numbers<[1], [0], [0], [1], [0, 0, 1, 1], [], []>} : vector<16x64xbf16>, vector<64x128xbf16>, vector<16x128xf32> -> vector<16x128xf32>
    %34 = arith.addf %29, %33 : vector<16x128xf32>
    %c1_32 = arith.constant 1 : index
    %c4_33 = arith.constant 4 : index
    %35 = vector.load %arg15[%c1_32, %c4_33] : memref<18x72xbf16, #tpu.memory_space<vmem>>, vector<16x64xbf16>
    %c4_34 = arith.constant 4 : index
    %c0_35 = arith.constant 0 : index
    %c0_36 = arith.constant 0 : index
    %36 = vector.load %arg2[%c4_34, %c0_35, %c0_36] : memref<9x64x128xbf16, #tpu.memory_space<vmem>>, vector<1x64x128xbf16>
    %37 = vector.shape_cast %36 : vector<1x64x128xbf16> to vector<64x128xbf16>
    %cst_37 = arith.constant dense<0.000000e+00> : vector<16x128xf32>
    %38 = tpu.matmul %35, %37, %cst_37 {dimension_numbers = #tpu.dot_dimension_numbers<[1], [0], [0], [1], [0, 0, 1, 1], [], []>} : vector<16x64xbf16>, vector<64x128xbf16>, vector<16x128xf32> -> vector<16x128xf32>
    %39 = arith.addf %34, %38 : vector<16x128xf32>
    %c1_38 = arith.constant 1 : index
    %c8_39 = arith.constant 8 : index
    %40 = vector.load %arg15[%c1_38, %c8_39] : memref<18x72xbf16, #tpu.memory_space<vmem>>, vector<16x64xbf16>
    %c5 = arith.constant 5 : index
    %c0_40 = arith.constant 0 : index
    %c0_41 = arith.constant 0 : index
    %41 = vector.load %arg2[%c5, %c0_40, %c0_41] : memref<9x64x128xbf16, #tpu.memory_space<vmem>>, vector<1x64x128xbf16>
    %42 = vector.shape_cast %41 : vector<1x64x128xbf16> to vector<64x128xbf16>
    %cst_42 = arith.constant dense<0.000000e+00> : vector<16x128xf32>
    %43 = tpu.matmul %40, %42, %cst_42 {dimension_numbers = #tpu.dot_dimension_numbers<[1], [0], [0], [1], [0, 0, 1, 1], [], []>} : vector<16x64xbf16>, vector<64x128xbf16>, vector<16x128xf32> -> vector<16x128xf32>
    %44 = arith.addf %39, %43 : vector<16x128xf32>
    %c2_43 = arith.constant 2 : index
    %c0_44 = arith.constant 0 : index
    %45 = vector.load %arg15[%c2_43, %c0_44] : memref<18x72xbf16, #tpu.memory_space<vmem>>, vector<16x64xbf16>
    %c6 = arith.constant 6 : index
    %c0_45 = arith.constant 0 : index
    %c0_46 = arith.constant 0 : index
    %46 = vector.load %arg2[%c6, %c0_45, %c0_46] : memref<9x64x128xbf16, #tpu.memory_space<vmem>>, vector<1x64x128xbf16>
    %47 = vector.shape_cast %46 : vector<1x64x128xbf16> to vector<64x128xbf16>
    %cst_47 = arith.constant dense<0.000000e+00> : vector<16x128xf32>
    %48 = tpu.matmul %45, %47, %cst_47 {dimension_numbers = #tpu.dot_dimension_numbers<[1], [0], [0], [1], [0, 0, 1, 1], [], []>} : vector<16x64xbf16>, vector<64x128xbf16>, vector<16x128xf32> -> vector<16x128xf32>
    %49 = arith.addf %44, %48 : vector<16x128xf32>
    %c2_48 = arith.constant 2 : index
    %c4_49 = arith.constant 4 : index
    %50 = vector.load %arg15[%c2_48, %c4_49] : memref<18x72xbf16, #tpu.memory_space<vmem>>, vector<16x64xbf16>
    %c7 = arith.constant 7 : index
    %c0_50 = arith.constant 0 : index
    %c0_51 = arith.constant 0 : index
    %51 = vector.load %arg2[%c7, %c0_50, %c0_51] : memref<9x64x128xbf16, #tpu.memory_space<vmem>>, vector<1x64x128xbf16>
    %52 = vector.shape_cast %51 : vector<1x64x128xbf16> to vector<64x128xbf16>
    %cst_52 = arith.constant dense<0.000000e+00> : vector<16x128xf32>
    %53 = tpu.matmul %50, %52, %cst_52 {dimension_numbers = #tpu.dot_dimension_numbers<[1], [0], [0], [1], [0, 0, 1, 1], [], []>} : vector<16x64xbf16>, vector<64x128xbf16>, vector<16x128xf32> -> vector<16x128xf32>
    %54 = arith.addf %49, %53 : vector<16x128xf32>
    %c2_53 = arith.constant 2 : index
    %c8_54 = arith.constant 8 : index
    %55 = vector.load %arg15[%c2_53, %c8_54] : memref<18x72xbf16, #tpu.memory_space<vmem>>, vector<16x64xbf16>
    %c8_55 = arith.constant 8 : index
    %c0_56 = arith.constant 0 : index
    %c0_57 = arith.constant 0 : index
    %56 = vector.load %arg2[%c8_55, %c0_56, %c0_57] : memref<9x64x128xbf16, #tpu.memory_space<vmem>>, vector<1x64x128xbf16>
    %57 = vector.shape_cast %56 : vector<1x64x128xbf16> to vector<64x128xbf16>
    %cst_58 = arith.constant dense<0.000000e+00> : vector<16x128xf32>
    %58 = tpu.matmul %55, %57, %cst_58 {dimension_numbers = #tpu.dot_dimension_numbers<[1], [0], [0], [1], [0, 0, 1, 1], [], []>} : vector<16x64xbf16>, vector<64x128xbf16>, vector<16x128xf32> -> vector<16x128xf32>
    %59 = arith.addf %54, %58 : vector<16x128xf32>
    %c0_59 = arith.constant 0 : index
    %c0_60 = arith.constant 0 : index
    %c0_61 = arith.constant 0 : index
    %60 = vector.load %arg17[%c0_59, %c0_60, %c0_61] : memref<2x16x128xf32, #tpu.memory_space<vmem>>, vector<1x16x128xf32>
    %61 = vector.shape_cast %60 : vector<1x16x128xf32> to vector<16x128xf32>
    %62 = vector.shape_cast %59 : vector<16x128xf32> to vector<1x16x128xf32>
    tpu.vector_store %arg17[%c0_59, %c0_60, %c0_61], %62 {strides = array<i32>} : memref<2x16x128xf32, #tpu.memory_space<vmem>>, vector<1x16x128xf32>,
    %cst_62 = arith.constant dense<0.000000e+00> : vector<128xf32>
    %63 = vector.multi_reduction <add>, %59, %cst_62 [0] : vector<16x128xf32> to vector<128xf32>
    %64 = vector.shape_cast %63 : vector<128xf32> to vector<1x128xf32>
    %65 = arith.addf %4, %64 : vector<1x128xf32>
    %66 = arith.mulf %59, %59 : vector<16x128xf32>
    %cst_63 = arith.constant dense<0.000000e+00> : vector<128xf32>
    %67 = vector.multi_reduction <add>, %66, %cst_63 [0] : vector<16x128xf32> to vector<128xf32>
    %68 = vector.shape_cast %67 : vector<128xf32> to vector<1x128xf32>
    %69 = arith.addf %5, %68 : vector<1x128xf32>
    %c1_64 = arith.constant 1 : index
    %70 = memref.load %arg1[%c1_64] : memref<2xf32, #tpu.memory_space<smem>>
    %c1_65 = arith.constant 1 : index
    %c0_66 = arith.constant 0 : index
    %c0_67 = arith.constant 0 : index
    %71 = vector.load %arg0[%c1_65, %c0_66, %c0_67] : memref<2x16x64xbf16, #tpu.memory_space<vmem>>, vector<1x16x64xbf16>
    %72 = vector.shape_cast %71 : vector<1x16x64xbf16> to vector<16x64xbf16>
    %73 = arith.extf %72 : vector<16x64xbf16> to vector<16x64xf32>
    %74 = vector.broadcast %70 : f32 to vector<16x64xf32>
    %75 = arith.addf %73, %74 : vector<16x64xf32>
    %76 = arith.truncf %75 : vector<16x64xf32> to vector<16x64xbf16>
    %c1_68 = arith.constant 1 : index
    %c4_69 = arith.constant 4 : index
    %77 = vector.load %arg15[%c1_68, %c4_69] : memref<18x72xbf16, #tpu.memory_space<vmem>>, vector<16x64xbf16>
    tpu.vector_store %arg15[%c1_68, %c4_69], %76 {strides = array<i32>} : memref<18x72xbf16, #tpu.memory_space<vmem>>, vector<16x64xbf16>,
    %cst_70 = arith.constant 0.000000e+00 : f32
    %78 = vector.broadcast %cst_70 : f32 to vector<16x128xf32>
    %c0_71 = arith.constant 0 : index
    %c0_72 = arith.constant 0 : index
    %79 = vector.load %arg15[%c0_71, %c0_72] : memref<18x72xbf16, #tpu.memory_space<vmem>>, vector<16x64xbf16>
    %c0_73 = arith.constant 0 : index
    %c0_74 = arith.constant 0 : index
    %c0_75 = arith.constant 0 : index
    %80 = vector.load %arg2[%c0_73, %c0_74, %c0_75] : memref<9x64x128xbf16, #tpu.memory_space<vmem>>, vector<1x64x128xbf16>
    %81 = vector.shape_cast %80 : vector<1x64x128xbf16> to vector<64x128xbf16>
    %cst_76 = arith.constant dense<0.000000e+00> : vector<16x128xf32>
    %82 = tpu.matmul %79, %81, %cst_76 {dimension_numbers = #tpu.dot_dimension_numbers<[1], [0], [0], [1], [0, 0, 1, 1], [], []>} : vector<16x64xbf16>, vector<64x128xbf16>, vector<16x128xf32> -> vector<16x128xf32>
    %83 = arith.addf %78, %82 : vector<16x128xf32>
    %c0_77 = arith.constant 0 : index
    %c4_78 = arith.constant 4 : index
    %84 = vector.load %arg15[%c0_77, %c4_78] : memref<18x72xbf16, #tpu.memory_space<vmem>>, vector<16x64xbf16>
    %c1_79 = arith.constant 1 : index
    %c0_80 = arith.constant 0 : index
    %c0_81 = arith.constant 0 : index
    %85 = vector.load %arg2[%c1_79, %c0_80, %c0_81] : memref<9x64x128xbf16, #tpu.memory_space<vmem>>, vector<1x64x128xbf16>
    %86 = vector.shape_cast %85 : vector<1x64x128xbf16> to vector<64x128xbf16>
    %cst_82 = arith.constant dense<0.000000e+00> : vector<16x128xf32>
    %87 = tpu.matmul %84, %86, %cst_82 {dimension_numbers = #tpu.dot_dimension_numbers<[1], [0], [0], [1], [0, 0, 1, 1], [], []>} : vector<16x64xbf16>, vector<64x128xbf16>, vector<16x128xf32> -> vector<16x128xf32>
    %88 = arith.addf %83, %87 : vector<16x128xf32>
    %c0_83 = arith.constant 0 : index
    %c8_84 = arith.constant 8 : index
    %89 = vector.load %arg15[%c0_83, %c8_84] : memref<18x72xbf16, #tpu.memory_space<vmem>>, vector<16x64xbf16>
    %c2_85 = arith.constant 2 : index
    %c0_86 = arith.constant 0 : index
    %c0_87 = arith.constant 0 : index
    %90 = vector.load %arg2[%c2_85, %c0_86, %c0_87] : memref<9x64x128xbf16, #tpu.memory_space<vmem>>, vector<1x64x128xbf16>
    %91 = vector.shape_cast %90 : vector<1x64x128xbf16> to vector<64x128xbf16>
    %cst_88 = arith.constant dense<0.000000e+00> : vector<16x128xf32>
    %92 = tpu.matmul %89, %91, %cst_88 {dimension_numbers = #tpu.dot_dimension_numbers<[1], [0], [0], [1], [0, 0, 1, 1], [], []>} : vector<16x64xbf16>, vector<64x128xbf16>, vector<16x128xf32> -> vector<16x128xf32>
    %93 = arith.addf %88, %92 : vector<16x128xf32>
    %c1_89 = arith.constant 1 : index
    %c0_90 = arith.constant 0 : index
    %94 = vector.load %arg15[%c1_89, %c0_90] : memref<18x72xbf16, #tpu.memory_space<vmem>>, vector<16x64xbf16>
    %c3_91 = arith.constant 3 : index
    %c0_92 = arith.constant 0 : index
    %c0_93 = arith.constant 0 : index
    %95 = vector.load %arg2[%c3_91, %c0_92, %c0_93] : memref<9x64x128xbf16, #tpu.memory_space<vmem>>, vector<1x64x128xbf16>
    %96 = vector.shape_cast %95 : vector<1x64x128xbf16> to vector<64x128xbf16>
    %cst_94 = arith.constant dense<0.000000e+00> : vector<16x128xf32>
    %97 = tpu.matmul %94, %96, %cst_94 {dimension_numbers = #tpu.dot_dimension_numbers<[1], [0], [0], [1], [0, 0, 1, 1], [], []>} : vector<16x64xbf16>, vector<64x128xbf16>, vector<16x128xf32> -> vector<16x128xf32>
    %98 = arith.addf %93, %97 : vector<16x128xf32>
    %c1_95 = arith.constant 1 : index
    %c4_96 = arith.constant 4 : index
    %99 = vector.load %arg15[%c1_95, %c4_96] : memref<18x72xbf16, #tpu.memory_space<vmem>>, vector<16x64xbf16>
    %c4_97 = arith.constant 4 : index
    %c0_98 = arith.constant 0 : index
    %c0_99 = arith.constant 0 : index
    %100 = vector.load %arg2[%c4_97, %c0_98, %c0_99] : memref<9x64x128xbf16, #tpu.memory_space<vmem>>, vector<1x64x128xbf16>
    %101 = vector.shape_cast %100 : vector<1x64x128xbf16> to vector<64x128xbf16>
    %cst_100 = arith.constant dense<0.000000e+00> : vector<16x128xf32>
    %102 = tpu.matmul %99, %101, %cst_100 {dimension_numbers = #tpu.dot_dimension_numbers<[1], [0], [0], [1], [0, 0, 1, 1], [], []>} : vector<16x64xbf16>, vector<64x128xbf16>, vector<16x128xf32> -> vector<16x128xf32>
    %103 = arith.addf %98, %102 : vector<16x128xf32>
    %c1_101 = arith.constant 1 : index
    %c8_102 = arith.constant 8 : index
    %104 = vector.load %arg15[%c1_101, %c8_102] : memref<18x72xbf16, #tpu.memory_space<vmem>>, vector<16x64xbf16>
    %c5_103 = arith.constant 5 : index
    %c0_104 = arith.constant 0 : index
    %c0_105 = arith.constant 0 : index
    %105 = vector.load %arg2[%c5_103, %c0_104, %c0_105] : memref<9x64x128xbf16, #tpu.memory_space<vmem>>, vector<1x64x128xbf16>
    %106 = vector.shape_cast %105 : vector<1x64x128xbf16> to vector<64x128xbf16>
    %cst_106 = arith.constant dense<0.000000e+00> : vector<16x128xf32>
    %107 = tpu.matmul %104, %106, %cst_106 {dimension_numbers = #tpu.dot_dimension_numbers<[1], [0], [0], [1], [0, 0, 1, 1], [], []>} : vector<16x64xbf16>, vector<64x128xbf16>, vector<16x128xf32> -> vector<16x128xf32>
    %108 = arith.addf %103, %107 : vector<16x128xf32>
    %c2_107 = arith.constant 2 : index
    %c0_108 = arith.constant 0 : index
    %109 = vector.load %arg15[%c2_107, %c0_108] : memref<18x72xbf16, #tpu.memory_space<vmem>>, vector<16x64xbf16>
    %c6_109 = arith.constant 6 : index
    %c0_110 = arith.constant 0 : index
    %c0_111 = arith.constant 0 : index
    %110 = vector.load %arg2[%c6_109, %c0_110, %c0_111] : memref<9x64x128xbf16, #tpu.memory_space<vmem>>, vector<1x64x128xbf16>
    %111 = vector.shape_cast %110 : vector<1x64x128xbf16> to vector<64x128xbf16>
    %cst_112 = arith.constant dense<0.000000e+00> : vector<16x128xf32>
    %112 = tpu.matmul %109, %111, %cst_112 {dimension_numbers = #tpu.dot_dimension_numbers<[1], [0], [0], [1], [0, 0, 1, 1], [], []>} : vector<16x64xbf16>, vector<64x128xbf16>, vector<16x128xf32> -> vector<16x128xf32>
    %113 = arith.addf %108, %112 : vector<16x128xf32>
    %c2_113 = arith.constant 2 : index
    %c4_114 = arith.constant 4 : index
    %114 = vector.load %arg15[%c2_113, %c4_114] : memref<18x72xbf16, #tpu.memory_space<vmem>>, vector<16x64xbf16>
    %c7_115 = arith.constant 7 : index
    %c0_116 = arith.constant 0 : index
    %c0_117 = arith.constant 0 : index
    %115 = vector.load %arg2[%c7_115, %c0_116, %c0_117] : memref<9x64x128xbf16, #tpu.memory_space<vmem>>, vector<1x64x128xbf16>
    %116 = vector.shape_cast %115 : vector<1x64x128xbf16> to vector<64x128xbf16>
    %cst_118 = arith.constant dense<0.000000e+00> : vector<16x128xf32>
    %117 = tpu.matmul %114, %116, %cst_118 {dimension_numbers = #tpu.dot_dimension_numbers<[1], [0], [0], [1], [0, 0, 1, 1], [], []>} : vector<16x64xbf16>, vector<64x128xbf16>, vector<16x128xf32> -> vector<16x128xf32>
    %118 = arith.addf %113, %117 : vector<16x128xf32>
    %c2_119 = arith.constant 2 : index
    %c8_120 = arith.constant 8 : index
    %119 = vector.load %arg15[%c2_119, %c8_120] : memref<18x72xbf16, #tpu.memory_space<vmem>>, vector<16x64xbf16>
    %c8_121 = arith.constant 8 : index
    %c0_122 = arith.constant 0 : index
    %c0_123 = arith.constant 0 : index
    %120 = vector.load %arg2[%c8_121, %c0_122, %c0_123] : memref<9x64x128xbf16, #tpu.memory_space<vmem>>, vector<1x64x128xbf16>
    %121 = vector.shape_cast %120 : vector<1x64x128xbf16> to vector<64x128xbf16>
    %cst_124 = arith.constant dense<0.000000e+00> : vector<16x128xf32>
    %122 = tpu.matmul %119, %121, %cst_124 {dimension_numbers = #tpu.dot_dimension_numbers<[1], [0], [0], [1], [0, 0, 1, 1], [], []>} : vector<16x64xbf16>, vector<64x128xbf16>, vector<16x128xf32> -> vector<16x128xf32>
    %123 = arith.addf %118, %122 : vector<16x128xf32>
    %c1_125 = arith.constant 1 : index
    %c0_126 = arith.constant 0 : index
    %c0_127 = arith.constant 0 : index
    %124 = vector.load %arg17[%c1_125, %c0_126, %c0_127] : memref<2x16x128xf32, #tpu.memory_space<vmem>>, vector<1x16x128xf32>
    %125 = vector.shape_cast %124 : vector<1x16x128xf32> to vector<16x128xf32>
    %126 = vector.shape_cast %123 : vector<16x128xf32> to vector<1x16x128xf32>
    tpu.vector_store %arg17[%c1_125, %c0_126, %c0_127], %126 {strides = array<i32>} : memref<2x16x128xf32, #tpu.memory_space<vmem>>, vector<1x16x128xf32>,
    %cst_128 = arith.constant dense<0.000000e+00> : vector<128xf32>
    %127 = vector.multi_reduction <add>, %123, %cst_128 [0] : vector<16x128xf32> to vector<128xf32>
    %128 = vector.shape_cast %127 : vector<128xf32> to vector<1x128xf32>
    %129 = arith.addf %65, %128 : vector<1x128xf32>
    %130 = arith.mulf %123, %123 : vector<16x128xf32>
    %cst_129 = arith.constant dense<0.000000e+00> : vector<128xf32>
    %131 = vector.multi_reduction <add>, %130, %cst_129 [0] : vector<16x128xf32> to vector<128xf32>
    %132 = vector.shape_cast %131 : vector<128xf32> to vector<1x128xf32>
    %133 = arith.addf %69, %132 : vector<1x128xf32>
    %c0_130 = arith.constant 0 : index
    %c0_131 = arith.constant 0 : index
    %134 = vector.load %arg8[%c0_130, %c0_131] : memref<128x128xf32, #tpu.memory_space<vmem>>, vector<128x128xf32>
    %cst_132 = arith.constant dense<0.000000e+00> : vector<1x128xf32>
    %135 = tpu.matmul %129, %134, %cst_132 {dimension_numbers = #tpu.dot_dimension_numbers<[1], [0], [0], [1], [0, 0, 1, 1], [], []>} : vector<1x128xf32>, vector<128x128xf32>, vector<1x128xf32> -> vector<1x128xf32>
    %c0_133 = arith.constant 0 : index
    %c0_134 = arith.constant 0 : index
    %136 = vector.load %arg8[%c0_133, %c0_134] : memref<128x128xf32, #tpu.memory_space<vmem>>, vector<128x128xf32>
    %cst_135 = arith.constant dense<0.000000e+00> : vector<1x128xf32>
    %137 = tpu.matmul %133, %136, %cst_135 {dimension_numbers = #tpu.dot_dimension_numbers<[1], [0], [0], [1], [0, 0, 1, 1], [], []>} : vector<1x128xf32>, vector<128x128xf32>, vector<1x128xf32> -> vector<1x128xf32>
    %cst_136 = arith.constant 5.120000e+02 : f32
    %138 = vector.broadcast %cst_136 : f32 to vector<1x128xf32>
    %139 = arith.divf %135, %138 : vector<1x128xf32>
    %cst_137 = arith.constant 5.120000e+02 : f32
    %140 = vector.broadcast %cst_137 : f32 to vector<1x128xf32>
    %141 = arith.divf %137, %140 : vector<1x128xf32>
    %142 = arith.mulf %139, %139 : vector<1x128xf32>
    %143 = arith.subf %141, %142 : vector<1x128xf32>
    %cst_138 = arith.constant 0.000000e+00 : f32
    %144 = vector.broadcast %cst_138 : f32 to vector<1x128xf32>
    %145 = arith.maximumf %143, %144 : vector<1x128xf32>
    %c0_139 = arith.constant 0 : index
    %c0_140 = arith.constant 0 : index
    %146 = vector.load %arg4[%c0_139, %c0_140] : memref<1x128xf32, #tpu.memory_space<vmem>>, vector<1x128xf32>
    %cst_141 = arith.constant 9.99999974E-6 : f32
    %147 = vector.broadcast %cst_141 : f32 to vector<1x128xf32>
    %148 = arith.addf %145, %147 : vector<1x128xf32>
    %149 = math.rsqrt %148 : vector<1x128xf32>
    %150 = arith.mulf %146, %149 : vector<1x128xf32>
    %c0_142 = arith.constant 0 : index
    %c0_143 = arith.constant 0 : index
    %151 = vector.load %arg5[%c0_142, %c0_143] : memref<1x128xf32, #tpu.memory_space<vmem>>, vector<1x128xf32>
    %152 = arith.mulf %139, %150 : vector<1x128xf32>
    %153 = arith.subf %151, %152 : vector<1x128xf32>
    %cst_144 = arith.constant 0.000000e+00 : f32
    %154 = vector.broadcast %cst_144 : f32 to vector<1x128xf32>
    %cst_145 = arith.constant 0.000000e+00 : f32
    %155 = vector.broadcast %cst_145 : f32 to vector<1x128xf32>
    %c0_146 = arith.constant 0 : index
    %c0_147 = arith.constant 0 : index
    %c0_148 = arith.constant 0 : index
    %156 = vector.load %arg17[%c0_146, %c0_147, %c0_148] : memref<2x16x128xf32, #tpu.memory_space<vmem>>, vector<1x16x128xf32>
    %157 = vector.shape_cast %156 : vector<1x16x128xf32> to vector<16x128xf32>
    %158 = vector.broadcast %150 : vector<1x128xf32> to vector<16x128xf32>
    %159 = arith.mulf %157, %158 : vector<16x128xf32>
    %160 = vector.broadcast %153 : vector<1x128xf32> to vector<16x128xf32>
    %161 = arith.addf %159, %160 : vector<16x128xf32>
    %cst_149 = arith.constant 0.000000e+00 : f32
    %162 = vector.broadcast %cst_149 : f32 to vector<16x128xf32>
    %163 = arith.maximumf %161, %162 : vector<16x128xf32>
    %164 = arith.truncf %163 : vector<16x128xf32> to vector<16x128xbf16>
    %c1_150 = arith.constant 1 : index
    %c8_151 = arith.constant 8 : index
    %165 = vector.load %arg16[%c1_150, %c8_151] : memref<18x144xbf16, #tpu.memory_space<vmem>>, vector<16x128xbf16>
    tpu.vector_store %arg16[%c1_150, %c8_151], %164 {strides = array<i32>} : memref<18x144xbf16, #tpu.memory_space<vmem>>, vector<16x128xbf16>,
    %cst_152 = arith.constant 0.000000e+00 : f32
    %166 = vector.broadcast %cst_152 : f32 to vector<16x128xf32>
    %c0_153 = arith.constant 0 : index
    %c0_154 = arith.constant 0 : index
    %167 = vector.load %arg16[%c0_153, %c0_154] : memref<18x144xbf16, #tpu.memory_space<vmem>>, vector<16x128xbf16>
    %c0_155 = arith.constant 0 : index
    %c0_156 = arith.constant 0 : index
    %c0_157 = arith.constant 0 : index
    %168 = vector.load %arg3[%c0_155, %c0_156, %c0_157] : memref<9x128x128xbf16, #tpu.memory_space<vmem>>, vector<1x128x128xbf16>
    %169 = vector.shape_cast %168 : vector<1x128x128xbf16> to vector<128x128xbf16>
    %cst_158 = arith.constant dense<0.000000e+00> : vector<16x128xf32>
    %170 = tpu.matmul %167, %169, %cst_158 {dimension_numbers = #tpu.dot_dimension_numbers<[1], [0], [0], [1], [0, 0, 1, 1], [], []>} : vector<16x128xbf16>, vector<128x128xbf16>, vector<16x128xf32> -> vector<16x128xf32>
    %171 = arith.addf %166, %170 : vector<16x128xf32>
    %c0_159 = arith.constant 0 : index
    %c8_160 = arith.constant 8 : index
    %172 = vector.load %arg16[%c0_159, %c8_160] : memref<18x144xbf16, #tpu.memory_space<vmem>>, vector<16x128xbf16>
    %c1_161 = arith.constant 1 : index
    %c0_162 = arith.constant 0 : index
    %c0_163 = arith.constant 0 : index
    %173 = vector.load %arg3[%c1_161, %c0_162, %c0_163] : memref<9x128x128xbf16, #tpu.memory_space<vmem>>, vector<1x128x128xbf16>
    %174 = vector.shape_cast %173 : vector<1x128x128xbf16> to vector<128x128xbf16>
    %cst_164 = arith.constant dense<0.000000e+00> : vector<16x128xf32>
    %175 = tpu.matmul %172, %174, %cst_164 {dimension_numbers = #tpu.dot_dimension_numbers<[1], [0], [0], [1], [0, 0, 1, 1], [], []>} : vector<16x128xbf16>, vector<128x128xbf16>, vector<16x128xf32> -> vector<16x128xf32>
    %176 = arith.addf %171, %175 : vector<16x128xf32>
    %c0_165 = arith.constant 0 : index
    %c16 = arith.constant 16 : index
    %177 = vector.load %arg16[%c0_165, %c16] : memref<18x144xbf16, #tpu.memory_space<vmem>>, vector<16x128xbf16>
    %c2_166 = arith.constant 2 : index
    %c0_167 = arith.constant 0 : index
    %c0_168 = arith.constant 0 : index
    %178 = vector.load %arg3[%c2_166, %c0_167, %c0_168] : memref<9x128x128xbf16, #tpu.memory_space<vmem>>, vector<1x128x128xbf16>
    %179 = vector.shape_cast %178 : vector<1x128x128xbf16> to vector<128x128xbf16>
    %cst_169 = arith.constant dense<0.000000e+00> : vector<16x128xf32>
    %180 = tpu.matmul %177, %179, %cst_169 {dimension_numbers = #tpu.dot_dimension_numbers<[1], [0], [0], [1], [0, 0, 1, 1], [], []>} : vector<16x128xbf16>, vector<128x128xbf16>, vector<16x128xf32> -> vector<16x128xf32>
    %181 = arith.addf %176, %180 : vector<16x128xf32>
    %c1_170 = arith.constant 1 : index
    %c0_171 = arith.constant 0 : index
    %182 = vector.load %arg16[%c1_170, %c0_171] : memref<18x144xbf16, #tpu.memory_space<vmem>>, vector<16x128xbf16>
    %c3_172 = arith.constant 3 : index
    %c0_173 = arith.constant 0 : index
    %c0_174 = arith.constant 0 : index
    %183 = vector.load %arg3[%c3_172, %c0_173, %c0_174] : memref<9x128x128xbf16, #tpu.memory_space<vmem>>, vector<1x128x128xbf16>
    %184 = vector.shape_cast %183 : vector<1x128x128xbf16> to vector<128x128xbf16>
    %cst_175 = arith.constant dense<0.000000e+00> : vector<16x128xf32>
    %185 = tpu.matmul %182, %184, %cst_175 {dimension_numbers = #tpu.dot_dimension_numbers<[1], [0], [0], [1], [0, 0, 1, 1], [], []>} : vector<16x128xbf16>, vector<128x128xbf16>, vector<16x128xf32> -> vector<16x128xf32>
    %186 = arith.addf %181, %185 : vector<16x128xf32>
    %c1_176 = arith.constant 1 : index
    %c8_177 = arith.constant 8 : index
    %187 = vector.load %arg16[%c1_176, %c8_177] : memref<18x144xbf16, #tpu.memory_space<vmem>>, vector<16x128xbf16>
    %c4_178 = arith.constant 4 : index
    %c0_179 = arith.constant 0 : index
    %c0_180 = arith.constant 0 : index
    %188 = vector.load %arg3[%c4_178, %c0_179, %c0_180] : memref<9x128x128xbf16, #tpu.memory_space<vmem>>, vector<1x128x128xbf16>
    %189 = vector.shape_cast %188 : vector<1x128x128xbf16> to vector<128x128xbf16>
    %cst_181 = arith.constant dense<0.000000e+00> : vector<16x128xf32>
    %190 = tpu.matmul %187, %189, %cst_181 {dimension_numbers = #tpu.dot_dimension_numbers<[1], [0], [0], [1], [0, 0, 1, 1], [], []>} : vector<16x128xbf16>, vector<128x128xbf16>, vector<16x128xf32> -> vector<16x128xf32>
    %191 = arith.addf %186, %190 : vector<16x128xf32>
    %c1_182 = arith.constant 1 : index
    %c16_183 = arith.constant 16 : index
    %192 = vector.load %arg16[%c1_182, %c16_183] : memref<18x144xbf16, #tpu.memory_space<vmem>>, vector<16x128xbf16>
    %c5_184 = arith.constant 5 : index
    %c0_185 = arith.constant 0 : index
    %c0_186 = arith.constant 0 : index
    %193 = vector.load %arg3[%c5_184, %c0_185, %c0_186] : memref<9x128x128xbf16, #tpu.memory_space<vmem>>, vector<1x128x128xbf16>
    %194 = vector.shape_cast %193 : vector<1x128x128xbf16> to vector<128x128xbf16>
    %cst_187 = arith.constant dense<0.000000e+00> : vector<16x128xf32>
    %195 = tpu.matmul %192, %194, %cst_187 {dimension_numbers = #tpu.dot_dimension_numbers<[1], [0], [0], [1], [0, 0, 1, 1], [], []>} : vector<16x128xbf16>, vector<128x128xbf16>, vector<16x128xf32> -> vector<16x128xf32>
    %196 = arith.addf %191, %195 : vector<16x128xf32>
    %c2_188 = arith.constant 2 : index
    %c0_189 = arith.constant 0 : index
    %197 = vector.load %arg16[%c2_188, %c0_189] : memref<18x144xbf16, #tpu.memory_space<vmem>>, vector<16x128xbf16>
    %c6_190 = arith.constant 6 : index
    %c0_191 = arith.constant 0 : index
    %c0_192 = arith.constant 0 : index
    %198 = vector.load %arg3[%c6_190, %c0_191, %c0_192] : memref<9x128x128xbf16, #tpu.memory_space<vmem>>, vector<1x128x128xbf16>
    %199 = vector.shape_cast %198 : vector<1x128x128xbf16> to vector<128x128xbf16>
    %cst_193 = arith.constant dense<0.000000e+00> : vector<16x128xf32>
    %200 = tpu.matmul %197, %199, %cst_193 {dimension_numbers = #tpu.dot_dimension_numbers<[1], [0], [0], [1], [0, 0, 1, 1], [], []>} : vector<16x128xbf16>, vector<128x128xbf16>, vector<16x128xf32> -> vector<16x128xf32>
    %201 = arith.addf %196, %200 : vector<16x128xf32>
    %c2_194 = arith.constant 2 : index
    %c8_195 = arith.constant 8 : index
    %202 = vector.load %arg16[%c2_194, %c8_195] : memref<18x144xbf16, #tpu.memory_space<vmem>>, vector<16x128xbf16>
    %c7_196 = arith.constant 7 : index
    %c0_197 = arith.constant 0 : index
    %c0_198 = arith.constant 0 : index
    %203 = vector.load %arg3[%c7_196, %c0_197, %c0_198] : memref<9x128x128xbf16, #tpu.memory_space<vmem>>, vector<1x128x128xbf16>
    %204 = vector.shape_cast %203 : vector<1x128x128xbf16> to vector<128x128xbf16>
    %cst_199 = arith.constant dense<0.000000e+00> : vector<16x128xf32>
    %205 = tpu.matmul %202, %204, %cst_199 {dimension_numbers = #tpu.dot_dimension_numbers<[1], [0], [0], [1], [0, 0, 1, 1], [], []>} : vector<16x128xbf16>, vector<128x128xbf16>, vector<16x128xf32> -> vector<16x128xf32>
    %206 = arith.addf %201, %205 : vector<16x128xf32>
    %c2_200 = arith.constant 2 : index
    %c16_201 = arith.constant 16 : index
    %207 = vector.load %arg16[%c2_200, %c16_201] : memref<18x144xbf16, #tpu.memory_space<vmem>>, vector<16x128xbf16>
    %c8_202 = arith.constant 8 : index
    %c0_203 = arith.constant 0 : index
    %c0_204 = arith.constant 0 : index
    %208 = vector.load %arg3[%c8_202, %c0_203, %c0_204] : memref<9x128x128xbf16, #tpu.memory_space<vmem>>, vector<1x128x128xbf16>
    %209 = vector.shape_cast %208 : vector<1x128x128xbf16> to vector<128x128xbf16>
    %cst_205 = arith.constant dense<0.000000e+00> : vector<16x128xf32>
    %210 = tpu.matmul %207, %209, %cst_205 {dimension_numbers = #tpu.dot_dimension_numbers<[1], [0], [0], [1], [0, 0, 1, 1], [], []>} : vector<16x128xbf16>, vector<128x128xbf16>, vector<16x128xf32> -> vector<16x128xf32>
    %211 = arith.addf %206, %210 : vector<16x128xf32>
    %c0_206 = arith.constant 0 : index
    %c0_207 = arith.constant 0 : index
    %c0_208 = arith.constant 0 : index
    %212 = vector.load %arg18[%c0_206, %c0_207, %c0_208] : memref<2x16x128xf32, #tpu.memory_space<vmem>>, vector<1x16x128xf32>
    %213 = vector.shape_cast %212 : vector<1x16x128xf32> to vector<16x128xf32>
    %214 = vector.shape_cast %211 : vector<16x128xf32> to vector<1x16x128xf32>
    tpu.vector_store %arg18[%c0_206, %c0_207, %c0_208], %214 {strides = array<i32>} : memref<2x16x128xf32, #tpu.memory_space<vmem>>, vector<1x16x128xf32>,
    %cst_209 = arith.constant dense<0.000000e+00> : vector<128xf32>
    %215 = vector.multi_reduction <add>, %211, %cst_209 [0] : vector<16x128xf32> to vector<128xf32>
    %216 = vector.shape_cast %215 : vector<128xf32> to vector<1x128xf32>
    %217 = arith.addf %154, %216 : vector<1x128xf32>
    %218 = arith.mulf %211, %211 : vector<16x128xf32>
    %cst_210 = arith.constant dense<0.000000e+00> : vector<128xf32>
    %219 = vector.multi_reduction <add>, %218, %cst_210 [0] : vector<16x128xf32> to vector<128xf32>
    %220 = vector.shape_cast %219 : vector<128xf32> to vector<1x128xf32>
    %221 = arith.addf %155, %220 : vector<1x128xf32>
    %c1_211 = arith.constant 1 : index
    %c0_212 = arith.constant 0 : index
    %c0_213 = arith.constant 0 : index
    %222 = vector.load %arg17[%c1_211, %c0_212, %c0_213] : memref<2x16x128xf32, #tpu.memory_space<vmem>>, vector<1x16x128xf32>
    %223 = vector.shape_cast %222 : vector<1x16x128xf32> to vector<16x128xf32>
    %224 = vector.broadcast %150 : vector<1x128xf32> to vector<16x128xf32>
    %225 = arith.mulf %223, %224 : vector<16x128xf32>
    %226 = vector.broadcast %153 : vector<1x128xf32> to vector<16x128xf32>
    %227 = arith.addf %225, %226 : vector<16x128xf32>
    %cst_214 = arith.constant 0.000000e+00 : f32
    %228 = vector.broadcast %cst_214 : f32 to vector<16x128xf32>
    %229 = arith.maximumf %227, %228 : vector<16x128xf32>
    %230 = arith.truncf %229 : vector<16x128xf32> to vector<16x128xbf16>
    %c1_215 = arith.constant 1 : index
    %c8_216 = arith.constant 8 : index
    %231 = vector.load %arg16[%c1_215, %c8_216] : memref<18x144xbf16, #tpu.memory_space<vmem>>, vector<16x128xbf16>
    tpu.vector_store %arg16[%c1_215, %c8_216], %230 {strides = array<i32>} : memref<18x144xbf16, #tpu.memory_space<vmem>>, vector<16x128xbf16>,
    %cst_217 = arith.constant 0.000000e+00 : f32
    %232 = vector.broadcast %cst_217 : f32 to vector<16x128xf32>
    %c0_218 = arith.constant 0 : index
    %c0_219 = arith.constant 0 : index
    %233 = vector.load %arg16[%c0_218, %c0_219] : memref<18x144xbf16, #tpu.memory_space<vmem>>, vector<16x128xbf16>
    %c0_220 = arith.constant 0 : index
    %c0_221 = arith.constant 0 : index
    %c0_222 = arith.constant 0 : index
    %234 = vector.load %arg3[%c0_220, %c0_221, %c0_222] : memref<9x128x128xbf16, #tpu.memory_space<vmem>>, vector<1x128x128xbf16>
    %235 = vector.shape_cast %234 : vector<1x128x128xbf16> to vector<128x128xbf16>
    %cst_223 = arith.constant dense<0.000000e+00> : vector<16x128xf32>
    %236 = tpu.matmul %233, %235, %cst_223 {dimension_numbers = #tpu.dot_dimension_numbers<[1], [0], [0], [1], [0, 0, 1, 1], [], []>} : vector<16x128xbf16>, vector<128x128xbf16>, vector<16x128xf32> -> vector<16x128xf32>
    %237 = arith.addf %232, %236 : vector<16x128xf32>
    %c0_224 = arith.constant 0 : index
    %c8_225 = arith.constant 8 : index
    %238 = vector.load %arg16[%c0_224, %c8_225] : memref<18x144xbf16, #tpu.memory_space<vmem>>, vector<16x128xbf16>
    %c1_226 = arith.constant 1 : index
    %c0_227 = arith.constant 0 : index
    %c0_228 = arith.constant 0 : index
    %239 = vector.load %arg3[%c1_226, %c0_227, %c0_228] : memref<9x128x128xbf16, #tpu.memory_space<vmem>>, vector<1x128x128xbf16>
    %240 = vector.shape_cast %239 : vector<1x128x128xbf16> to vector<128x128xbf16>
    %cst_229 = arith.constant dense<0.000000e+00> : vector<16x128xf32>
    %241 = tpu.matmul %238, %240, %cst_229 {dimension_numbers = #tpu.dot_dimension_numbers<[1], [0], [0], [1], [0, 0, 1, 1], [], []>} : vector<16x128xbf16>, vector<128x128xbf16>, vector<16x128xf32> -> vector<16x128xf32>
    %242 = arith.addf %237, %241 : vector<16x128xf32>
    %c0_230 = arith.constant 0 : index
    %c16_231 = arith.constant 16 : index
    %243 = vector.load %arg16[%c0_230, %c16_231] : memref<18x144xbf16, #tpu.memory_space<vmem>>, vector<16x128xbf16>
    %c2_232 = arith.constant 2 : index
    %c0_233 = arith.constant 0 : index
    %c0_234 = arith.constant 0 : index
    %244 = vector.load %arg3[%c2_232, %c0_233, %c0_234] : memref<9x128x128xbf16, #tpu.memory_space<vmem>>, vector<1x128x128xbf16>
    %245 = vector.shape_cast %244 : vector<1x128x128xbf16> to vector<128x128xbf16>
    %cst_235 = arith.constant dense<0.000000e+00> : vector<16x128xf32>
    %246 = tpu.matmul %243, %245, %cst_235 {dimension_numbers = #tpu.dot_dimension_numbers<[1], [0], [0], [1], [0, 0, 1, 1], [], []>} : vector<16x128xbf16>, vector<128x128xbf16>, vector<16x128xf32> -> vector<16x128xf32>
    %247 = arith.addf %242, %246 : vector<16x128xf32>
    %c1_236 = arith.constant 1 : index
    %c0_237 = arith.constant 0 : index
    %248 = vector.load %arg16[%c1_236, %c0_237] : memref<18x144xbf16, #tpu.memory_space<vmem>>, vector<16x128xbf16>
    %c3_238 = arith.constant 3 : index
    %c0_239 = arith.constant 0 : index
    %c0_240 = arith.constant 0 : index
    %249 = vector.load %arg3[%c3_238, %c0_239, %c0_240] : memref<9x128x128xbf16, #tpu.memory_space<vmem>>, vector<1x128x128xbf16>
    %250 = vector.shape_cast %249 : vector<1x128x128xbf16> to vector<128x128xbf16>
    %cst_241 = arith.constant dense<0.000000e+00> : vector<16x128xf32>
    %251 = tpu.matmul %248, %250, %cst_241 {dimension_numbers = #tpu.dot_dimension_numbers<[1], [0], [0], [1], [0, 0, 1, 1], [], []>} : vector<16x128xbf16>, vector<128x128xbf16>, vector<16x128xf32> -> vector<16x128xf32>
    %252 = arith.addf %247, %251 : vector<16x128xf32>
    %c1_242 = arith.constant 1 : index
    %c8_243 = arith.constant 8 : index
    %253 = vector.load %arg16[%c1_242, %c8_243] : memref<18x144xbf16, #tpu.memory_space<vmem>>, vector<16x128xbf16>
    %c4_244 = arith.constant 4 : index
    %c0_245 = arith.constant 0 : index
    %c0_246 = arith.constant 0 : index
    %254 = vector.load %arg3[%c4_244, %c0_245, %c0_246] : memref<9x128x128xbf16, #tpu.memory_space<vmem>>, vector<1x128x128xbf16>
    %255 = vector.shape_cast %254 : vector<1x128x128xbf16> to vector<128x128xbf16>
    %cst_247 = arith.constant dense<0.000000e+00> : vector<16x128xf32>
    %256 = tpu.matmul %253, %255, %cst_247 {dimension_numbers = #tpu.dot_dimension_numbers<[1], [0], [0], [1], [0, 0, 1, 1], [], []>} : vector<16x128xbf16>, vector<128x128xbf16>, vector<16x128xf32> -> vector<16x128xf32>
    %257 = arith.addf %252, %256 : vector<16x128xf32>
    %c1_248 = arith.constant 1 : index
    %c16_249 = arith.constant 16 : index
    %258 = vector.load %arg16[%c1_248, %c16_249] : memref<18x144xbf16, #tpu.memory_space<vmem>>, vector<16x128xbf16>
    %c5_250 = arith.constant 5 : index
    %c0_251 = arith.constant 0 : index
    %c0_252 = arith.constant 0 : index
    %259 = vector.load %arg3[%c5_250, %c0_251, %c0_252] : memref<9x128x128xbf16, #tpu.memory_space<vmem>>, vector<1x128x128xbf16>
    %260 = vector.shape_cast %259 : vector<1x128x128xbf16> to vector<128x128xbf16>
    %cst_253 = arith.constant dense<0.000000e+00> : vector<16x128xf32>
    %261 = tpu.matmul %258, %260, %cst_253 {dimension_numbers = #tpu.dot_dimension_numbers<[1], [0], [0], [1], [0, 0, 1, 1], [], []>} : vector<16x128xbf16>, vector<128x128xbf16>, vector<16x128xf32> -> vector<16x128xf32>
    %262 = arith.addf %257, %261 : vector<16x128xf32>
    %c2_254 = arith.constant 2 : index
    %c0_255 = arith.constant 0 : index
    %263 = vector.load %arg16[%c2_254, %c0_255] : memref<18x144xbf16, #tpu.memory_space<vmem>>, vector<16x128xbf16>
    %c6_256 = arith.constant 6 : index
    %c0_257 = arith.constant 0 : index
    %c0_258 = arith.constant 0 : index
    %264 = vector.load %arg3[%c6_256, %c0_257, %c0_258] : memref<9x128x128xbf16, #tpu.memory_space<vmem>>, vector<1x128x128xbf16>
    %265 = vector.shape_cast %264 : vector<1x128x128xbf16> to vector<128x128xbf16>
    %cst_259 = arith.constant dense<0.000000e+00> : vector<16x128xf32>
    %266 = tpu.matmul %263, %265, %cst_259 {dimension_numbers = #tpu.dot_dimension_numbers<[1], [0], [0], [1], [0, 0, 1, 1], [], []>} : vector<16x128xbf16>, vector<128x128xbf16>, vector<16x128xf32> -> vector<16x128xf32>
    %267 = arith.addf %262, %266 : vector<16x128xf32>
    %c2_260 = arith.constant 2 : index
    %c8_261 = arith.constant 8 : index
    %268 = vector.load %arg16[%c2_260, %c8_261] : memref<18x144xbf16, #tpu.memory_space<vmem>>, vector<16x128xbf16>
    %c7_262 = arith.constant 7 : index
    %c0_263 = arith.constant 0 : index
    %c0_264 = arith.constant 0 : index
    %269 = vector.load %arg3[%c7_262, %c0_263, %c0_264] : memref<9x128x128xbf16, #tpu.memory_space<vmem>>, vector<1x128x128xbf16>
    %270 = vector.shape_cast %269 : vector<1x128x128xbf16> to vector<128x128xbf16>
    %cst_265 = arith.constant dense<0.000000e+00> : vector<16x128xf32>
    %271 = tpu.matmul %268, %270, %cst_265 {dimension_numbers = #tpu.dot_dimension_numbers<[1], [0], [0], [1], [0, 0, 1, 1], [], []>} : vector<16x128xbf16>, vector<128x128xbf16>, vector<16x128xf32> -> vector<16x128xf32>
    %272 = arith.addf %267, %271 : vector<16x128xf32>
    %c2_266 = arith.constant 2 : index
    %c16_267 = arith.constant 16 : index
    %273 = vector.load %arg16[%c2_266, %c16_267] : memref<18x144xbf16, #tpu.memory_space<vmem>>, vector<16x128xbf16>
    %c8_268 = arith.constant 8 : index
    %c0_269 = arith.constant 0 : index
    %c0_270 = arith.constant 0 : index
    %274 = vector.load %arg3[%c8_268, %c0_269, %c0_270] : memref<9x128x128xbf16, #tpu.memory_space<vmem>>, vector<1x128x128xbf16>
    %275 = vector.shape_cast %274 : vector<1x128x128xbf16> to vector<128x128xbf16>
    %cst_271 = arith.constant dense<0.000000e+00> : vector<16x128xf32>
    %276 = tpu.matmul %273, %275, %cst_271 {dimension_numbers = #tpu.dot_dimension_numbers<[1], [0], [0], [1], [0, 0, 1, 1], [], []>} : vector<16x128xbf16>, vector<128x128xbf16>, vector<16x128xf32> -> vector<16x128xf32>
    %277 = arith.addf %272, %276 : vector<16x128xf32>
    %c1_272 = arith.constant 1 : index
    %c0_273 = arith.constant 0 : index
    %c0_274 = arith.constant 0 : index
    %278 = vector.load %arg18[%c1_272, %c0_273, %c0_274] : memref<2x16x128xf32, #tpu.memory_space<vmem>>, vector<1x16x128xf32>
    %279 = vector.shape_cast %278 : vector<1x16x128xf32> to vector<16x128xf32>
    %280 = vector.shape_cast %277 : vector<16x128xf32> to vector<1x16x128xf32>
    tpu.vector_store %arg18[%c1_272, %c0_273, %c0_274], %280 {strides = array<i32>} : memref<2x16x128xf32, #tpu.memory_space<vmem>>, vector<1x16x128xf32>,
    %cst_275 = arith.constant dense<0.000000e+00> : vector<128xf32>
    %281 = vector.multi_reduction <add>, %277, %cst_275 [0] : vector<16x128xf32> to vector<128xf32>
    %282 = vector.shape_cast %281 : vector<128xf32> to vector<1x128xf32>
    %283 = arith.addf %217, %282 : vector<1x128xf32>
    %284 = arith.mulf %277, %277 : vector<16x128xf32>
    %cst_276 = arith.constant dense<0.000000e+00> : vector<128xf32>
    %285 = vector.multi_reduction <add>, %284, %cst_276 [0] : vector<16x128xf32> to vector<128xf32>
    %286 = vector.shape_cast %285 : vector<128xf32> to vector<1x128xf32>
    %287 = arith.addf %221, %286 : vector<1x128xf32>
    %c0_277 = arith.constant 0 : index
    %c0_278 = arith.constant 0 : index
    %288 = vector.load %arg8[%c0_277, %c0_278] : memref<128x128xf32, #tpu.memory_space<vmem>>, vector<128x128xf32>
    %cst_279 = arith.constant dense<0.000000e+00> : vector<1x128xf32>
    %289 = tpu.matmul %283, %288, %cst_279 {dimension_numbers = #tpu.dot_dimension_numbers<[1], [0], [0], [1], [0, 0, 1, 1], [], []>} : vector<1x128xf32>, vector<128x128xf32>, vector<1x128xf32> -> vector<1x128xf32>
    %c0_280 = arith.constant 0 : index
    %c0_281 = arith.constant 0 : index
    %290 = vector.load %arg8[%c0_280, %c0_281] : memref<128x128xf32, #tpu.memory_space<vmem>>, vector<128x128xf32>
    %cst_282 = arith.constant dense<0.000000e+00> : vector<1x128xf32>
    %291 = tpu.matmul %287, %290, %cst_282 {dimension_numbers = #tpu.dot_dimension_numbers<[1], [0], [0], [1], [0, 0, 1, 1], [], []>} : vector<1x128xf32>, vector<128x128xf32>, vector<1x128xf32> -> vector<1x128xf32>
    %cst_283 = arith.constant 5.120000e+02 : f32
    %292 = vector.broadcast %cst_283 : f32 to vector<1x128xf32>
    %293 = arith.divf %289, %292 : vector<1x128xf32>
    %cst_284 = arith.constant 5.120000e+02 : f32
    %294 = vector.broadcast %cst_284 : f32 to vector<1x128xf32>
    %295 = arith.divf %291, %294 : vector<1x128xf32>
    %296 = arith.mulf %293, %293 : vector<1x128xf32>
    %297 = arith.subf %295, %296 : vector<1x128xf32>
    %cst_285 = arith.constant 0.000000e+00 : f32
    %298 = vector.broadcast %cst_285 : f32 to vector<1x128xf32>
    %299 = arith.maximumf %297, %298 : vector<1x128xf32>
    %c0_286 = arith.constant 0 : index
    %c0_287 = arith.constant 0 : index
    %300 = vector.load %arg6[%c0_286, %c0_287] : memref<1x128xf32, #tpu.memory_space<vmem>>, vector<1x128xf32>
    %cst_288 = arith.constant 9.99999974E-6 : f32
    %301 = vector.broadcast %cst_288 : f32 to vector<1x128xf32>
    %302 = arith.addf %299, %301 : vector<1x128xf32>
    %303 = math.rsqrt %302 : vector<1x128xf32>
    %304 = arith.mulf %300, %303 : vector<1x128xf32>
    %c0_289 = arith.constant 0 : index
    %c0_290 = arith.constant 0 : index
    %305 = vector.load %arg7[%c0_289, %c0_290] : memref<1x128xf32, #tpu.memory_space<vmem>>, vector<1x128xf32>
    %306 = arith.mulf %293, %304 : vector<1x128xf32>
    %307 = arith.subf %305, %306 : vector<1x128xf32>
    %c0_291 = arith.constant 0 : index
    %c0_292 = arith.constant 0 : index
    %c0_293 = arith.constant 0 : index
    %308 = vector.load %arg18[%c0_291, %c0_292, %c0_293] : memref<2x16x128xf32, #tpu.memory_space<vmem>>, vector<1x16x128xf32>
    %309 = vector.shape_cast %308 : vector<1x16x128xf32> to vector<16x128xf32>
    %310 = vector.broadcast %304 : vector<1x128xf32> to vector<16x128xf32>
    %311 = arith.mulf %309, %310 : vector<16x128xf32>
    %312 = vector.broadcast %307 : vector<1x128xf32> to vector<16x128xf32>
    %313 = arith.addf %311, %312 : vector<16x128xf32>
    %cst_294 = arith.constant 0.000000e+00 : f32
    %314 = vector.broadcast %cst_294 : f32 to vector<16x128xf32>
    %315 = arith.maximumf %313, %314 : vector<16x128xf32>
    %316 = arith.truncf %315 : vector<16x128xf32> to vector<16x128xbf16>
    %c0_295 = arith.constant 0 : index
    %c0_296 = arith.constant 0 : index
    %c0_297 = arith.constant 0 : index
    %317 = vector.load %arg13[%c0_295, %c0_296, %c0_297] : memref<2x16x128xbf16, #tpu.memory_space<vmem>>, vector<1x16x128xbf16>
    %318 = vector.shape_cast %317 : vector<1x16x128xbf16> to vector<16x128xbf16>
    %319 = vector.shape_cast %316 : vector<16x128xbf16> to vector<1x16x128xbf16>
    tpu.vector_store %arg13[%c0_295, %c0_296, %c0_297], %319 {strides = array<i32>} : memref<2x16x128xbf16, #tpu.memory_space<vmem>>, vector<1x16x128xbf16>,
    %c0_298 = arith.constant 0 : index
    %c0_299 = arith.constant 0 : index
    %320 = vector.load %arg9[%c0_298, %c0_299] : memref<8x16xbf16, #tpu.memory_space<vmem>>, vector<8x16xbf16>
    %cst_300 = arith.constant dense<0.000000e+00> : vector<8x128xf32>
    %321 = tpu.matmul %320, %316, %cst_300 {dimension_numbers = #tpu.dot_dimension_numbers<[1], [0], [0], [1], [0, 0, 1, 1], [], []>} : vector<8x16xbf16>, vector<16x128xbf16>, vector<8x128xf32> -> vector<8x128xf32>
    %c0_301 = arith.constant 0 : index
    %c0_302 = arith.constant 0 : index
    %322 = vector.load %arg10[%c0_301, %c0_302] : memref<8x16xbf16, #tpu.memory_space<vmem>>, vector<8x16xbf16>
    %cst_303 = arith.constant dense<0.000000e+00> : vector<8x128xf32>
    %323 = tpu.matmul %322, %316, %cst_303 {dimension_numbers = #tpu.dot_dimension_numbers<[1], [0], [0], [1], [0, 0, 1, 1], [], []>} : vector<8x16xbf16>, vector<16x128xbf16>, vector<8x128xf32> -> vector<8x128xf32>
    %324 = arith.maximumf %321, %323 : vector<8x128xf32>
    %325 = arith.truncf %324 : vector<8x128xf32> to vector<8x128xbf16>
    %c0_304 = arith.constant 0 : index
    %c0_305 = arith.constant 0 : index
    %326 = vector.load %arg11[%c0_304, %c0_305] : memref<128x64xbf16, #tpu.memory_space<vmem>>, vector<128x64xbf16>
    %cst_306 = arith.constant dense<0.000000e+00> : vector<8x64xf32>
    %327 = tpu.matmul %325, %326, %cst_306 {dimension_numbers = #tpu.dot_dimension_numbers<[1], [0], [0], [1], [0, 0, 1, 1], [], []>} : vector<8x128xbf16>, vector<128x64xbf16>, vector<8x64xf32> -> vector<8x64xf32>
    %c0_307 = arith.constant 0 : index
    %c0_308 = arith.constant 0 : index
    %328 = vector.load %arg12[%c0_307, %c0_308] : memref<128x64xbf16, #tpu.memory_space<vmem>>, vector<128x64xbf16>
    %cst_309 = arith.constant dense<0.000000e+00> : vector<8x64xf32>
    %329 = tpu.matmul %325, %328, %cst_309 {dimension_numbers = #tpu.dot_dimension_numbers<[1], [0], [0], [1], [0, 0, 1, 1], [], []>} : vector<8x128xbf16>, vector<128x64xbf16>, vector<8x64xf32> -> vector<8x64xf32>
    %330 = arith.maximumf %327, %329 : vector<8x64xf32>
    %331 = arith.truncf %330 : vector<8x64xf32> to vector<8x64xbf16>
    %c0_310 = arith.constant 0 : index
    %c0_311 = arith.constant 0 : index
    %c0_312 = arith.constant 0 : index
    %332 = vector.load %arg14[%c0_310, %c0_311, %c0_312] : memref<2x8x64xbf16, #tpu.memory_space<vmem>>, vector<1x8x64xbf16>
    %333 = vector.shape_cast %332 : vector<1x8x64xbf16> to vector<8x64xbf16>
    %334 = vector.shape_cast %331 : vector<8x64xbf16> to vector<1x8x64xbf16>
    tpu.vector_store %arg14[%c0_310, %c0_311, %c0_312], %334 {strides = array<i32>} : memref<2x8x64xbf16, #tpu.memory_space<vmem>>, vector<1x8x64xbf16>,
    %c1_313 = arith.constant 1 : index
    %c0_314 = arith.constant 0 : index
    %c0_315 = arith.constant 0 : index
    %335 = vector.load %arg18[%c1_313, %c0_314, %c0_315] : memref<2x16x128xf32, #tpu.memory_space<vmem>>, vector<1x16x128xf32>
    %336 = vector.shape_cast %335 : vector<1x16x128xf32> to vector<16x128xf32>
    %337 = vector.broadcast %304 : vector<1x128xf32> to vector<16x128xf32>
    %338 = arith.mulf %336, %337 : vector<16x128xf32>
    %339 = vector.broadcast %307 : vector<1x128xf32> to vector<16x128xf32>
    %340 = arith.addf %338, %339 : vector<16x128xf32>
    %cst_316 = arith.constant 0.000000e+00 : f32
    %341 = vector.broadcast %cst_316 : f32 to vector<16x128xf32>
    %342 = arith.maximumf %340, %341 : vector<16x128xf32>
    %343 = arith.truncf %342 : vector<16x128xf32> to vector<16x128xbf16>
    %c1_317 = arith.constant 1 : index
    %c0_318 = arith.constant 0 : index
    %c0_319 = arith.constant 0 : index
    %344 = vector.load %arg13[%c1_317, %c0_318, %c0_319] : memref<2x16x128xbf16, #tpu.memory_space<vmem>>, vector<1x16x128xbf16>
    %345 = vector.shape_cast %344 : vector<1x16x128xbf16> to vector<16x128xbf16>
    %346 = vector.shape_cast %343 : vector<16x128xbf16> to vector<1x16x128xbf16>
    tpu.vector_store %arg13[%c1_317, %c0_318, %c0_319], %346 {strides = array<i32>} : memref<2x16x128xbf16, #tpu.memory_space<vmem>>, vector<1x16x128xbf16>,
    %c0_320 = arith.constant 0 : index
    %c0_321 = arith.constant 0 : index
    %347 = vector.load %arg9[%c0_320, %c0_321] : memref<8x16xbf16, #tpu.memory_space<vmem>>, vector<8x16xbf16>
    %cst_322 = arith.constant dense<0.000000e+00> : vector<8x128xf32>
    %348 = tpu.matmul %347, %343, %cst_322 {dimension_numbers = #tpu.dot_dimension_numbers<[1], [0], [0], [1], [0, 0, 1, 1], [], []>} : vector<8x16xbf16>, vector<16x128xbf16>, vector<8x128xf32> -> vector<8x128xf32>
    %c0_323 = arith.constant 0 : index
    %c0_324 = arith.constant 0 : index
    %349 = vector.load %arg10[%c0_323, %c0_324] : memref<8x16xbf16, #tpu.memory_space<vmem>>, vector<8x16xbf16>
    %cst_325 = arith.constant dense<0.000000e+00> : vector<8x128xf32>
    %350 = tpu.matmul %349, %343, %cst_325 {dimension_numbers = #tpu.dot_dimension_numbers<[1], [0], [0], [1], [0, 0, 1, 1], [], []>} : vector<8x16xbf16>, vector<16x128xbf16>, vector<8x128xf32> -> vector<8x128xf32>
    %351 = arith.maximumf %348, %350 : vector<8x128xf32>
    %352 = arith.truncf %351 : vector<8x128xf32> to vector<8x128xbf16>
    %c0_326 = arith.constant 0 : index
    %c0_327 = arith.constant 0 : index
    %353 = vector.load %arg11[%c0_326, %c0_327] : memref<128x64xbf16, #tpu.memory_space<vmem>>, vector<128x64xbf16>
    %cst_328 = arith.constant dense<0.000000e+00> : vector<8x64xf32>
    %354 = tpu.matmul %352, %353, %cst_328 {dimension_numbers = #tpu.dot_dimension_numbers<[1], [0], [0], [1], [0, 0, 1, 1], [], []>} : vector<8x128xbf16>, vector<128x64xbf16>, vector<8x64xf32> -> vector<8x64xf32>
    %c0_329 = arith.constant 0 : index
    %c0_330 = arith.constant 0 : index
    %355 = vector.load %arg12[%c0_329, %c0_330] : memref<128x64xbf16, #tpu.memory_space<vmem>>, vector<128x64xbf16>
    %cst_331 = arith.constant dense<0.000000e+00> : vector<8x64xf32>
    %356 = tpu.matmul %352, %355, %cst_331 {dimension_numbers = #tpu.dot_dimension_numbers<[1], [0], [0], [1], [0, 0, 1, 1], [], []>} : vector<8x128xbf16>, vector<128x64xbf16>, vector<8x64xf32> -> vector<8x64xf32>
    %357 = arith.maximumf %354, %356 : vector<8x64xf32>
    %358 = arith.truncf %357 : vector<8x64xf32> to vector<8x64xbf16>
    %c1_332 = arith.constant 1 : index
    %c0_333 = arith.constant 0 : index
    %c0_334 = arith.constant 0 : index
    %359 = vector.load %arg14[%c1_332, %c0_333, %c0_334] : memref<2x8x64xbf16, #tpu.memory_space<vmem>>, vector<1x8x64xbf16>
    %360 = vector.shape_cast %359 : vector<1x8x64xbf16> to vector<8x64xbf16>
    %361 = vector.shape_cast %358 : vector<8x64xbf16> to vector<1x8x64xbf16>
    tpu.vector_store %arg14[%c1_332, %c0_333, %c0_334], %361 {strides = array<i32>} : memref<2x8x64xbf16, #tpu.memory_space<vmem>>, vector<1x8x64xbf16>,
    return
  }
}

</mosaic_0001>

<bundles_post_ra>
// kernel: tpu_custom_call.1
= control target key start
LH: loop header
LB: loop body
LE: loop exit
PB: predicated region body
PF: predicated region fallthrough
CT: control target
= control target key end

     0   :  { %20 = vsyncpa [#allocation9], 0  ;;  %s5886_s0 = inlined_call_operand.vmem [shape: bf16[2,16,64], index: 0, kind: input, shape index: {}]   ;;  %s5887_s1 = inlined_call_operand.vmem [shape: f32[2], index: 1, kind: input, shape index: {}]   ;;  %s5888_s2 = inlined_call_operand.hbm [shape: bf16[9,64,128], index: 2, kind: input, shape index: {}]   ;;  %s5889_s3 = inlined_call_operand.hbm [shape: bf16[9,128,128], index: 3, kind: input, shape index: {}]   ;;  %s5890_s4 = inlined_call_operand.vmem [shape: f32[1,128], index: 4, kind: input, shape index: {}]   ;;  %s5891_s5 = inlined_call_operand.vmem [shape: f32[1,128], index: 5, kind: input, shape index: {}]   ;;  %s5892_s6 = inlined_call_operand.vmem [shape: f32[1,128], index: 6, kind: input, shape index: {}]   ;;  %s5893_s7 = inlined_call_operand.vmem [shape: f32[1,128], index: 7, kind: input, shape index: {}]   ;;  %s5894_s8 = inlined_call_operand.vmem [shape: f32[128,128], index: 8, kind: input, shape index: {}]   ;;  %s5895_s9 = inlined_call_operand.vmem [shape: bf16[8,16], index: 9, kind: input, shape index: {}]   ;;  %s5896_s10 = inlined_call_operand.vmem [shape: bf16[8,16], index: 10, kind: input, shape index: {}]   ;;  %s5897_s11 = inlined_call_operand.vmem [shape: bf16[128,64], index: 11, kind: input, shape index: {}]   ;;  %s5898_s12 = inlined_call_operand.vmem [shape: bf16[128,64], index: 12, kind: input, shape index: {}]   ;;  %s5899_s13 = inlined_call_operand.hbm [shape: bf16[2,16,128], index: 13, kind: output, shape index: {0}]   ;;  %s5900_s14 = inlined_call_operand.hbm [shape: bf16[2,8,64], index: 14, kind: output, shape index: {1}]  }
   0x1   :  { %21 = vsyncpa [#allocation7], 0 }
   0x2   :  { %22 = vsyncpa [#allocation12], 0 }
   0x3   :  { %23 = vsyncpa [#allocation8], 0 }
   0x4   :  { %24 = vsyncpa [#allocation15], 0  ;;  %s32_s15 = sshll.u32 %s5887_s1, 4  ;;  %s40_s18 = sshll.u32 %s5888_s2, 4  ;;  %s33_s15 = int_to_ptr.vmem [resolvable:$true] %s32_s15  ;;  %s41_s18 = int_to_ptr.hbm [resolvable:$true] %s40_s18 }
   0x5   :  { %s5250_s19 = smov [#allocation6]   ;;  %s5251_s20 = smov [#allocation10]  }
   0x6   :  { %35 = dma.vmem_to_smem %s33_s15, 16, %s5250_s19, [#allocation9]  }
   0x7   :  { %s42_s21 = sshll.u32 %s5251_s20, 4  ;;  %s5252_s22 = smov 64   ;;  %s43_s21 = int_to_ptr.vmem [resolvable:$true] %s42_s21 }
   0x8   :  { %s5253_s23 = smov 4   ;;  %s53_s1 = sshll.u32 %s5889_s3, 4  ;;  %s54_s1 = int_to_ptr.hbm [resolvable:$true] %s53_s1 }
   0x9   :  { %48 = dma.hbm_to_vmem [thread:$0]  %s41_s18, 4608, %s43_s21, [#allocation7], %s5252_s22, %s5252_s22, %s5253_s23  }
   0xa   :  { %s5254_s26 = smov [#allocation11]  }
   0xb   :  { %s55_s27 = sshll.u32 %s5254_s26, 4  ;;  %s56_s27 = int_to_ptr.vmem [resolvable:$true] %s55_s27 }
   0xc   :  { %61 = dma.hbm_to_vmem [thread:$0]  %s54_s1, 9216, %s56_s27, [#allocation12], %s5252_s22, %s5252_s22, %s5253_s23  }
   0xd   :  { %5240 = dma.done.wait [#allocation9], 16  }
   0xe   :  { %5241 = vsyncadd [#allocation9], 4294967280 }
   0xf   :  { %5242 = dma.done.wait [#allocation7], 4608  }
  0x10   :  { %5243 = vsyncadd [#allocation7], 4294962688 }
  0x11   :  { %5244 = dma.done.wait [#allocation12], 9216  }
  0x12   :  { %5245 = vsyncadd [#allocation12], 4294958080 }
  0x13   :  { %92 = sfence }
  0x14   :  { %s108_s2 = sld [smem:[#allocation6]]  ;;  %v5081_v0 = vld [vmem:[%s5886_s0] sm:$0xff]   ;;  %v5109_v1 = vld [vmem:[%s5886_s0 + $0x8] sm:$0xff]   ;;  %vm118_vm0 = vsmask.f32 256  ;;  %vm94_vm3 = vcmask 584704  }
  0x15   :  { %s3932_s3 = sld [smem:[#allocation6 + $0x1]]  ;;  %v5082_v2 = vunpack.c.l.bf16 %v5081_v0  ;;  %v5083_v3 = vunpack.c.h.bf16 %v5081_v0  ;;  %v5090_v4 = vunpack.c.l.bf16 %v5109_v1  ;;  %v5091_v5 = vunpack.c.h.bf16 %v5109_v1  ;;  %v4828_v40 = vld [vmem:[#allocation10 + $0x18] sm:$0xff]  ;;  %v4827_v41 = vld [vmem:[#allocation10 + $0x10] sm:$0xff]  ;;  %v4826_v43 = vld [vmem:[#allocation10 + $0x8] sm:$0xff]  ;;  %s5256_s0 = smov 120  }
  0x16   :  { %vm119_vm1 = vsmask.f32 4368  ;;  %v5255_v39 = vmov 0   ;;  %vm97_vm4 = vcmask 581632   ;;  %259 = vmatpush.bf16.msra.mxu1 %v4828_v40  ;;  %v4840_v42 = vld [vmem:[#allocation10 + $0x78] sm:$0xff]  ;;  %v4839_v44 = vld [vmem:[#allocation10 + $0x70] sm:$0xff] }
  0x17   :  { %vm5362_vm2 = vmor %vm118_vm0, %vm119_vm1  ;;  %95 = vst.msk [vmem:[#allocation2] sm:$0xf] %vm94_vm3, %v5255_v39  ;;  %387 = vmatpush.bf16.msra.mxu3 %v4840_v42  ;;  %v4825_v45 = vld [vmem:[#allocation10] sm:$0xff]  ;;  %v4838_v46 = vld [vmem:[#allocation10 + $0x68] sm:$0xff]  ;;  %vm147_vm5 = vcmask 551968   ;;  %vm155_vm7 = vcmask 548896  }
  0x18   :  { %96 = vst.msk [vmem:[#allocation2 + $0x4] sm:$0xf] %vm94_vm3, %v5255_v39  ;;  %v4837_v47 = vld [vmem:[#allocation10 + $0x60] sm:$0xff]  ;;  %vm148_vm6 = vsmask.f32 7938  ;;  %vm5384_vm9 = vmand %vm155_vm7, %vm118_vm0  ;;  %vm210_vm10 = vcmask 523264  }
  0x19   :  { %98 = vst.msk [vmem:[#allocation2 + $0x8] sm:$0x1] %vm97_vm4, %v5255_v39  ;;  %vm5379_vm8 = vmand %vm147_vm5, %vm148_vm6  ;;  %s5257_s16 = smov 124   ;;  %vm343_vm11 = vsmask.f32 7424  ;;  %vm520_vm12 = vcmask 1046528  }
  0x1a   :  { %v113_v6 = vstv %s108_s2  ;;  %260 = vmatpush.bf16.msra.mxu1 %v4827_v41  ;;  %v4831_v40 = vld [vmem:[#allocation10 + $0x30] sm:$0xff]  ;;  %v4848_v42 = vld [vmem:[#allocation10 + $0xb8] sm:$0xff]  ;;  %vm104_vm3 = vcmask 1040384   ;;  %vm105_vm4 = vcmask 126980   ;;  %vm99_vm7 = vcmask 1043456   ;;  %s5261_s30 = smov [#allocation13]  }
  0x1b   :  { %v114_v7 = vadd.f32 %v5082_v2, %v113_v6  ;;  %v115_v8 = vadd.f32 %v5083_v3, %v113_v6  ;;  %v701_v9 = vstv %s3932_s3  ;;  %388 = vmatpush.bf16.msra.mxu3 %v4839_v44  ;;  %v4835_v41 = vld [vmem:[#allocation10 + $0x50] sm:$0xff]  ;;  %v4834_v44 = vld [vmem:[#allocation10 + $0x48] sm:$0xff]  ;;  %v4844_v50 = vld [vmem:[#allocation10 + $0x98] sm:$0xff]  ;;  %s3742_s3 = sshll.u32 %s5899_s13, 4  ;;  %s3740_s15 = sshll.u32 %s5261_s30, 4  ;;  %s3743_s3 = int_to_ptr.hbm [resolvable:$true] %s3742_s3  ;;  %s3741_s15 = int_to_ptr.vmem [resolvable:$true] %s3740_s15 }
  0x1c   :  { %v702_v10 = vadd.f32 %v5090_v4, %v701_v9  ;;  %v703_v11 = vadd.f32 %v5091_v5, %v701_v9  ;;  %v4847_v48 = vld [vmem:[#allocation10 + $0xb0] sm:$0xff]  ;;  %v4902_v31 = vld [vmem:[#allocation11 + $0x18] sm:$0xff]  ;;  %s3755_s17 = sshll.u32 %s5900_s14, 4  ;;  %s3756_s17 = int_to_ptr.hbm [resolvable:$true] %s3755_s17 }
  0x1d   :  { %v116_v12 = vpack.c.bf16 %v114_v7, %v114_v7  ;;  %v117_v13 = vpack.c.bf16 %v115_v8, %v115_v8 }
  0x1e   :  { %v704_v14 = vpack.c.bf16 %v702_v10, %v702_v10  ;;  %v705_v15 = vpack.c.bf16 %v703_v11, %v703_v11  ;;  %261 = vmatpush.bf16.msra.mxu1 %v4826_v43  ;;  %v150_v49 = vld [vmem:[#allocation2] sm:$0xf]  ;;  %v4830_v43 = vld [vmem:[#allocation10 + $0x28] sm:$0xff] }
  0x1f   :  { %v122_v16 = vshrl.u32 %v116_v12, 16  ;;  %v125_v17 = vshll.u32 %v116_v12, 16  ;;  %v130_v18 = vshrl.u32 %v117_v13, 16  ;;  %v133_v24 = vshll.u32 %v117_v13, 16  ;;  %389 = vmatpush.bf16.msra.mxu3 %v4838_v46  ;;  %v4829_v46 = vld [vmem:[#allocation10 + $0x20] sm:$0xff] }
  0x20   :  { %v707_v19 = vshrl.u32 %v704_v14, 16  ;;  %v715_v20 = vshrl.u32 %v705_v15, 16  ;;  %v718_v21 = vshll.u32 %v705_v15, 16  ;;  %v710_v32 = vshll.u32 %v704_v14, 16  ;;  %v157_v51 = vld [vmem:[#allocation2 + $0x8] sm:$0x1] }
  0x21   :  { %v124_v22 = vrot.slane %v122_v16, 7  ;;  %v132_v23 = vrot.slane %v130_v18, 7 }
  0x22   :  { %v709_v25 = vrot.slane %v707_v19, 7  ;;  %v717_v26 = vrot.slane %v715_v20, 7  ;;  %262 = vmatpush.bf16.msra.mxu1 %v4825_v45  ;;  %v4856_v45 = vld [vmem:[#allocation10 + $0xf8] sm:$0xff] }
  0x23   :  { %v127_v27 = vor.u32 %v125_v17, %v124_v22  ;;  %v137_v28 = vrot.slane %v132_v23, 4  ;;  %v128_v33 = vrot.slane %v124_v22, 4  ;;  %v135_v34 = vor.u32 %v133_v24, %v132_v23  ;;  %390 = vmatpush.bf16.msra.mxu3 %v4837_v47  ;;  %v4833_v47 = vld [vmem:[#allocation10 + $0x40] sm:$0xff] }
  0x24   :  { %v713_v29 = vrot.slane %v709_v25, 4  ;;  %v720_v30 = vor.u32 %v718_v21, %v717_v26  ;;  %v712_v36 = vor.u32 %v710_v32, %v709_v25  ;;  %v722_v38 = vrot.slane %v717_v26, 4 }
  0x25   :  { %138 = vrot.lane.b32.xlu0 %v127_v27, %s5253_s23  ;;  %142 = vrot.lane.b32.xlu1 %v137_v28, %s5253_s23  ;;  %v136_v37 = vsel %vm5362_vm2, %v128_v33, %v135_v34 }
  0x26   :  { %v721_v35 = vsel %vm5362_vm2, %v713_v29, %v720_v30  ;;  %495 = vmatpush.bf16.msrb.mxu1 %v4848_v42  ;;  %v4882_v42 = vld [vmem:[#allocation10 + $0xa0] sm:$0xff] }
  0x27   :  { %725 = vrot.lane.b32.xlu2 %v721_v35, %s5253_s23  ;;  %609 = vmatpush.bf16.msrb.mxu3 %v4856_v45  ;;  %v4893_v45 = vld [vmem:[#allocation10 + $0xf8] sm:$0xff] }
  0x2a   :  { %496 = vmatpush.bf16.msrb.mxu1 %v4847_v48  ;;  %v4894_v48 = vld [vmem:[#allocation10 + $0x100] sm:$0xff] }
  0x2d   :  { %140 = vrot.lane.b32.xlu0 %v136_v37, %s5253_s23  ;;  %723 = vrot.lane.b32.xlu1 %v712_v36, %s5253_s23  ;;  %v4832_v37 = vld [vmem:[#allocation10 + $0x38] sm:$0xff] }
  0x2e   :  { %218 = vmatpush.bf16.msra.mxu0 %v4832_v37  ;;  %v4883_v37 = vld [vmem:[#allocation10 + $0xa8] sm:$0xff] }
  0x2f   :  { %727 = vrot.lane.b32.xlu2 %v722_v38, %s5253_s23  ;;  %v4836_v38 = vld [vmem:[#allocation10 + $0x58] sm:$0xff] }
  0x30   :  { %311 = vmatpush.bf16.msra.mxu2 %v4836_v38  ;;  %v4897_v38 = vld [vmem:[#allocation10 + $0x118] sm:$0xff] }
  0x32   :  { %219 = vmatpush.bf16.msra.mxu0 %v4831_v40 }
  0x34   :  { %312 = vmatpush.bf16.msra.mxu2 %v4835_v41 }
  0x36   :  { %220 = vmatpush.bf16.msra.mxu0 %v4830_v43  ;;  %v4896_v43 = vld [vmem:[#allocation10 + $0x110] sm:$0xff] }
  0x38   :  { %313 = vmatpush.bf16.msra.mxu2 %v4834_v44 }
  0x3a   :  { %221 = vmatpush.bf16.msra.mxu0 %v4829_v46  ;;  %v4895_v46 = vld [vmem:[#allocation10 + $0x108] sm:$0xff] }
  0x3c   :  { %314 = vmatpush.bf16.msra.mxu2 %v4833_v47  ;;  %v4892_v47 = vld [vmem:[#allocation10 + $0xf0] sm:$0xff] }
  0x3e   :  { %441 = vmatpush.bf16.msrb.mxu0 %v4844_v50 }
  0x81   :  { %v726_v52 = vpop.permute.xlu2 %725 }
  0x89   :  { %v728_v58 = vpop.permute.xlu2 %727 }
  0x97   :  { %v139_v53 = vpop.permute.xlu0 %138  ;;  %v143_v54 = vpop.permute.xlu1 %142 }
  0x98   :  { %v151_v55 = vsel %vm5379_vm8, %v139_v53, %v150_v49  ;;  %v158_v56 = vsel %vm5384_vm9, %v143_v54, %v157_v51  ;;  %v4855_v49 = vld [vmem:[#allocation10 + $0xf0] sm:$0xff]  ;;  %v4846_v51 = vld [vmem:[#allocation10 + $0xa8] sm:$0xff] }
  0x99   :  { %152 = vst [vmem:[#allocation2] sm:$0xf] %v151_v55  ;;  %610 = vmatpush.bf16.msrb.mxu3 %v4855_v49  ;;  %v4854_v53 = vld [vmem:[#allocation10 + $0xe8] sm:$0xff]  ;;  %497 = vmatpush.bf16.msrb.mxu1 %v4846_v51  ;;  %v4843_v54 = vld [vmem:[#allocation10 + $0x90] sm:$0xff]  ;;  %v4845_v55 = vld [vmem:[#allocation10 + $0xa0] sm:$0xff] }
  0x9a   :  { %159 = vst [vmem:[#allocation2 + $0x8] sm:$0x1] %v158_v56  ;;  %v4851_v56 = vld [vmem:[#allocation10 + $0xd0] sm:$0xff]  ;;  %442 = vmatpush.bf16.msrb.mxu0 %v4843_v54  ;;  %v4891_v49 = vld [vmem:[#allocation10 + $0xe8] sm:$0xff]  ;;  %v4890_v51 = vld [vmem:[#allocation10 + $0xe0] sm:$0xff] }
  0x9d   :  { %611 = vmatpush.bf16.msrb.mxu3 %v4854_v53  ;;  %498 = vmatpush.bf16.msrb.mxu1 %v4845_v55 }
  0x9f   :  { %v141_v57 = vpop.permute.xlu0 %140  ;;  %v724_v63 = vpop.permute.xlu1 %723 }
  0xa0   :  { %154 = vst.msk [vmem:[#allocation2 + $0x4] sm:$0xf] %vm147_vm5, %v141_v57  ;;  %v732_v0 = vld [vmem:[#allocation2] sm:$0xf]  ;;  %v4853_v57 = vld [vmem:[#allocation10 + $0xe0] sm:$0xff] }
  0xa1   :  { %v325_v59 = vld [vmem:[#allocation2 + $0x8] sm:$0x1]  ;;  %v5107_v3 = vld [vmem:[#allocation2] sm:$0xe]  ;;  %v733_v4 = vsel %vm5379_vm8, %v724_v63, %v732_v0  ;;  %612 = vmatpush.bf16.msrb.mxu3 %v4853_v57  ;;  %v4868_v0 = vld [vmem:[#allocation10 + $0x30] sm:$0xff]  ;;  %vm100_vm8 = vcmask 130052  }
  0xa2   :  { %v736_v60 = vld [vmem:[#allocation2 + $0x8] sm:$0x1]  ;;  %v340_v62 = vunpack.c.l.b16 %v325_v59  ;;  %v4850_v59 = vld [vmem:[#allocation10 + $0xc8] sm:$0xff] }
  0xa3   :  { %v737_v61 = vsel %vm5384_vm9, %v728_v58, %v736_v60  ;;  %v4842_v58 = vld [vmem:[#allocation10 + $0x88] sm:$0xff]  ;;  %v4869_v60 = vld [vmem:[#allocation10 + $0x38] sm:$0xff]  ;;  %v4849_v63 = vld [vmem:[#allocation10 + $0xc0] sm:$0xff] }
  0xa4   :  { %738 = vst [vmem:[#allocation2 + $0x8] sm:$0x1] %v737_v61  ;;  %v342_v1 = vpack.c.b16 %v340_v62, %v340_v62  ;;  %v4873_v61 = vld [vmem:[#allocation10 + $0x58] sm:$0xff]  ;;  %443 = vmatpush.bf16.msrb.mxu0 %v4842_v58  ;;  %v4841_v62 = vld [vmem:[#allocation10 + $0x80] sm:$0xff]  ;;  %vm101_vm9 = vmor %vm100_vm8, %vm99_vm7 }
  0xa5   :  { %102 = vst.msk [vmem:[#allocation3] sm:$0xff] %vm101_vm9, %v5255_v39 }
  0xa6   :  { %v352_v2 = vshll.u32 %v342_v1, 16  ;;  %v522_v16 = vrot.slane %v342_v1, 1  ;;  %v4872_v1 = vld [vmem:[#allocation10 + $0x50] sm:$0xff]  ;;  %103 = vst.msk [vmem:[#allocation3 + $0x8] sm:$0xff] %vm101_vm9, %v5255_v39 }
  0xa7   :  { %v4824_v5 = vld [vmem:[#allocation2] sm:$0xff] }
  0xa8   :  { %v5085_v6 = vld [vmem:[#allocation2] sm:$0xff]   ;;  %278 = vrot.lane.b32.xlu1 %v4824_v5, %s5256_s0  ;;  %184 = vrot.lane.b32.xlu0 %v4824_v5, %s5257_s16  ;;  %v354_v12 = vrot.slane %v352_v2, 1  ;;  %v4867_v2 = vld [vmem:[#allocation10 + $0x28] sm:$0xff] }
  0xa9   :  { %v5106_v7 = vld [vmem:[#allocation2] sm:$0xf0]  ;;  %v347_v8 = vshll.u32 %v5085_v6, 16  ;;  %734 = vst [vmem:[#allocation2] sm:$0xf] %v733_v4  ;;  %3812 = vmatmul.msk.bf16.vlgmr.msra.gmra.mxu1 %vm210_vm10, %v4824_v5  ;;  %v345_v10 = vshrl.u32 %v5085_v6, 16  ;;  %444 = vmatpush.bf16.msrb.mxu0 %v4841_v62 }
  0xaa   :  { %v5108_v9 = vor.u32 %v5107_v3, %v5106_v7  ;;  %735 = vst.msk [vmem:[#allocation2 + $0x4] sm:$0xf] %vm147_vm5, %v726_v52  ;;  %v4852_v52 = vld [vmem:[#allocation10 + $0xd8] sm:$0xff]  ;;  %795 = vmatpush.bf16.msra.mxu1 %v4869_v60  ;;  %v4871_v3 = vld [vmem:[#allocation10 + $0x48] sm:$0xff]  ;;  %v4866_v4 = vld [vmem:[#allocation10 + $0x20] sm:$0xff] }
  0xab   :  { %v349_v11 = vrot.slane %v347_v8, 1  ;;  %v901_v13 = vld [vmem:[#allocation2 + $0x8] sm:$0x1]  ;;  %555 = vmatpush.bf16.msrb.mxu2 %v4852_v52  ;;  %v4860_v6 = vld [vmem:[#allocation10 + $0x118] sm:$0xff]  ;;  %vm106_vm5 = vmor %vm105_vm4, %vm104_vm3  ;;  %vm1399_vm4 = vcmask 64516  }
  0xac   :  { %v521_v15 = vrot.slane %v5108_v9, 1  ;;  %v915_v18 = vunpack.c.l.b16 %v901_v13  ;;  %v4870_v5 = vld [vmem:[#allocation10 + $0x40] sm:$0xff]  ;;  %v4865_v7 = vld [vmem:[#allocation10 + $0x18] sm:$0xff]  ;;  %v4863_v13 = vld [vmem:[#allocation10 + $0x8] sm:$0xff]  ;;  %107 = vst.msk [vmem:[#allocation3 + $0x10] sm:$0x11] %vm106_vm5, %v5255_v39 }
  0xad   :  { %v350_v14 = vor.u32 %v349_v11, %v345_v10  ;;  %v4859_v10 = vld [vmem:[#allocation10 + $0x110] sm:$0xff]  ;;  %vm1400_vm5 = vsmask.f32 7954 }
  0xae   :  { %v5405_v19 = vsel %vm520_vm12, %v521_v15, %v522_v16  ;;  %v917_v21 = vpack.c.b16 %v915_v18, %v915_v18  ;;  %796 = vmatpush.bf16.msra.mxu1 %v4868_v0  ;;  %v4864_v11 = vld [vmem:[#allocation10 + $0x10] sm:$0xff]  ;;  %v4889_v15 = vld [vmem:[#allocation10 + $0xd8] sm:$0xff]  ;;  %v4857_v18 = vld [vmem:[#allocation10 + $0x100] sm:$0xff] }
  0xaf   :  { %v355_v17 = vsel %vm343_vm11, %v350_v14, %v354_v12  ;;  %556 = vmatpush.bf16.msrb.mxu2 %v4851_v56  ;;  %v4858_v12 = vld [vmem:[#allocation10 + $0x108] sm:$0xff]  ;;  %v4881_v14 = vld [vmem:[#allocation10 + $0x98] sm:$0xff]  ;;  %vm5586_vm8 = vmand %vm1399_vm4, %vm1400_vm5 }
  0xb0   :  { %408 = vrot.lane.b32.xlu2 %v355_v17, %s5257_s16  ;;  %3846 = vmatmul.msk.bf16.vlgmr.msra.gmra.mxu3 %vm210_vm10, %v355_v17  ;;  %v5111_v24 = vld [vmem:[#allocation2] sm:$0xe]  ;;  %v926_v26 = vshll.u32 %v917_v21, 16  ;;  %v1092_v34 = vrot.slane %v917_v21, 1  ;;  %v4880_v21 = vld [vmem:[#allocation10 + $0x90] sm:$0xff] }
  0xb1   :  { %v5093_v20 = vld [vmem:[#allocation2] sm:$0xff]   ;;  %576 = vrot.lane.b32.xlu1 %v5405_v19, %s5257_s16  ;;  %462 = vrot.lane.b32.xlu0 %v355_v17, %s5256_s0 }
  0xb2   :  { %v921_v22 = vshll.u32 %v5093_v20, 16  ;;  %v5110_v23 = vld [vmem:[#allocation2] sm:$0xf0]  ;;  %v919_v28 = vshrl.u32 %v5093_v20, 16  ;;  %v928_v32 = vrot.slane %v926_v26, 1  ;;  %887 = vmatpush.bf16.msra.mxu3 %v4873_v61  ;;  %797 = vmatpush.bf16.msra.mxu1 %v4867_v2  ;;  %v4887_v26 = vld [vmem:[#allocation10 + $0xc8] sm:$0xff] }
  0xb3   :  { %v5412_v27 = vld [vmem:[#allocation2] sm:$0xff]  ;;  %v5112_v29 = vor.u32 %v5111_v24, %v5110_v23  ;;  %557 = vmatpush.bf16.msrb.mxu2 %v4850_v59 }
  0xb4   :  { %v923_v25 = vrot.slane %v921_v22, 1  ;;  %v4862_v20 = vld [vmem:[#allocation10] sm:$0xff]  ;;  %v4888_v22 = vld [vmem:[#allocation10 + $0xd0] sm:$0xff]  ;;  %v4877_v23 = vld [vmem:[#allocation10 + $0x78] sm:$0xff] }
  0xb5   :  { %v1091_v33 = vrot.slane %v5112_v29, 1  ;;  %v4885_v24 = vld [vmem:[#allocation10 + $0xb8] sm:$0xff]  ;;  %v4876_v29 = vld [vmem:[#allocation10 + $0x70] sm:$0xff] }
  0xb6   :  { %v924_v30 = vor.u32 %v923_v25, %v919_v28  ;;  %888 = vmatpush.bf16.msra.mxu3 %v4872_v1  ;;  %798 = vmatpush.bf16.msra.mxu1 %v4866_v4  ;;  %v4879_v25 = vld [vmem:[#allocation10 + $0x88] sm:$0xff] }
  0xb7   :  { %v5424_v36 = vsel %vm520_vm12, %v1091_v33, %v1092_v34  ;;  %558 = vmatpush.bf16.msrb.mxu2 %v4849_v63  ;;  %v4886_v33 = vld [vmem:[#allocation10 + $0xc0] sm:$0xff]  ;;  %v4875_v34 = vld [vmem:[#allocation10 + $0x68] sm:$0xff] }
  0xb8   :  { %630 = vrot.lane.b32.xlu2 %v5405_v19, %s5256_s0  ;;  %v5419_v35 = vsel %vm343_vm11, %v924_v30, %v928_v32  ;;  %v4884_v30 = vld [vmem:[#allocation10 + $0xb0] sm:$0xff]  ;;  %v4878_v32 = vld [vmem:[#allocation10 + $0x80] sm:$0xff] }
  0xb9   :  { %854 = vrot.lane.b32.xlu1 %v5412_v27, %s5256_s0  ;;  %762 = vrot.lane.b32.xlu0 %v5412_v27, %s5257_s16 }
  0xba   :  { %889 = vmatpush.bf16.msra.mxu3 %v4871_v3 }
  0xbe   :  { %890 = vmatpush.bf16.msra.mxu3 %v4870_v5  ;;  %v1279_v5 = vld [vmem:[%s5894_s8 + $0x78] sm:$0xff] }
  0xc0   :  { %981 = vrot.lane.b32.xlu2 %v5419_v35, %s5257_s16 }
  0xc1   :  { %1145 = vrot.lane.b32.xlu1 %v5424_v36, %s5257_s16  ;;  %1034 = vrot.lane.b32.xlu0 %v5419_v35, %s5256_s0 }
  0xc8   :  { %1198 = vrot.lane.b32.xlu2 %v5424_v36, %s5256_s0 }
 0x10a   :  { %v409_v28 = vpop.permute.xlu2 %408 }
 0x112   :  { %v631_v44 = vpop.permute.xlu2 %630 }
 0x11a   :  { %v279_v8 = vpop.permute.xlu1 %278  ;;  %v185_v9 = vpop.permute.xlu0 %184 }
 0x11b   :  { %3795 = vmatmul.msk.bf16.vlgmr.msra.gmra.mxu0 %vm210_vm10, %v185_v9  ;;  %3829 = vmatmul.msk.bf16.vlgmr.msra.gmra.mxu2 %vm210_vm10, %v279_v8  ;;  %v982_v50 = vpop.permute.xlu2 %981  ;;  %v1277_v9 = vld [vmem:[%s5894_s8 + $0x68] sm:$0xff] }
 0x11c   :  { %663 = vmatpush.bf16.msra.mxu0 %v4860_v6  ;;  %836 = vmatpush.bf16.msra.mxu2 %v4865_v7  ;;  %v1278_v7 = vld [vmem:[%s5894_s8 + $0x70] sm:$0xff] }
 0x120   :  { %664 = vmatpush.bf16.msra.mxu0 %v4859_v10  ;;  %837 = vmatpush.bf16.msra.mxu2 %v4864_v11  ;;  %v1276_v10 = vld [vmem:[%s5894_s8 + $0x60] sm:$0xff]  ;;  %v1275_v11 = vld [vmem:[%s5894_s8 + $0x58] sm:$0xff] }
 0x123   :  { %v577_v16 = vpop.permute.xlu1 %576  ;;  %v463_v17 = vpop.permute.xlu0 %462 }
 0x124   :  { %3880 = vmatmul.msk.bf16.vlgmr.msrb.gmra.mxu1 %vm210_vm10, %v463_v17  ;;  %3914 = vmatmul.msk.bf16.vlgmr.msrb.gmra.mxu3 %vm210_vm10, %v577_v16  ;;  %v1274_v16 = vld [vmem:[%s5894_s8 + $0x50] sm:$0xff] }
 0x125   :  { %665 = vmatpush.bf16.msra.mxu0 %v4858_v12  ;;  %838 = vmatpush.bf16.msra.mxu2 %v4863_v13 }
 0x126   :  { %1014 = vmatpush.bf16.msrb.mxu1 %v4881_v14  ;;  %1125 = vmatpush.bf16.msrb.mxu3 %v4889_v15  ;;  %v264_v54 = vpop.f32.mrf.mxu1 }
 0x129   :  { %666 = vmatpush.bf16.msra.mxu0 %v4857_v18  ;;  %839 = vmatpush.bf16.msra.mxu2 %v4862_v20  ;;  %v1273_v20 = vld [vmem:[%s5894_s8 + $0x48] sm:$0xff] }
 0x12a   :  { %1015 = vmatpush.bf16.msrb.mxu1 %v4880_v21  ;;  %1126 = vmatpush.bf16.msrb.mxu3 %v4888_v22 }
 0x12b   :  { %3863 = vmatmul.msk.bf16.vlgmr.msrb.gmra.mxu0 %vm210_vm10, %v409_v28  ;;  %3897 = vmatmul.msk.bf16.vlgmr.msrb.gmra.mxu2 %vm210_vm10, %v5405_v19  ;;  %v855_v40 = vpop.permute.xlu1 %854  ;;  %v763_v41 = vpop.permute.xlu0 %762  ;;  %v4874_v19 = vld [vmem:[#allocation10 + $0x60] sm:$0xff] }
 0x12d   :  { %961 = vmatpush.bf16.msrb.mxu0 %v4877_v23  ;;  %1067 = vmatpush.bf16.msrb.mxu2 %v4885_v24  ;;  %v1272_v23 = vld [vmem:[%s5894_s8 + $0x40] sm:$0xff] }
 0x12e   :  { %1016 = vmatpush.bf16.msrb.mxu1 %v4879_v25  ;;  %1127 = vmatpush.bf16.msrb.mxu3 %v4887_v26  ;;  %v266_v55 = vpop.f32.mrf.mxu1  ;;  %v1271_v26 = vld [vmem:[%s5894_s8 + $0x38] sm:$0xff] }
 0x131   :  { %962 = vmatpush.bf16.msrb.mxu0 %v4876_v29  ;;  %1068 = vmatpush.bf16.msrb.mxu2 %v4884_v30 }
 0x132   :  { %1017 = vmatpush.bf16.msrb.mxu1 %v4878_v32  ;;  %1128 = vmatpush.bf16.msrb.mxu3 %v4886_v33  ;;  %v1270_v32 = vld [vmem:[%s5894_s8 + $0x30] sm:$0xff] }
 0x133   :  { %v1035_v52 = vpop.permute.xlu0 %1034  ;;  %v1146_v53 = vpop.permute.xlu1 %1145 }
 0x134   :  { %3955 = vmatmul.msk.bf16.vlgmr.msra.gmra.mxu1 %vm210_vm10, %v763_v41  ;;  %3989 = vmatmul.msk.bf16.vlgmr.msra.gmra.mxu3 %vm210_vm10, %v855_v40  ;;  %v392_v57 = vpop.f32.mrf.mxu3  ;;  %v1268_v41 = vld [vmem:[%s5894_s8 + $0x20] sm:$0xff] }
 0x135   :  { %963 = vmatpush.bf16.msrb.mxu0 %v4875_v34  ;;  %1069 = vmatpush.bf16.msrb.mxu2 %v4883_v37  ;;  %v1269_v37 = vld [vmem:[%s5894_s8 + $0x28] sm:$0xff] }
 0x136   :  { %1231 = vmatpush.bf16.msra.mxu1 %v4897_v38  ;;  %1300 = vmatpush.msra.mxu3 %v1279_v5 }
 0x138   :  { %1301 = vmatpush.msra.mxu3 %v1278_v7 }
 0x139   :  { %964 = vmatpush.bf16.msrb.mxu0 %v4874_v19  ;;  %1070 = vmatpush.bf16.msrb.mxu2 %v4882_v42 }
 0x13a   :  { %1232 = vmatpush.bf16.msra.mxu1 %v4896_v43  ;;  %1302 = vmatpush.msra.mxu3 %v1277_v9 }
 0x13b   :  { %3931 = vmatmul.msk.bf16.vlgmr.msra.gmra.mxu0 %vm210_vm10, %v631_v44  ;;  %3972 = vmatmul.msk.bf16.vlgmr.msra.gmra.mxu2 %vm210_vm10, %v5412_v27  ;;  %v1199_v27 = vpop.permute.xlu2 %1198  ;;  %v1267_v44 = vld [vmem:[%s5894_s8 + $0x18] sm:$0xff] }
 0x13c   :  { %v394_v60 = vpop.f32.mrf.mxu3  ;;  %1303 = vmatpush.msra.mxu3 %v1276_v10 }
 0x13d   :  { %1178 = vmatpush.bf16.msra.mxu0 %v4893_v45  ;;  %1280 = vmatpush.msra.mxu2 %v1279_v5 }
 0x13e   :  { %1233 = vmatpush.bf16.msra.mxu1 %v4895_v46  ;;  %1304 = vmatpush.msra.mxu3 %v1275_v11  ;;  %v1266_v46 = vld [vmem:[%s5894_s8 + $0x10] sm:$0xff] }
 0x13f   :  { %1281 = vmatpush.msra.mxu2 %v1278_v7 }
 0x140   :  { %1305 = vmatpush.msra.mxu3 %v1274_v16 }
 0x141   :  { %1179 = vmatpush.bf16.msra.mxu0 %v4892_v47  ;;  %1282 = vmatpush.msra.mxu2 %v1277_v9 }
 0x142   :  { %1234 = vmatpush.bf16.msra.mxu1 %v4894_v48  ;;  %1306 = vmatpush.msra.mxu3 %v1273_v20 }
 0x143   :  { %1283 = vmatpush.msra.mxu2 %v1276_v10 }
 0x144   :  { %4023 = vmatmul.msk.bf16.vlgmr.msrb.gmra.mxu1 %vm210_vm10, %v982_v50  ;;  %4057 = vmatmul.msk.bf16.vlgmr.msrb.gmra.mxu3 %vm210_vm10, %v5424_v36 }
 0x145   :  { %1180 = vmatpush.bf16.msra.mxu0 %v4891_v49  ;;  %1284 = vmatpush.msra.mxu2 %v1275_v11 }
 0x146   :  { %1307 = vmatpush.msra.mxu3 %v1272_v23 }
 0x147   :  { %1285 = vmatpush.msra.mxu2 %v1274_v16 }
 0x148   :  { %1308 = vmatpush.msra.mxu3 %v1271_v26 }
 0x149   :  { %1181 = vmatpush.bf16.msra.mxu0 %v4890_v51  ;;  %1286 = vmatpush.msra.mxu2 %v1273_v20  ;;  %v1265_v51 = vld [vmem:[%s5894_s8 + $0x8] sm:$0xff] }
 0x14a   :  { %1309 = vmatpush.msra.mxu3 %v1270_v32 }
 0x14b   :  { %4006 = vmatmul.msk.bf16.vlgmr.msrb.gmra.mxu0 %vm210_vm10, %v5419_v35  ;;  %4040 = vmatmul.msk.bf16.vlgmr.msrb.gmra.mxu2 %vm210_vm10, %v1035_v52 }
 0x14c   :  { %1287 = vmatpush.msra.mxu2 %v1272_v23  ;;  %1310 = vmatpush.msra.mxu3 %v1269_v37 }
 0x14e   :  { %1288 = vmatpush.msra.mxu2 %v1271_v26  ;;  %1311 = vmatpush.msra.mxu3 %v1268_v41 }
 0x150   :  { %1289 = vmatpush.msra.mxu2 %v1270_v32  ;;  %1312 = vmatpush.msra.mxu3 %v1267_v44 }
 0x152   :  { %1290 = vmatpush.msra.mxu2 %v1269_v37  ;;  %1313 = vmatpush.msra.mxu3 %v1266_v46 }
 0x154   :  { %4091 = vmatmul.msk.bf16.vlgmr.msra.gmra.mxu1 %vm210_vm10, %v1199_v27  ;;  %1291 = vmatpush.msra.mxu2 %v1268_v41 }
 0x155   :  { %1314 = vmatpush.msra.mxu3 %v1265_v51 }
 0x156   :  { %1292 = vmatpush.msra.mxu2 %v1267_v44 }
 0x158   :  { %1293 = vmatpush.msra.mxu2 %v1266_v46 }
 0x15a   :  { %1294 = vmatpush.msra.mxu2 %v1265_v51 }
 0x15b   :  { %4074 = vmatmul.msk.bf16.vlgmr.msra.gmra.mxu0 %vm210_vm10, %v1146_v53  ;;  %v1264_v53 = vld [vmem:[%s5894_s8] sm:$0xff]  ;;  %vm1412_vm10 = vcmask 61444  }
 0x15c   :  { %1295 = vmatpush.msra.mxu2 %v1264_v53  ;;  %1315 = vmatpush.msra.mxu3 %v1264_v53 }
 0x198   :  { %v223_v56 = vpop.f32.mrf.mxu0 }
 0x199   :  { %v265_v17 = vadd.f32 %v264_v54, %v223_v56 }
 0x19e   :  { %v316_v36 = vpop.f32.mrf.mxu2 }
 0x19f   :  { %v321_v21 = vadd.f32 %v316_v36, %v265_v17 }
 0x1a0   :  { %v225_v58 = vpop.f32.mrf.mxu0 }
 0x1a1   :  { %v5452_v59 = vpop.f32.mrf.mxu1  ;;  %v267_v13 = vadd.f32 %v266_v55, %v225_v58  ;;  %v397_v28 = vadd.f32 %v392_v57, %v321_v21 }
 0x1a6   :  { %v318_v61 = vpop.f32.mrf.mxu2 }
 0x1a7   :  { %v5454_v63 = vpop.f32.mrf.mxu3  ;;  %v322_v18 = vadd.f32 %v318_v61, %v267_v13 }
 0x1a8   :  { %v446_v62 = vpop.f32.mrf.mxu0 }
 0x1a9   :  { %v502_v35 = vpop.f32.mrf.mxu1  ;;  %v398_v24 = vadd.f32 %v394_v60, %v322_v18  ;;  %v451_v33 = vadd.f32 %v446_v62, %v397_v28 }
 0x1ab   :  { %v505_v19 = vadd.f32 %v5452_v59, %v451_v33 }
 0x1ae   :  { %v5456_v0 = vpop.f32.mrf.mxu2 }
 0x1af   :  { %v5458_v3 = vpop.f32.mrf.mxu3  ;;  %v565_v47 = vadd.f32 %v5456_v0, %v505_v19 }
 0x1b0   :  { %v448_v1 = vpop.f32.mrf.mxu0 }
 0x1b1   :  { %v800_v2 = vpop.f32.mrf.mxu1  ;;  %v452_v29 = vadd.f32 %v448_v1, %v398_v24  ;;  %v619_v54 = vadd.f32 %v5454_v63, %v565_v47 }
 0x1b3   :  { %v506_v38 = vadd.f32 %v502_v35, %v452_v29 }
 0x1b6   :  { %v562_v4 = vpop.f32.mrf.mxu2 }
 0x1b7   :  { %v892_v14 = vpop.f32.mrf.mxu3  ;;  %v566_v42 = vadd.f32 %v562_v4, %v506_v38 }
 0x1b8   :  { %v5463_v6 = vpop.f32.mrf.mxu0 }
 0x1b9   :  { %v802_v8 = vpop.f32.mrf.mxu1  ;;  %v620_v52 = vadd.f32 %v5458_v3, %v566_v42  ;;  %v5517_v36 = vadd.f32 %v5463_v6, %v619_v54 }
 0x1bb   :  { %v685_v0 = vmul.f32 %v5517_v36, %v5517_v36 }
 0x1be   :  { %v841_v12 = vpop.f32.mrf.mxu2 }
 0x1bf   :  { %v894_v34 = vpop.f32.mrf.mxu3  ;;  %v842_v40 = vadd.f32 %v841_v12, %v800_v2 }
 0x1c0   :  { %v670_v15 = vpop.f32.mrf.mxu0 }
 0x1c1   :  { %v1019_v22 = vpop.f32.mrf.mxu1  ;;  %v897_v49 = vadd.f32 %v892_v14, %v842_v40  ;;  %v5514_v55 = vadd.f32 %v670_v15, %v620_v52 }
 0x1c3   :  { %v686_v60 = vmul.f32 %v5514_v55, %v5514_v55  ;;  %v677_v1 = vadd.f32 %v5514_v55, %v5517_v36 }
 0x1c5   :  { %v687_v3 = vadd.f32 %v686_v60, %v685_v0  ;;  %v678_v6 = vrot.slane %v677_v1, 4 }
 0x1c6   :  { %v843_v25 = vpop.f32.mrf.mxu2 }
 0x1c7   :  { %v844_v48 = vadd.f32 %v843_v25, %v802_v8  ;;  %v1130_v57 = vpop.f32.mrf.mxu3  ;;  %v688_v9 = vrot.slane %v687_v3, 4  ;;  %v679_v12 = vadd.f32 %v678_v6, %v677_v1 }
 0x1c8   :  { %v966_v30 = vpop.f32.mrf.mxu0 }
 0x1c9   :  { %v1021_v43 = vpop.f32.mrf.mxu1  ;;  %v971_v27 = vadd.f32 %v966_v30, %v897_v49  ;;  %v898_v56 = vadd.f32 %v894_v34, %v844_v48  ;;  %v689_v16 = vadd.f32 %v688_v9, %v687_v3  ;;  %v680_v18 = vrot.slane %v679_v12, 2 }
 0x1ca   :  { %v5258_v49 = vmov 512.0  }
 0x1cb   :  { %v1024_v58 = vadd.f32 %v1019_v22, %v971_v27  ;;  %v690_v23 = vrot.slane %v689_v16, 2  ;;  %v681_v26 = vadd.f32 %v680_v18, %v679_v12  ;;  %5126 = vrcp.f32 %v5258_v49 }
 0x1cd   :  { %v691_v30 = vadd.f32 %v690_v23, %v689_v16  ;;  %v682_v34 = vrot.slane %v681_v26, 1 }
 0x1ce   :  { %v1072_v45 = vpop.f32.mrf.mxu2 }
 0x1cf   :  { %v1077_v61 = vadd.f32 %v1072_v45, %v1024_v58  ;;  %v1132_v8 = vpop.f32.mrf.mxu3  ;;  %v692_v41 = vrot.slane %v691_v30, 1  ;;  %v683_v42 = vadd.f32 %v682_v34, %v681_v26 }
 0x1d0   :  { %v968_v50 = vpop.f32.mrf.mxu0 }
 0x1d1   :  { %v972_v59 = vadd.f32 %v968_v50, %v898_v56  ;;  %v1236_v62 = vpop.f32.mrf.mxu1  ;;  %v1135_v5 = vadd.f32 %v1130_v57, %v1077_v61  ;;  %v693_v46 = vadd.f32 %v692_v41, %v691_v30  ;;  %v5127_v50 = vpop.eup %5126 }
 0x1d2   :  { %v1321_v51 = vmul.f32 512.0, %v5127_v50  ;;  %vm1325_vm13 = vweird.f32 %v5127_v50 }
 0x1d3   :  { %v1025_v2 = vadd.f32 %v1021_v43, %v972_v59 }
 0x1d4   :  { %v1322_v52 = vsub.f32 1.0, %v1321_v51 }
 0x1d6   :  { %v1074_v35 = vpop.f32.mrf.mxu2  ;;  %v1323_v27 = vmul.f32 %v5127_v50, %v1322_v52 }
 0x1d7   :  { %v1078_v4 = vadd.f32 %v1074_v35, %v1025_v2 }
 0x1d8   :  { %v1183_v63 = vpop.f32.mrf.mxu0  ;;  %v1324_v53 = vadd.f32 %v5127_v50, %v1323_v27 }
 0x1d9   :  { %v1188_v7 = vadd.f32 %v1183_v63, %v1135_v5  ;;  %v1136_v10 = vadd.f32 %v1132_v8, %v1078_v4  ;;  %v1238_v15 = vpop.f32.mrf.mxu1  ;;  %v1332_v4 = vld [vmem:[%s5890_s4] sm:$0x1]  ;;  %s5259_s4 = smov 8  }
 0x1da   :  { %v5535_v54 = vsel %vm1325_vm13, %v5127_v50, %v1324_v53  ;;  %v1345_v8 = vld [vmem:[%s5891_s5] sm:$0x1]  ;;  %vm1413_vm13 = vsmask.f32 4352  ;;  %s5260_s5 = smov 112  }
 0x1db   :  { %v5525_v13 = vadd.f32 %v1236_v62, %v1188_v7  ;;  %v4906_v53 = vld [vmem:[#allocation11 + $0x38] sm:$0xff] }
 0x1dc   :  { %1587 = vmatpush.bf16.msrb.mxu1 %v4906_v53 }
 0x1dd   :  { %v1254_v20 = vmul.f32 %v5525_v13, %v5525_v13 }
 0x1e0   :  { %v1185_v11 = vpop.f32.mrf.mxu0 }
 0x1e1   :  { %v1189_v14 = vadd.f32 %v1185_v11, %v1136_v10 }
 0x1e3   :  { %v5527_v17 = vadd.f32 %v1238_v15, %v1189_v14 }
 0x1e5   :  { %v1246_v21 = vadd.f32 %v5527_v17, %v5525_v13  ;;  %v1255_v22 = vmul.f32 %v5527_v17, %v5527_v17 }
 0x1e7   :  { %v1247_v24 = vrot.slane %v1246_v21, 4  ;;  %v1256_v25 = vadd.f32 %v1255_v22, %v1254_v20 }
 0x1e9   :  { %v1248_v28 = vadd.f32 %v1247_v24, %v1246_v21  ;;  %v1257_v29 = vrot.slane %v1256_v25, 4 }
 0x1eb   :  { %v1249_v32 = vrot.slane %v1248_v28, 2  ;;  %v1258_v33 = vadd.f32 %v1257_v29, %v1256_v25 }
 0x1ed   :  { %v1250_v37 = vadd.f32 %v1249_v32, %v1248_v28  ;;  %v1259_v38 = vrot.slane %v1258_v33, 2 }
 0x1ef   :  { %v1251_v40 = vrot.slane %v1250_v37, 1  ;;  %v1260_v19 = vadd.f32 %v1259_v38, %v1258_v33 }
 0x1f1   :  { %v1252_v43 = vadd.f32 %v1251_v40, %v1250_v37  ;;  %v1261_v44 = vrot.slane %v1260_v19, 1 }
 0x1f3   :  { %v1253_v45 = vadd.f32 %v1252_v43, %v683_v42  ;;  %v1262_v47 = vadd.f32 %v1261_v44, %v1260_v19 }
 0x1f5   :  { %1296 = vmatmul.f32.vlgmr.msra.gmra.mxu2 %v1253_v45  ;;  %v1263_v48 = vadd.f32 %v1262_v47, %v693_v46 }
 0x1f7   :  { %1316 = vmatmul.f32.vlgmr.msra.gmra.mxu3 %v1263_v48 }
 0x278   :  { %v1297_v56 = vpop.f32.mrf.mxu2 }
 0x279   :  { %v1327_v57 = vmul.f32 %v5535_v54, %v1297_v56  ;;  %v4905_v56 = vld [vmem:[#allocation11 + $0x30] sm:$0xff] }
 0x27a   :  { %v1317_v58 = vpop.f32.mrf.mxu3  ;;  %1588 = vmatpush.bf16.msrb.mxu1 %v4905_v56 }
 0x27b   :  { %v1329_v59 = vmul.f32 %v1327_v57, %v1327_v57  ;;  %v1328_v60 = vmul.f32 %v5535_v54, %v1317_v58  ;;  %v4932_v58 = vld [vmem:[#allocation11 + $0xf8] sm:$0xff] }
 0x27c   :  { %1778 = vmatpush.bf16.msrb.mxu3 %v4932_v58 }
 0x27d   :  { %v1330_v61 = vsub.f32 %v1328_v60, %v1329_v59  ;;  %v4931_v59 = vld [vmem:[#allocation11 + $0xf0] sm:$0xff]  ;;  %v4903_v60 = vld [vmem:[#allocation11 + $0x20] sm:$0xff] }
 0x27f   :  { %v1331_v62 = vmax.f32 %v1330_v61, 0.0  ;;  %v4930_v61 = vld [vmem:[#allocation11 + $0xe8] sm:$0xff] }
 0x280   :  { %1779 = vmatpush.bf16.msrb.mxu3 %v4931_v59 }
 0x281   :  { %v1333_v35 = vadd.f32 1e-05, %v1331_v62  ;;  %v4901_v62 = vld [vmem:[#allocation11 + $0x10] sm:$0xff] }
 0x283   :  { %5128 = vrsqrt.f32 %v1333_v35  ;;  %vm1340_vm15 = vweird.f32 %v1333_v35 }
 0x284   :  { %1780 = vmatpush.bf16.msrb.mxu3 %v4930_v61 }
 0x289   :  { %v5129_v63 = vpop.eup %5128 }
 0x28a   :  { %v1335_v0 = vmul.f32 %v5129_v63, %v1333_v35  ;;  %vm1341_vm14 = vweird.f32 %v5129_v63  ;;  %v4929_v35 = vld [vmem:[#allocation11 + $0xe0] sm:$0xff] }
 0x28b   :  { %vm1342_vm1 = vmor %vm1340_vm15, %vm1341_vm14  ;;  %1781 = vmatpush.bf16.msrb.mxu3 %v4929_v35 }
 0x28c   :  { %v1336_v1 = vmul.f32 %v5129_v63, %v1335_v0  ;;  %vm5561_vm15 = vmand %vm1412_vm10, %vm1413_vm13  ;;  %v4900_v0 = vld [vmem:[#allocation11 + $0x8] sm:$0xff]  ;;  %vm1622_vm10 = vcmask 916480  }
 0x28e   :  { %v1337_v2 = vmul.f32 0.5, %v1336_v1 }
 0x290   :  { %v1338_v3 = vsub.f32 1.5, %v1337_v2  ;;  %v4928_v2 = vld [vmem:[#allocation11 + $0xd8] sm:$0xff] }
 0x291   :  { %1782 = vmatpush.bf16.msrb.mxu3 %v4928_v2 }
 0x292   :  { %v1339_v5 = vmul.f32 %v5129_v63, %v1338_v3  ;;  %v1416_v3 = vld [vmem:[#allocation3 + $0x10] sm:$0x11] }
 0x294   :  { %v1343_v6 = vsel %vm1342_vm1, %v5129_v63, %v1339_v5  ;;  %vm1390_vm1 = vcmask 64512  }
 0x295   :  { %v1344_v7 = vmul.f32 %v1343_v6, %v1332_v4  ;;  %v4899_v6 = vld [vmem:[#allocation11] sm:$0xff] }
 0x297   :  { %v1346_v9 = vmul.f32 %v1344_v7, %v1327_v57  ;;  %v1351_v10 = vperm.slane %v1344_v7, 0  ;;  %v4904_v57 = vld [vmem:[#allocation11 + $0x28] sm:$0xff] }
 0x298   :  { %1589 = vmatpush.bf16.msrb.mxu1 %v4904_v57 }
 0x299   :  { %v1347_v11 = vsub.f32 %v1345_v8, %v1346_v9  ;;  %v1354_v12 = vmul.f32 %v1351_v10, %v5514_v55  ;;  %v1353_v15 = vmul.f32 %v1351_v10, %v5517_v36  ;;  %v2306_v16 = vmul.f32 %v1351_v10, %v5527_v17  ;;  %v4927_v8 = vld [vmem:[#allocation11 + $0xd0] sm:$0xff] }
 0x29a   :  { %v2305_v18 = vmul.f32 %v1351_v10, %v5525_v13  ;;  %1783 = vmatpush.bf16.msrb.mxu3 %v4927_v8 }
 0x29b   :  { %v1356_v14 = vperm.slane %v1347_v11, 0  ;;  %v4926_v11 = vld [vmem:[#allocation11 + $0xc8] sm:$0xff] }
 0x29c   :  { %1590 = vmatpush.bf16.msrb.mxu1 %v4903_v60 }
 0x29d   :  { %v1359_v20 = vadd.f32 %v1356_v14, %v1354_v12  ;;  %v1358_v21 = vadd.f32 %v1356_v14, %v1353_v15  ;;  %v2308_v22 = vadd.f32 %v2306_v16, %v1356_v14  ;;  %v2307_v23 = vadd.f32 %v2305_v18, %v1356_v14  ;;  %v4925_v14 = vld [vmem:[#allocation11 + $0xc0] sm:$0xff] }
 0x29e   :  { %1784 = vmatpush.bf16.msrb.mxu3 %v4926_v11 }
 0x29f   :  { %v1361_v24 = vmax.f32 %v1359_v20, 0.0  ;;  %v1360_v25 = vmax.f32 %v1358_v21, 0.0  ;;  %v2310_v26 = vmax.f32 %v2308_v22, 0.0  ;;  %v2309_v28 = vmax.f32 %v2307_v23, 0.0 }
 0x2a0   :  { %1591 = vmatpush.bf16.msrb.mxu1 %v4902_v31 }
 0x2a1   :  { %v1363_v29 = vpack.c.bf16 %v1361_v24, %v1361_v24  ;;  %v1362_v30 = vpack.c.bf16 %v1360_v25, %v1360_v25  ;;  %v2312_v32 = vpack.c.bf16 %v2310_v26, %v2310_v26  ;;  %v2311_v33 = vpack.c.bf16 %v2309_v28, %v2309_v28  ;;  %v1403_v24 = vld [vmem:[#allocation3] sm:$0xff] }
 0x2a2   :  { %1785 = vmatpush.bf16.msrb.mxu3 %v4925_v14 }
 0x2a3   :  { %v1373_v55 = vshrl.u32 %v1363_v29, 16  ;;  %v1365_v34 = vshrl.u32 %v1362_v30, 16  ;;  %v1368_v37 = vshll.u32 %v1362_v30, 16  ;;  %v1376_v36 = vshll.u32 %v1363_v29, 16 }
 0x2a4   :  { %v2322_v40 = vshrl.u32 %v2312_v32, 16  ;;  %v2314_v13 = vshrl.u32 %v2311_v33, 16  ;;  %v2325_v47 = vshll.u32 %v2312_v32, 16  ;;  %v2317_v48 = vshll.u32 %v2311_v33, 16  ;;  %1592 = vmatpush.bf16.msrb.mxu1 %v4901_v62 }
 0x2a5   :  { %v1375_v38 = vrot.slane %v1373_v55, 7  ;;  %v1367_v17 = vrot.slane %v1365_v34, 7 }
 0x2a6   :  { %v2324_v45 = vrot.slane %v2322_v40, 7  ;;  %v2316_v46 = vrot.slane %v2314_v13, 7 }
 0x2a7   :  { %v1380_v41 = vrot.slane %v1375_v38, 4  ;;  %v1370_v19 = vor.u32 %v1368_v37, %v1367_v17  ;;  %v1371_v42 = vrot.slane %v1367_v17, 4  ;;  %v1378_v43 = vor.u32 %v1376_v36, %v1375_v38 }
 0x2a8   :  { %v2320_v49 = vrot.slane %v2316_v46, 4  ;;  %v2327_v50 = vor.u32 %v2325_v47, %v2324_v45  ;;  %v2329_v51 = vrot.slane %v2324_v45, 4  ;;  %v2319_v52 = vor.u32 %v2317_v48, %v2316_v46  ;;  %1593 = vmatpush.bf16.msrb.mxu1 %v4900_v0 }
 0x2a9   :  { %1385 = vrot.lane.b32.xlu2 %v1380_v41, %s5259_s4  ;;  %1381 = vrot.lane.b32.xlu0 %v1370_v19, %s5259_s4  ;;  %v1379_v44 = vsel %vm5362_vm2, %v1371_v42, %v1378_v43 }
 0x2aa   :  { %1383 = vrot.lane.b32.xlu1 %v1379_v44, %s5259_s4  ;;  %v2328_v27 = vsel %vm5362_vm2, %v2320_v49, %v2327_v50  ;;  %vm1410_vm2 = vcmask 1040448  }
 0x2ab   :  { %vm5557_vm14 = vmand %vm1410_vm2, %vm118_vm0  ;;  %vm1397_vm0 = vcmask 1043520   ;;  %vm1468_vm2 = vcmask 982016  }
 0x2ac   :  { %vm1415_vm3 = vmor %vm5561_vm15, %vm5557_vm14  ;;  %1594 = vmatpush.bf16.msrb.mxu1 %v4899_v6  ;;  %vm3329_vm14 = vcmask 130048   ;;  %vm3521_vm15 = vcmask 519168  }
 0x2ad   :  { %vm5582_vm7 = vmand %vm1397_vm0, %vm148_vm6 }
 0x2ae   :  { %vm1402_vm9 = vmor %vm5586_vm8, %vm5582_vm7 }
 0x2af   :  { %vm5595_vm6 = vmor %vm1399_vm4, %vm1397_vm0 }
 0x2b1   :  { %2334 = vrot.lane.b32.xlu2 %v2329_v51, %s5259_s4  ;;  %2330 = vrot.lane.b32.xlu0 %v2319_v52, %s5259_s4 }
 0x2b2   :  { %2332 = vrot.lane.b32.xlu1 %v2328_v27, %s5259_s4 }
 0x303   :  { %v1386_v1 = vpop.permute.xlu2 %1385 }
 0x304   :  { %v1389_v4 = vrot.slane %v1386_v1, 4 }
 0x306   :  { %v1393_v5 = vsel %vm1390_vm1, %v1389_v4, %v1386_v1 }
 0x307   :  { %v1417_v7 = vsel %vm1415_vm3, %v1393_v5, %v1416_v3 }
 0x308   :  { %1418 = vst [vmem:[#allocation3 + $0x10] sm:$0x11] %v1417_v7 }
 0x30b   :  { %v2335_v9 = vpop.permute.xlu2 %2334 }
 0x30c   :  { %v2338_v10 = vrot.slane %v2335_v9, 4 }
 0x30e   :  { %v2341_v12 = vsel %vm1390_vm1, %v2338_v10, %v2335_v9 }
 0x30f   :  { %v2349_v15 = vld [vmem:[#allocation3 + $0x10] sm:$0x11] }
 0x310   :  { %v1691_v16 = vld [vmem:[#allocation3 + $0x10] sm:$0x1]  ;;  %v2350_v20 = vsel %vm1415_vm3, %v2341_v12, %v2349_v15 }
 0x311   :  { %v1796_v18 = vld [vmem:[#allocation3 + $0x10] sm:$0x11]  ;;  %v1714_v36 = vunpack.c.l.b16 %v1691_v16 }
 0x312   :  { %2351 = vst [vmem:[#allocation3 + $0x10] sm:$0x11] %v2350_v20  ;;  %v1822_v17 = vunpack.c.h.b16 %v1796_v18  ;;  %v1821_v13 = vunpack.c.l.b16 %v1796_v18 }
 0x313   :  { %v1716_v47 = vpack.c.b16 %v1714_v36, %v1714_v36 }
 0x314   :  { %v5616_v56 = vpack.c.b16 %v1822_v17, %v1822_v17  ;;  %v1825_v31 = vpack.c.b16 %v1821_v13, %v1821_v13 }
 0x315   :  { %v1725_v5 = vshll.u32 %v1716_v47, 16  ;;  %v2030_v7 = vrot.slane %v1716_v47, 1 }
 0x316   :  { %v1847_v9 = vshll.u32 %v5616_v56, 16  ;;  %v1835_v11 = vshll.u32 %v1825_v31, 16 }
 0x31b   :  { %v1382_v23 = vpop.permute.xlu0 %1381 }
 0x31c   :  { %v1387_v25 = vrot.slane %v1382_v23, 4  ;;  %v1384_v26 = vpop.permute.xlu1 %1383 }
 0x31d   :  { %v1388_v28 = vrot.slane %v1384_v26, 4 }
 0x31e   :  { %v1391_v29 = vsel %vm1390_vm1, %v1387_v25, %v1382_v23 }
 0x31f   :  { %v1404_v32 = vsel %vm1402_vm9, %v1391_v29, %v1403_v24  ;;  %v1392_v33 = vsel %vm1390_vm1, %v1388_v28, %v1384_v26  ;;  %v1727_v24 = vrot.slane %v1725_v5, 1  ;;  %v1849_v26 = vrot.slane %v1847_v9, 1  ;;  %v4922_v5 = vld [vmem:[#allocation11 + $0xa8] sm:$0xff] }
 0x320   :  { %1405 = vst [vmem:[#allocation3] sm:$0xff] %v1404_v32  ;;  %v1818_v62 = vunpack.c.h.b16 %v1404_v32  ;;  %v1817_v63 = vunpack.c.l.b16 %v1404_v32  ;;  %v1837_v29 = vrot.slane %v1835_v11, 1 }
 0x321   :  { %1409 = vst.msk [vmem:[#allocation3 + $0x8] sm:$0xff] %vm5595_vm6, %v1392_v33 }
 0x323   :  { %v2331_v55 = vpop.permute.xlu0 %2330 }
 0x324   :  { %v2336_v34 = vrot.slane %v2331_v55, 4  ;;  %v2333_v37 = vpop.permute.xlu1 %2332 }
 0x325   :  { %v2337_v38 = vrot.slane %v2333_v37, 4 }
 0x326   :  { %v2339_v40 = vsel %vm1390_vm1, %v2336_v34, %v2331_v55 }
 0x327   :  { %v2008_v41 = vld [vmem:[#allocation3] sm:$0xe]  ;;  %v4907_v42 = vld [vmem:[#allocation3 + $0x4] sm:$0xf]  ;;  %v2340_v43 = vsel %vm1390_vm1, %v2337_v38, %v2333_v37  ;;  %v5614_v49 = vsel %vm1402_vm9, %v2339_v40, %v1404_v32  ;;  %v2121_v38 = vrot.slane %v1825_v31, 1 }
 0x328   :  { %v4094_v19 = vld [vmem:[#allocation3] sm:$0xf]  ;;  %v4908_v44 = vld [vmem:[#allocation3 + $0x4] sm:$0xf0]  ;;  %v4096_v45 = vld [vmem:[#allocation3 + $0x8] sm:$0xf0]  ;;  %v2027_v48 = vunpack.c.l.b16 %v2008_v41 }
 0x329   :  { %v4134_v46 = vld [vmem:[#allocation3] sm:$0xf]  ;;  %v4095_v50 = vor.u32 %v4908_v44, %v4094_v19  ;;  %v4099_v51 = vor.u32 %v4907_v42, %v4096_v45  ;;  %v4898_v52 = vld [vmem:[#allocation3 + $0x4] sm:$0xf0]  ;;  %v2124_v41 = vrot.slane %v5616_v56, 1  ;;  %v2745_v44 = vunpack.c.h.b16 %v5614_v49  ;;  %v4924_v56 = vld [vmem:[#allocation11 + $0xb8] sm:$0xff] }
 0x32a   :  { %v1689_v27 = vld [vmem:[#allocation3] sm:$0xf]  ;;  %v1690_v53 = vld [vmem:[#allocation3 + $0x8] sm:$0xf]  ;;  %v4135_v57 = vor.u32 %v4898_v52, %v4134_v46  ;;  %v2744_v45 = vunpack.c.l.b16 %v5614_v49  ;;  %v2724_v46 = vld [vmem:[#allocation3 + $0x10] sm:$0x11]  ;;  %1673 = vmatpush.bf16.msrb.mxu2 %v4924_v56 }
 0x32b   :  { %v1712_v58 = vunpack.c.l.b16 %v1689_v27  ;;  %v1713_v59 = vunpack.c.l.b16 %v1690_v53  ;;  %v1795_v60 = vld [vmem:[#allocation3 + $0x8] sm:$0xff]  ;;  %v2097_v61 = vld [vmem:[#allocation3] sm:$0xee]  ;;  %1618 = vrot.lane.b32.xlu2 %v4095_v50, %s5260_s5  ;;  %1464 = vrot.lane.b32.xlu0 %v4095_v50, %s5256_s0  ;;  %v4916_v52 = vld [vmem:[#allocation11 + $0x78] sm:$0xff]  ;;  %v2749_v27 = vunpack.c.h.b16 %v2724_v46  ;;  %v2748_v53 = vunpack.c.l.b16 %v2724_v46 }
 0x32c   :  { %v1820_v35 = vunpack.c.h.b16 %v1795_v60  ;;  %2348 = vst.msk [vmem:[#allocation3 + $0x8] sm:$0xff] %vm5595_vm6, %v2340_v43  ;;  %v1819_v39 = vunpack.c.l.b16 %v1795_v60  ;;  %1466 = vrot.lane.b32.xlu1 %v4099_v51, %s5256_s0  ;;  %1595 = vmatmul.bf16.vlgmr.msrb.gmra.mxu1 %v4135_v57  ;;  %v2116_v15 = vunpack.c.l.b16 %v2097_v61  ;;  %v2117_v34 = vunpack.c.h.b16 %v2097_v61  ;;  %v4962_v46 = vld [vmem:[#allocation11 + $0x1e8] sm:$0xff]  ;;  %v4960_v56 = vld [vmem:[#allocation11 + $0x1d8] sm:$0xff] }
 0x32d   :  { %v1715_v0 = vpack.c.b16 %v1713_v59, %v1712_v58  ;;  %2347 = vst [vmem:[#allocation3] sm:$0xff] %v5614_v49  ;;  %v2028_v1 = vpack.c.b16 %v1713_v59, %v2027_v48  ;;  %1519 = vmatpush.bf16.msrb.mxu0 %v4916_v52  ;;  %v4915_v49 = vld [vmem:[#allocation11 + $0x70] sm:$0xff]  ;;  %v4948_v58 = vld [vmem:[#allocation11 + $0x178] sm:$0xff]  ;;  %v4938_v52 = vld [vmem:[#allocation11 + $0x128] sm:$0xff] }
 0x32e   :  { %v1824_v2 = vpack.c.b16 %v1820_v35, %v1818_v62  ;;  %v1823_v3 = vpack.c.b16 %v1819_v39, %v1817_v63  ;;  %v2118_v55 = vpack.c.b16 %v1819_v39, %v2116_v15  ;;  %v2119_v36 = vpack.c.b16 %v1820_v35, %v2117_v34  ;;  %v4923_v62 = vld [vmem:[#allocation11 + $0xb0] sm:$0xff]  ;;  %1992 = vmatpush.bf16.msra.mxu1 %v4948_v58  ;;  %v4954_v58 = vld [vmem:[#allocation11 + $0x1a8] sm:$0xff] }
 0x32f   :  { %v1720_v4 = vshll.u32 %v1715_v0, 16  ;;  %v2029_v6 = vrot.slane %v2028_v1, 1  ;;  %v1718_v12 = vshrl.u32 %v1715_v0, 16  ;;  %v5654_v35 = vpack.c.b16 %v2749_v27, %v2749_v27  ;;  %v4947_v39 = vld [vmem:[#allocation11 + $0x170] sm:$0xff]  ;;  %v4964_v0 = vld [vmem:[#allocation11 + $0x1f8] sm:$0xff]  ;;  %1674 = vmatpush.bf16.msrb.mxu2 %v4923_v62  ;;  %v4958_v62 = vld [vmem:[#allocation11 + $0x1c8] sm:$0xff] }
 0x330   :  { %v1842_v8 = vshll.u32 %v1824_v2, 16  ;;  %v1830_v10 = vshll.u32 %v1823_v3, 16  ;;  %v1840_v18 = vshrl.u32 %v1824_v2, 16  ;;  %v1828_v21 = vshrl.u32 %v1823_v3, 16  ;;  %v4914_v2 = vld [vmem:[#allocation11 + $0x68] sm:$0xff]  ;;  %2180 = vmatpush.bf16.msra.mxu3 %v4964_v0  ;;  %v4919_v34 = vld [vmem:[#allocation11 + $0x90] sm:$0xff] }
 0x331   :  { %v1722_v14 = vrot.slane %v1720_v4, 1  ;;  %v5626_v16 = vsel %vm520_vm12, %v2029_v6, %v2030_v7  ;;  %v2120_v37 = vrot.slane %v2118_v55, 1  ;;  %v2123_v40 = vrot.slane %v2119_v36, 1  ;;  %1520 = vmatpush.bf16.msrb.mxu0 %v4915_v49  ;;  %v4963_v6 = vld [vmem:[#allocation11 + $0x1f0] sm:$0xff]  ;;  %v4941_v49 = vld [vmem:[#allocation11 + $0x140] sm:$0xff]  ;;  %v4934_v0 = vld [vmem:[#allocation11 + $0x108] sm:$0xff] }
 0x332   :  { %v1844_v20 = vrot.slane %v1842_v8, 1  ;;  %v1832_v22 = vrot.slane %v1830_v10, 1  ;;  %v2752_v63 = vpack.c.b16 %v2748_v53, %v2748_v53  ;;  %v2774_v9 = vshll.u32 %v5654_v35, 16  ;;  %1993 = vmatpush.bf16.msra.mxu1 %v4947_v39  ;;  %v4955_v27 = vld [vmem:[#allocation11 + $0x1b0] sm:$0xff]  ;;  %v4942_v53 = vld [vmem:[#allocation11 + $0x148] sm:$0xff]  ;;  %v4952_v39 = vld [vmem:[#allocation11 + $0x198] sm:$0xff] }
 0x333   :  { %v1723_v23 = vor.u32 %v1722_v14, %v1718_v12  ;;  %1620 = vrot.lane.b32.xlu0 %v4099_v51, %s5260_s5  ;;  %v2122_v17 = vsel %vm520_vm12, %v2120_v37, %v2121_v38  ;;  %v5638_v13 = vld [vmem:[#allocation3 + $0x8] sm:$0xff]  ;;  %v2125_v43 = vsel %vm520_vm12, %v2123_v40, %v2124_v41  ;;  %v4946_v12 = vld [vmem:[#allocation11 + $0x168] sm:$0xff]  ;;  %v4913_v14 = vld [vmem:[#allocation11 + $0x60] sm:$0xff]  ;;  %1675 = vmatpush.bf16.msrb.mxu2 %v4922_v5 }
 0x334   :  { %v1845_v25 = vor.u32 %v1844_v20, %v1840_v18  ;;  %v1833_v28 = vor.u32 %v1832_v22, %v1828_v21  ;;  %v2747_v19 = vunpack.c.h.b16 %v5638_v13  ;;  %v2746_v42 = vunpack.c.l.b16 %v5638_v13  ;;  %v4394_v50 = vld [vmem:[#allocation3] sm:$0xf]  ;;  %v4983_v51 = vld [vmem:[#allocation3 + $0x4] sm:$0xf0]  ;;  %v4396_v57 = vld [vmem:[#allocation3 + $0x8] sm:$0xf0]  ;;  %2181 = vmatpush.bf16.msra.mxu3 %v4963_v6 }
 0x335   :  { %v1728_v30 = vsel %vm343_vm11, %v1723_v23, %v1727_v24  ;;  %v4395_v59 = vor.u32 %v4983_v51, %v4394_v50  ;;  %v4982_v60 = vld [vmem:[#allocation3 + $0x4] sm:$0xf]  ;;  %v2762_v11 = vshll.u32 %v2752_v63, 16  ;;  %1521 = vmatpush.bf16.msrb.mxu0 %v4914_v2  ;;  %v4921_v21 = vld [vmem:[#allocation11 + $0xa0] sm:$0xff]  ;;  %v2776_v22 = vrot.slane %v2774_v9, 1  ;;  %v4940_v13 = vld [vmem:[#allocation11 + $0x138] sm:$0xff] }
 0x336   :  { %1786 = vmatmul.bf16.vlgmr.msrb.gmra.mxu3 %v1728_v30  ;;  %v1850_v32 = vsel %vm343_vm11, %v1845_v25, %v1849_v26  ;;  %v1838_v33 = vsel %vm343_vm11, %v1833_v28, %v1837_v29  ;;  %v2751_v47 = vpack.c.b16 %v2747_v19, %v2745_v44  ;;  %v2750_v48 = vpack.c.b16 %v2746_v42, %v2744_v45  ;;  %v3022_v7 = vld [vmem:[#allocation3] sm:$0xee]  ;;  %v4945_v24 = vld [vmem:[#allocation11 + $0x160] sm:$0xff]  ;;  %v4912_v25 = vld [vmem:[#allocation11 + $0x58] sm:$0xff] }
 0x337   :  { %1853 = vrot.lane.b32.xlu2 %v1850_v32, %s5256_s0  ;;  %1851 = vrot.lane.b32.xlu1 %v1838_v33, %s5256_s0  ;;  %v4399_v1 = vor.u32 %v4982_v60, %v4396_v57  ;;  %v3040_v20 = vunpack.c.l.b16 %v3022_v7  ;;  %v2764_v23 = vrot.slane %v2762_v11, 1  ;;  %v4920_v30 = vld [vmem:[#allocation11 + $0x98] sm:$0xff]  ;;  %v3045_v36 = vrot.slane %v2752_v63, 1  ;;  %v4910_v38 = vld [vmem:[#allocation11 + $0x48] sm:$0xff]  ;;  %v4939_v44 = vld [vmem:[#allocation11 + $0x130] sm:$0xff] }
 0x338   :  { %v2769_v31 = vshll.u32 %v2751_v47, 16  ;;  %v2757_v61 = vshll.u32 %v2750_v48, 16  ;;  %v2767_v8 = vshrl.u32 %v2751_v47, 16  ;;  %v2755_v10 = vshrl.u32 %v2750_v48, 16  ;;  %1994 = vmatpush.bf16.msra.mxu1 %v4946_v12  ;;  %1676 = vmatpush.bf16.msrb.mxu2 %v4921_v21  ;;  %v4918_v40 = vld [vmem:[#allocation11 + $0x88] sm:$0xff]  ;;  %v4944_v45 = vld [vmem:[#allocation11 + $0x158] sm:$0xff] }
 0x339   :  { %1522 = vmatpush.bf16.msrb.mxu0 %v4913_v14  ;;  %v3042_v29 = vpack.c.b16 %v2746_v42, %v3040_v20  ;;  %v3048_v42 = vrot.slane %v5654_v35, 1  ;;  %v4917_v47 = vld [vmem:[#allocation11 + $0x80] sm:$0xff]  ;;  %2182 = vmatpush.bf16.msra.mxu3 %v4962_v46  ;;  %v4943_v48 = vld [vmem:[#allocation11 + $0x150] sm:$0xff]  ;;  %v4956_v50 = vld [vmem:[#allocation11 + $0x1b8] sm:$0xff] }
 0x33a   :  { %v2771_v3 = vrot.slane %v2769_v31, 1  ;;  %v2759_v4 = vrot.slane %v2757_v61, 1  ;;  %v4961_v51 = vld [vmem:[#allocation11 + $0x1e0] sm:$0xff]  ;;  %v4959_v60 = vld [vmem:[#allocation11 + $0x1d0] sm:$0xff]  ;;  %v4991_v31 = vld [vmem:[#allocation11 + $0x78] sm:$0xff] }
 0x33b   :  { %1938 = vrot.lane.b32.xlu0 %v1838_v33, %s5260_s5  ;;  %v4911_v33 = vld [vmem:[#allocation11 + $0x50] sm:$0xff]  ;;  %v3044_v55 = vrot.slane %v3042_v29, 1  ;;  %v4937_v57 = vld [vmem:[#allocation11 + $0x120] sm:$0xff]  ;;  %v4999_v2 = vld [vmem:[#allocation11 + $0xb8] sm:$0xff] }
 0x33c   :  { %v2772_v15 = vor.u32 %v2771_v3, %v2767_v8  ;;  %v2760_v18 = vor.u32 %v2759_v4, %v2755_v10  ;;  %1995 = vmatpush.bf16.msra.mxu1 %v4945_v24  ;;  %1677 = vmatpush.bf16.msrb.mxu2 %v4920_v30  ;;  %v4953_v61 = vld [vmem:[#allocation11 + $0x1a0] sm:$0xff]  ;;  %v4935_v35 = vld [vmem:[#allocation11 + $0x110] sm:$0xff]  ;;  %v4989_v3 = vld [vmem:[#allocation11 + $0x68] sm:$0xff] }
 0x33d   :  { %1523 = vmatpush.bf16.msrb.mxu0 %v4912_v25  ;;  %2183 = vmatpush.bf16.msra.mxu3 %v4961_v51  ;;  %v4990_v63 = vld [vmem:[#allocation11 + $0x70] sm:$0xff]  ;;  %v4933_v4 = vld [vmem:[#allocation11 + $0x100] sm:$0xff]  ;;  %v4950_v8 = vld [vmem:[#allocation11 + $0x188] sm:$0xff] }
 0x33e   :  { %v2777_v26 = vsel %vm343_vm11, %v2772_v15, %v2776_v22  ;;  %v2765_v28 = vsel %vm343_vm11, %v2760_v18, %v2764_v23  ;;  %v4951_v5 = vld [vmem:[#allocation11 + $0x190] sm:$0xff]  ;;  %v4988_v6 = vld [vmem:[#allocation11 + $0x60] sm:$0xff]  ;;  %v4987_v9 = vld [vmem:[#allocation11 + $0x58] sm:$0xff] }
 0x33f   :  { %2126 = vrot.lane.b32.xlu2 %v2122_v17, %s5256_s0  ;;  %1940 = vrot.lane.b32.xlu1 %v1850_v32, %s5260_s5  ;;  %v3041_v32 = vunpack.c.h.b16 %v3022_v7  ;;  %v4998_v7 = vld [vmem:[#allocation11 + $0xb0] sm:$0xff]  ;;  %v4997_v10 = vld [vmem:[#allocation11 + $0xa8] sm:$0xff]  ;;  %v4949_v11 = vld [vmem:[#allocation11 + $0x180] sm:$0xff] }
 0x340   :  { %1678 = vmatpush.bf16.msrb.mxu2 %v4919_v34  ;;  %1996 = vmatpush.bf16.msra.mxu1 %v4944_v45  ;;  %v4986_v12 = vld [vmem:[#allocation11 + $0x50] sm:$0xff]  ;;  %v4996_v14 = vld [vmem:[#allocation11 + $0xa0] sm:$0xff]  ;;  %v4985_v15 = vld [vmem:[#allocation11 + $0x48] sm:$0xff] }
 0x341   :  { %v3043_v37 = vpack.c.b16 %v2747_v19, %v3041_v32  ;;  %1524 = vmatpush.bf16.msrb.mxu0 %v4911_v33  ;;  %2184 = vmatpush.bf16.msra.mxu3 %v4960_v56  ;;  %v4995_v18 = vld [vmem:[#allocation11 + $0x98] sm:$0xff]  ;;  %v4984_v20 = vld [vmem:[#allocation11 + $0x40] sm:$0xff]  ;;  %v4994_v21 = vld [vmem:[#allocation11 + $0x90] sm:$0xff] }
 0x342   :  { %v4993_v22 = vld [vmem:[#allocation11 + $0x88] sm:$0xff]  ;;  %v4992_v23 = vld [vmem:[#allocation11 + $0x80] sm:$0xff]  ;;  %v4971_v30 = vld [vmem:[#allocation11 + $0x230] sm:$0xff] }
 0x343   :  { %2128 = vrot.lane.b32.xlu0 %v2125_v43, %s5256_s0  ;;  %v3047_v41 = vrot.slane %v3043_v37, 1  ;;  %v4981_v32 = vld [vmem:[#allocation11 + $0x38] sm:$0xff]  ;;  %v5013_v56 = vld [vmem:[#allocation11 + $0x128] sm:$0xff] }
 0x344   :  { %1679 = vmatpush.bf16.msrb.mxu2 %v4918_v40  ;;  %1997 = vmatpush.bf16.msra.mxu1 %v4943_v48  ;;  %v4979_v40 = vld [vmem:[#allocation11 + $0x28] sm:$0xff]  ;;  %v5014_v48 = vld [vmem:[#allocation11 + $0x130] sm:$0xff] }
 0x345   :  { %1525 = vmatpush.bf16.msrb.mxu0 %v4910_v38  ;;  %v3049_v19 = vsel %vm520_vm12, %v3047_v41, %v3048_v42  ;;  %2185 = vmatpush.bf16.msra.mxu3 %v4959_v60  ;;  %v4980_v38 = vld [vmem:[#allocation11 + $0x30] sm:$0xff]  ;;  %v4968_v42 = vld [vmem:[#allocation11 + $0x218] sm:$0xff] }
 0x346   :  { %v5007_v60 = vld [vmem:[#allocation11 + $0xf8] sm:$0xff] }
 0x347   :  { %2215 = vrot.lane.b32.xlu2 %v2125_v43, %s5260_s5  ;;  %2213 = vrot.lane.b32.xlu1 %v2122_v17, %s5260_s5  ;;  %v3046_v17 = vsel %vm520_vm12, %v3044_v55, %v3045_v36  ;;  %v4909_v43 = vld [vmem:[#allocation11 + $0x40] sm:$0xff]  ;;  %v4970_v55 = vld [vmem:[#allocation11 + $0x228] sm:$0xff] }
 0x348   :  { %1680 = vmatpush.bf16.msrb.mxu2 %v4917_v47  ;;  %1998 = vmatpush.bf16.msra.mxu1 %v4942_v53  ;;  %v4967_v47 = vld [vmem:[#allocation11 + $0x210] sm:$0xff] }
 0x349   :  { %1526 = vmatpush.bf16.msrb.mxu0 %v4909_v43  ;;  %2186 = vmatpush.bf16.msra.mxu3 %v4958_v62  ;;  %v4975_v62 = vld [vmem:[#allocation11 + $0x8] sm:$0xff] }
 0x34b   :  { %2396 = vrot.lane.b32.xlu0 %v4395_v59, %s5256_s0 }
 0x34c   :  { %2081 = vmatpush.bf16.msra.mxu2 %v4956_v50  ;;  %1999 = vmatpush.bf16.msra.mxu1 %v4941_v49  ;;  %v4977_v50 = vld [vmem:[#allocation11 + $0x18] sm:$0xff]  ;;  %v4976_v49 = vld [vmem:[#allocation11 + $0x10] sm:$0xff] }
 0x34d   :  { %1905 = vmatpush.bf16.msra.mxu0 %v4940_v13  ;;  %v5015_v13 = vld [vmem:[#allocation11 + $0x138] sm:$0xff] }
 0x34f   :  { %2548 = vrot.lane.b32.xlu2 %v4395_v59, %s5260_s5  ;;  %2398 = vrot.lane.b32.xlu1 %v4399_v1, %s5256_s0  ;;  %v4936_v59 = vld [vmem:[#allocation11 + $0x118] sm:$0xff] }
 0x350   :  { %2082 = vmatpush.bf16.msra.mxu2 %v4955_v27  ;;  %2450 = vmatpush.bf16.msrb.mxu1 %v4991_v31  ;;  %v5031_v27 = vld [vmem:[#allocation11 + $0x1b8] sm:$0xff] }
 0x351   :  { %1906 = vmatpush.bf16.msra.mxu0 %v4939_v44  ;;  %v4978_v44 = vld [vmem:[#allocation11 + $0x20] sm:$0xff] }
 0x353   :  { %2550 = vrot.lane.b32.xlu0 %v4399_v1, %s5260_s5  ;;  %v4957_v1 = vld [vmem:[#allocation11 + $0x1c0] sm:$0xff] }
 0x354   :  { %2083 = vmatpush.bf16.msra.mxu2 %v4954_v58  ;;  %2451 = vmatpush.bf16.msrb.mxu1 %v4990_v63  ;;  %v4965_v58 = vld [vmem:[#allocation11 + $0x200] sm:$0xff]  ;;  %v5029_v63 = vld [vmem:[#allocation11 + $0x1a8] sm:$0xff] }
 0x355   :  { %1907 = vmatpush.bf16.msra.mxu0 %v4938_v52  ;;  %2187 = vmatpush.bf16.msra.mxu3 %v4957_v1  ;;  %v4966_v52 = vld [vmem:[#allocation11 + $0x208] sm:$0xff] }
 0x357   :  { %2780 = vrot.lane.b32.xlu2 %v2777_v26, %s5256_s0  ;;  %2778 = vrot.lane.b32.xlu1 %v2765_v28, %s5256_s0 }
 0x358   :  { %2084 = vmatpush.bf16.msra.mxu2 %v4953_v61  ;;  %2452 = vmatpush.bf16.msrb.mxu1 %v4989_v3  ;;  %v5012_v61 = vld [vmem:[#allocation11 + $0x120] sm:$0xff] }
 0x359   :  { %1908 = vmatpush.bf16.msra.mxu0 %v4937_v57  ;;  %2602 = vmatpush.bf16.msrb.mxu3 %v4999_v2  ;;  %v4974_v2 = vld [vmem:[#allocation11] sm:$0xff] }
 0x35b   :  { %2864 = vrot.lane.b32.xlu0 %v2765_v28, %s5260_s5 }
 0x35c   :  { %2085 = vmatpush.bf16.msra.mxu2 %v4952_v39  ;;  %2453 = vmatpush.bf16.msrb.mxu1 %v4988_v6  ;;  %v5005_v6 = vld [vmem:[#allocation11 + $0xe8] sm:$0xff] }
 0x35d   :  { %1909 = vmatpush.bf16.msra.mxu0 %v4936_v59  ;;  %2603 = vmatpush.bf16.msrb.mxu3 %v4998_v7  ;;  %v5030_v59 = vld [vmem:[#allocation11 + $0x1b0] sm:$0xff]  ;;  %v4434_v7 = vld [vmem:[#allocation3] sm:$0xf] }
 0x35f   :  { %3050 = vrot.lane.b32.xlu2 %v3046_v17, %s5256_s0  ;;  %2866 = vrot.lane.b32.xlu1 %v2777_v26, %s5260_s5  ;;  %v4972_v26 = vld [vmem:[#allocation11 + $0x238] sm:$0xff] }
 0x360   :  { %2086 = vmatpush.bf16.msra.mxu2 %v4951_v5  ;;  %2454 = vmatpush.bf16.msrb.mxu1 %v4987_v9  ;;  %v5028_v5 = vld [vmem:[#allocation11 + $0x1a0] sm:$0xff]  ;;  %v5010_v9 = vld [vmem:[#allocation11 + $0x110] sm:$0xff] }
 0x361   :  { %1910 = vmatpush.bf16.msra.mxu0 %v4935_v35  ;;  %2604 = vmatpush.bf16.msrb.mxu3 %v4997_v10  ;;  %v2619_v10 = vld [vmem:[#allocation3 + $0x8] sm:$0xf] }
 0x363   :  { %3052 = vrot.lane.b32.xlu0 %v3049_v19, %s5256_s0 }
 0x364   :  { %2087 = vmatpush.bf16.msra.mxu2 %v4950_v8  ;;  %2455 = vmatpush.bf16.msrb.mxu1 %v4986_v12  ;;  %v4973_v8 = vld [vmem:[#allocation3 + $0x4] sm:$0xf0] }
 0x365   :  { %1911 = vmatpush.bf16.msra.mxu0 %v4934_v0  ;;  %2605 = vmatpush.bf16.msrb.mxu3 %v4996_v14  ;;  %v5011_v0 = vld [vmem:[#allocation11 + $0x118] sm:$0xff]  ;;  %v4435_v14 = vor.u32 %v4973_v8, %v4434_v7  ;;  %v5041_v7 = vld [vmem:[#allocation11 + $0x208] sm:$0xff] }
 0x366   :  { %v5035_v8 = vld [vmem:[#allocation11 + $0x1d8] sm:$0xff] }
 0x367   :  { %3138 = vrot.lane.b32.xlu2 %v3049_v19, %s5260_s5  ;;  %3136 = vrot.lane.b32.xlu1 %v3046_v17, %s5260_s5  ;;  %v4969_v17 = vld [vmem:[#allocation11 + $0x220] sm:$0xff] }
 0x368   :  { %2088 = vmatpush.bf16.msra.mxu2 %v4949_v11  ;;  %2456 = vmatpush.bf16.msrb.mxu1 %v4985_v15  ;;  %v5022_v15 = vld [vmem:[#allocation11 + $0x170] sm:$0xff] }
 0x369   :  { %1912 = vmatpush.bf16.msra.mxu0 %v4933_v4  ;;  %2606 = vmatpush.bf16.msrb.mxu3 %v4995_v18  ;;  %v5023_v4 = vld [vmem:[#allocation11 + $0x178] sm:$0xff] }
 0x36a   :  { %v5027_v18 = vld [vmem:[#allocation11 + $0x198] sm:$0xff] }
 0x36c   :  { %2457 = vmatpush.bf16.msrb.mxu1 %v4984_v20  ;;  %v2618_v20 = vld [vmem:[#allocation3] sm:$0xf] }
 0x36d   :  { %2607 = vmatpush.bf16.msrb.mxu3 %v4994_v21 }
 0x371   :  { %2608 = vmatpush.bf16.msrb.mxu3 %v4993_v22  ;;  %v5004_v22 = vld [vmem:[#allocation11 + $0xe0] sm:$0xff] }
 0x375   :  { %2609 = vmatpush.bf16.msrb.mxu3 %v4992_v23  ;;  %v5009_v23 = vld [vmem:[#allocation11 + $0x108] sm:$0xff] }
 0x385   :  { %v1619_v24 = vpop.permute.xlu2 %1618 }
 0x391   :  { %v1854_v37 = vpop.permute.xlu2 %1853 }
 0x399   :  { %v2127_v45 = vpop.permute.xlu2 %2126 }
 0x39d   :  { %v1465_v25 = vpop.permute.xlu0 %1464 }
 0x39e   :  { %v1467_v28 = vpop.permute.xlu1 %1466 }
 0x39f   :  { %v1469_v29 = vsel %vm1468_vm2, %v1465_v25, %v1467_v28  ;;  %v2934_v25 = vld [vmem:[#allocation3] sm:$0xe] }
 0x3a0   :  { %1527 = vmatmul.bf16.vlgmr.msrb.gmra.mxu0 %v1469_v29  ;;  %v5021_v28 = vld [vmem:[#allocation11 + $0x168] sm:$0xff]  ;;  %v5026_v29 = vld [vmem:[#allocation11 + $0x190] sm:$0xff] }
 0x3a1   :  { %2267 = vmatpush.bf16.msrb.mxu0 %v4972_v26  ;;  %v2216_v31 = vpop.permute.xlu2 %2215  ;;  %v2640_v26 = vunpack.c.l.b16 %v2618_v20 }
 0x3a5   :  { %2268 = vmatpush.bf16.msrb.mxu0 %v4971_v30  ;;  %v1621_v33 = vpop.permute.xlu0 %1620  ;;  %v5003_v30 = vld [vmem:[#allocation11 + $0xd8] sm:$0xff] }
 0x3a6   :  { %v1623_v34 = vsel %vm1622_vm10, %v1619_v24, %v1621_v33  ;;  %v2641_v24 = vunpack.c.l.b16 %v2619_v10  ;;  %v5008_v33 = vld [vmem:[#allocation11 + $0x100] sm:$0xff] }
 0x3a7   :  { %1681 = vmatmul.bf16.vlgmr.msrb.gmra.mxu2 %v1623_v34  ;;  %v5047_v34 = vld [vmem:[#allocation11 + $0x238] sm:$0xff] }
 0x3a8   :  { %2518 = vmatpush.bf16.msrb.mxu2 %v4981_v32  ;;  %v2620_v32 = vld [vmem:[#allocation3 + $0x10] sm:$0x1] }
 0x3a9   :  { %v1852_v36 = vpop.permute.xlu1 %1851  ;;  %2269 = vmatpush.bf16.msrb.mxu0 %v4970_v55  ;;  %v2549_v11 = vpop.permute.xlu2 %2548  ;;  %v2952_v55 = vunpack.c.l.b16 %v2934_v25 }
 0x3aa   :  { %v1855_v43 = vsel %vm1468_vm2, %v1852_v36, %v1854_v37  ;;  %v2643_v37 = vpack.c.b16 %v2641_v24, %v2640_v26  ;;  %v5020_v36 = vld [vmem:[#allocation11 + $0x160] sm:$0xff] }
 0x3ac   :  { %2519 = vmatpush.bf16.msrb.mxu2 %v4980_v38  ;;  %v5025_v38 = vld [vmem:[#allocation11 + $0x188] sm:$0xff] }
 0x3ad   :  { %2270 = vmatpush.bf16.msrb.mxu0 %v4969_v17  ;;  %v1939_v41 = vpop.permute.xlu0 %1938  ;;  %v2642_v17 = vunpack.c.l.b16 %v2620_v32 }
 0x3b0   :  { %1913 = vmatmul.bf16.vlgmr.msra.gmra.mxu0 %v1855_v43  ;;  %2520 = vmatpush.bf16.msrb.mxu2 %v4979_v40 }
 0x3b1   :  { %v1941_v19 = vpop.permute.xlu1 %1940  ;;  %2271 = vmatpush.bf16.msrb.mxu0 %v4968_v42  ;;  %v2953_v42 = vpack.c.b16 %v2641_v24, %v2952_v55  ;;  %v2781_v43 = vpop.permute.xlu2 %2780 }
 0x3b2   :  { %v1942_v46 = vsel %vm1622_vm10, %v1939_v41, %v1941_v19  ;;  %v5002_v41 = vld [vmem:[#allocation11 + $0xd0] sm:$0xff]  ;;  %v2648_v19 = vshll.u32 %v2643_v37, 16 }
 0x3b3   :  { %2000 = vmatmul.bf16.vlgmr.msra.gmra.mxu1 %v1942_v46  ;;  %v5024_v46 = vld [vmem:[#allocation11 + $0x180] sm:$0xff] }
 0x3b4   :  { %2832 = vmatpush.bf16.msra.mxu1 %v5015_v13  ;;  %2521 = vmatpush.bf16.msrb.mxu2 %v4978_v44  ;;  %v5046_v13 = vld [vmem:[#allocation11 + $0x230] sm:$0xff] }
 0x3b5   :  { %2272 = vmatpush.bf16.msrb.mxu0 %v4967_v47  ;;  %v2129_v51 = vpop.permute.xlu0 %2128  ;;  %v2644_v47 = vpack.c.b16 %v2642_v17, %v2642_v17 }
 0x3b6   :  { %v2130_v53 = vsel %vm1468_vm2, %v2127_v45, %v2129_v51  ;;  %v5019_v45 = vld [vmem:[#allocation11 + $0x158] sm:$0xff]  ;;  %v5045_v51 = vld [vmem:[#allocation11 + $0x228] sm:$0xff] }
 0x3b7   :  { %2089 = vmatmul.bf16.vlgmr.msra.gmra.mxu2 %v5626_v16  ;;  %2188 = vmatmul.bf16.vlgmr.msra.gmra.mxu3 %v2130_v53  ;;  %v5006_v16 = vld [vmem:[#allocation11 + $0xf0] sm:$0xff] }
 0x3b8   :  { %2833 = vmatpush.bf16.msra.mxu1 %v5014_v48  ;;  %2522 = vmatpush.bf16.msrb.mxu2 %v4977_v50  ;;  %v5001_v48 = vld [vmem:[#allocation11 + $0xc8] sm:$0xff]  ;;  %v2954_v50 = vrot.slane %v2953_v42, 1  ;;  %v5018_v53 = vld [vmem:[#allocation11 + $0x150] sm:$0xff] }
 0x3b9   :  { %v2214_v57 = vpop.permute.xlu1 %2213  ;;  %2273 = vmatpush.bf16.msrb.mxu0 %v4966_v52  ;;  %3006 = vmatpush.bf16.msra.mxu3 %v5031_v27  ;;  %v2650_v52 = vrot.slane %v2648_v19, 1  ;;  %v2955_v27 = vrot.slane %v2644_v47, 1 }
 0x3ba   :  { %v2217_v39 = vsel %vm1622_vm10, %v2214_v57, %v2216_v31  ;;  %v2646_v57 = vshrl.u32 %v2643_v37, 16 }
 0x3bc   :  { %2834 = vmatpush.bf16.msra.mxu1 %v5013_v56  ;;  %2523 = vmatpush.bf16.msrb.mxu2 %v4976_v49  ;;  %v5000_v56 = vld [vmem:[#allocation11 + $0xc0] sm:$0xff]  ;;  %v2653_v49 = vshll.u32 %v2644_v47, 16  ;;  %v2651_v31 = vor.u32 %v2650_v52, %v2646_v57  ;;  %v3237_v57 = vld [vmem:[%s5894_s8 + $0x50] sm:$0xff] }
 0x3bd   :  { %2274 = vmatpush.bf16.msrb.mxu0 %v4965_v58  ;;  %3007 = vmatpush.bf16.msra.mxu3 %v5030_v59  ;;  %v2397_v35 = vpop.permute.xlu0 %2396  ;;  %v2956_v58 = vsel %vm520_vm12, %v2954_v50, %v2955_v27  ;;  %v5039_v59 = vld [vmem:[#allocation11 + $0x1f8] sm:$0xff]  ;;  %v3240_v47 = vld [vmem:[%s5894_s8 + $0x68] sm:$0xff] }
 0x3be   :  { %v3239_v50 = vld [vmem:[%s5894_s8 + $0x60] sm:$0xff]  ;;  %v3238_v27 = vld [vmem:[%s5894_s8 + $0x58] sm:$0xff] }
 0x3c0   :  { %2835 = vmatpush.bf16.msra.mxu1 %v5012_v61  ;;  %2275 = vmatmul.bf16.vlgmr.msrb.gmra.mxu0 %v2217_v39  ;;  %v5017_v61 = vld [vmem:[#allocation11 + $0x148] sm:$0xff]  ;;  %v5016_v39 = vld [vmem:[#allocation11 + $0x140] sm:$0xff] }
 0x3c1   :  { %2706 = vmatpush.bf16.msra.mxu0 %v5007_v60  ;;  %v2399_v1 = vpop.permute.xlu1 %2398  ;;  %2524 = vmatpush.bf16.msrb.mxu2 %v4975_v62  ;;  %v5044_v60 = vld [vmem:[#allocation11 + $0x220] sm:$0xff]  ;;  %v2655_v62 = vrot.slane %v2653_v49, 1 }
 0x3c2   :  { %v2400_v3 = vsel %vm1468_vm2, %v2397_v35, %v2399_v1  ;;  %3008 = vmatpush.bf16.msra.mxu3 %v5029_v63  ;;  %v5038_v35 = vld [vmem:[#allocation11 + $0x1f0] sm:$0xff] }
 0x3c3   :  { %2458 = vmatmul.bf16.vlgmr.msrb.gmra.mxu1 %v2400_v3  ;;  %v2656_v63 = vsel %vm343_vm11, %v2651_v31, %v2655_v62  ;;  %v5042_v3 = vld [vmem:[#allocation11 + $0x210] sm:$0xff]  ;;  %v3236_v31 = vld [vmem:[%s5894_s8 + $0x48] sm:$0xff]  ;;  %v3235_v62 = vld [vmem:[%s5894_s8 + $0x40] sm:$0xff] }
 0x3c4   :  { %2836 = vmatpush.bf16.msra.mxu1 %v5011_v0  ;;  %v5037_v0 = vld [vmem:[#allocation11 + $0x1e8] sm:$0xff] }
 0x3c5   :  { %2707 = vmatpush.bf16.msra.mxu0 %v5006_v16  ;;  %2525 = vmatpush.bf16.msrb.mxu2 %v4974_v2  ;;  %v2551_v12 = vpop.permute.xlu0 %2550  ;;  %v5043_v16 = vld [vmem:[#allocation11 + $0x218] sm:$0xff] }
 0x3c6   :  { %3009 = vmatpush.bf16.msra.mxu3 %v5028_v5  ;;  %v2552_v21 = vsel %vm1622_vm10, %v2549_v11, %v2551_v12  ;;  %v5034_v11 = vld [vmem:[#allocation11 + $0x1d0] sm:$0xff] }
 0x3c7   :  { %2610 = vmatmul.bf16.vlgmr.msrb.gmra.mxu3 %v2552_v21 }
 0x3c8   :  { %2837 = vmatpush.bf16.msra.mxu1 %v5010_v9  ;;  %2526 = vmatmul.bf16.vlgmr.msrb.gmra.mxu2 %v4435_v14  ;;  %v5040_v9 = vld [vmem:[#allocation11 + $0x200] sm:$0xff] }
 0x3c9   :  { %2918 = vmatpush.bf16.msra.mxu2 %v5023_v4  ;;  %2708 = vmatpush.bf16.msra.mxu0 %v5005_v6  ;;  %v2779_v40 = vpop.permute.xlu1 %2778  ;;  %v3051_v4 = vpop.permute.xlu2 %3050  ;;  %v5036_v6 = vld [vmem:[#allocation11 + $0x1e0] sm:$0xff] }
 0x3ca   :  { %3010 = vmatpush.bf16.msra.mxu3 %v5027_v18  ;;  %v2782_v44 = vsel %vm1468_vm2, %v2779_v40, %v2781_v43  ;;  %v5032_v18 = vld [vmem:[#allocation11 + $0x1c0] sm:$0xff] }
 0x3cc   :  { %2838 = vmatpush.bf16.msra.mxu1 %v5009_v23 }
 0x3cd   :  { %2919 = vmatpush.bf16.msra.mxu2 %v5022_v15  ;;  %2709 = vmatpush.bf16.msra.mxu0 %v5004_v22  ;;  %v2865_v1 = vpop.permute.xlu0 %2864  ;;  %v5033_v15 = vld [vmem:[#allocation11 + $0x1c8] sm:$0xff]  ;;  %v1596_v22 = vpop.f32.mrf.mxu1 }
 0x3ce   :  { %3011 = vmatpush.bf16.msra.mxu3 %v5026_v29 }
 0x3d0   :  { %2839 = vmatpush.bf16.msra.mxu1 %v5008_v33 }
 0x3d1   :  { %2920 = vmatpush.bf16.msra.mxu2 %v5021_v28  ;;  %2710 = vmatpush.bf16.msra.mxu0 %v5003_v30  ;;  %v2867_v2 = vpop.permute.xlu1 %2866  ;;  %v3139_v12 = vpop.permute.xlu2 %3138 }
 0x3d2   :  { %3012 = vmatpush.bf16.msra.mxu3 %v5025_v38  ;;  %v2868_v5 = vsel %vm1622_vm10, %v2865_v1, %v2867_v2  ;;  %v1787_v28 = vpop.f32.mrf.mxu3  ;;  %v3233_v2 = vld [vmem:[%s5894_s8 + $0x30] sm:$0xff] }
 0x3d3   :  { %2840 = vmatmul.bf16.vlgmr.msra.gmra.mxu1 %v2782_v44  ;;  %v3241_v44 = vld [vmem:[%s5894_s8 + $0x70] sm:$0xff] }
 0x3d4   :  { %3190 = vmatpush.bf16.msrb.mxu1 %v5047_v34 }
 0x3d5   :  { %2921 = vmatpush.bf16.msra.mxu2 %v5020_v36  ;;  %2711 = vmatpush.bf16.msra.mxu0 %v5002_v41  ;;  %v3053_v20 = vpop.permute.xlu0 %3052  ;;  %v1598_v25 = vpop.f32.mrf.mxu1  ;;  %v3242_v41 = vld [vmem:[%s5894_s8 + $0x78] sm:$0xff] }
 0x3d6   :  { %3013 = vmatpush.bf16.msra.mxu3 %v5024_v46  ;;  %v3054_v21 = vsel %vm1468_vm2, %v3051_v4, %v3053_v20  ;;  %v3232_v4 = vld [vmem:[%s5894_s8 + $0x28] sm:$0xff] }
 0x3d8   :  { %3191 = vmatpush.bf16.msrb.mxu1 %v5046_v13 }
 0x3d9   :  { %2922 = vmatpush.bf16.msra.mxu2 %v5019_v45  ;;  %2712 = vmatpush.bf16.msra.mxu0 %v5001_v48  ;;  %v3137_v10 = vpop.permute.xlu1 %3136 }
 0x3da   :  { %3014 = vmatmul.bf16.vlgmr.msra.gmra.mxu3 %v2956_v58  ;;  %v3140_v14 = vsel %vm1622_vm10, %v3137_v10, %v3139_v12  ;;  %v1789_v33 = vpop.f32.mrf.mxu3  ;;  %v3230_v12 = vld [vmem:[%s5894_s8 + $0x18] sm:$0xff] }
 0x3db   :  { %3263 = vmatpush.msrb.mxu3 %v3242_v41 }
 0x3dc   :  { %3192 = vmatpush.bf16.msrb.mxu1 %v5045_v51 }
 0x3dd   :  { %2923 = vmatpush.bf16.msra.mxu2 %v5018_v53  ;;  %2713 = vmatpush.bf16.msra.mxu0 %v5000_v56 }
 0x3de   :  { %3264 = vmatpush.msrb.mxu3 %v3241_v44 }
 0x3e0   :  { %3193 = vmatpush.bf16.msrb.mxu1 %v5044_v60  ;;  %2714 = vmatmul.bf16.vlgmr.msra.gmra.mxu0 %v2656_v63 }
 0x3e1   :  { %3104 = vmatpush.bf16.msrb.mxu0 %v5039_v59  ;;  %2924 = vmatpush.bf16.msra.mxu2 %v5017_v61 }
 0x3e2   :  { %3265 = vmatpush.msrb.mxu3 %v3240_v47 }
 0x3e4   :  { %3194 = vmatpush.bf16.msrb.mxu1 %v5043_v16  ;;  %3266 = vmatpush.msrb.mxu3 %v3239_v50  ;;  %v3234_v16 = vld [vmem:[%s5894_s8 + $0x38] sm:$0xff] }
 0x3e5   :  { %3105 = vmatpush.bf16.msrb.mxu0 %v5038_v35  ;;  %2925 = vmatpush.bf16.msra.mxu2 %v5016_v39 }
 0x3e6   :  { %3267 = vmatpush.msrb.mxu3 %v3238_v27 }
 0x3e8   :  { %3195 = vmatpush.bf16.msrb.mxu1 %v5042_v3  ;;  %2926 = vmatmul.bf16.vlgmr.msra.gmra.mxu2 %v2868_v5 }
 0x3e9   :  { %3106 = vmatpush.bf16.msrb.mxu0 %v5037_v0  ;;  %3243 = vmatpush.msrb.mxu2 %v3242_v41 }
 0x3ea   :  { %3268 = vmatpush.msrb.mxu3 %v3237_v57 }
 0x3eb   :  { %3244 = vmatpush.msrb.mxu2 %v3241_v44 }
 0x3ec   :  { %3196 = vmatpush.bf16.msrb.mxu1 %v5041_v7  ;;  %3269 = vmatpush.msrb.mxu3 %v3236_v31 }
 0x3ed   :  { %3107 = vmatpush.bf16.msrb.mxu0 %v5036_v6  ;;  %3245 = vmatpush.msrb.mxu2 %v3240_v47  ;;  %v3231_v6 = vld [vmem:[%s5894_s8 + $0x20] sm:$0xff] }
 0x3ee   :  { %3270 = vmatpush.msrb.mxu3 %v3235_v62 }
 0x3ef   :  { %3246 = vmatpush.msrb.mxu2 %v3239_v50 }
 0x3f0   :  { %3197 = vmatpush.bf16.msrb.mxu1 %v5040_v9  ;;  %3271 = vmatpush.msrb.mxu3 %v3234_v16 }
 0x3f1   :  { %3108 = vmatpush.bf16.msrb.mxu0 %v5035_v8  ;;  %3247 = vmatpush.msrb.mxu2 %v3238_v27 }
 0x3f2   :  { %3272 = vmatpush.msrb.mxu3 %v3233_v2 }
 0x3f3   :  { %3198 = vmatmul.bf16.vlgmr.msrb.gmra.mxu1 %v3140_v14  ;;  %3248 = vmatpush.msrb.mxu2 %v3237_v57 }
 0x3f4   :  { %3273 = vmatpush.msrb.mxu3 %v3232_v4 }
 0x3f5   :  { %3109 = vmatpush.bf16.msrb.mxu0 %v5034_v11  ;;  %3249 = vmatpush.msrb.mxu2 %v3236_v31 }
 0x3f6   :  { %3274 = vmatpush.msrb.mxu3 %v3231_v6 }
 0x3f7   :  { %3250 = vmatpush.msrb.mxu2 %v3235_v62 }
 0x3f8   :  { %3275 = vmatpush.msrb.mxu3 %v3230_v12 }
 0x3f9   :  { %3110 = vmatpush.bf16.msrb.mxu0 %v5033_v15  ;;  %3251 = vmatpush.msrb.mxu2 %v3234_v16 }
 0x3fb   :  { %3252 = vmatpush.msrb.mxu2 %v3233_v2 }
 0x3fd   :  { %3111 = vmatpush.bf16.msrb.mxu0 %v5032_v18  ;;  %3253 = vmatpush.msrb.mxu2 %v3232_v4  ;;  %v3229_v18 = vld [vmem:[%s5894_s8 + $0x10] sm:$0xff] }
 0x3fe   :  { %3276 = vmatpush.msrb.mxu3 %v3229_v18 }
 0x3ff   :  { %3254 = vmatpush.msrb.mxu2 %v3231_v6 }
 0x400   :  { %3112 = vmatmul.bf16.vlgmr.msrb.gmra.mxu0 %v3054_v21 }
 0x401   :  { %3255 = vmatpush.msrb.mxu2 %v3230_v12 }
 0x403   :  { %3256 = vmatpush.msrb.mxu2 %v3229_v18 }
 0x41d   :  { %v1528_v23 = vpop.f32.mrf.mxu0 }
 0x41e   :  { %v1597_v45 = vadd.f32 %v1596_v22, %v1528_v23  ;;  %v3228_v23 = vld [vmem:[%s5894_s8 + $0x8] sm:$0xff] }
 0x41f   :  { %3257 = vmatpush.msrb.mxu2 %v3228_v23  ;;  %3277 = vmatpush.msrb.mxu3 %v3228_v23 }
 0x425   :  { %v1530_v26 = vpop.f32.mrf.mxu0 }
 0x426   :  { %v1599_v43 = vadd.f32 %v1598_v25, %v1530_v26 }
 0x42a   :  { %v1682_v24 = vpop.f32.mrf.mxu2 }
 0x42b   :  { %v1687_v51 = vadd.f32 %v1682_v24, %v1597_v45 }
 0x42d   :  { %v1914_v32 = vpop.f32.mrf.mxu0  ;;  %v1792_v56 = vadd.f32 %v1787_v28, %v1687_v51  ;;  %v3227_v28 = vld [vmem:[%s5894_s8] sm:$0xff] }
 0x42e   :  { %3258 = vmatpush.msrb.mxu2 %v3227_v28  ;;  %3278 = vmatpush.msrb.mxu3 %v3227_v28 }
 0x42f   :  { %v1919_v61 = vadd.f32 %v1914_v32, %v1792_v56 }
 0x430   :  { %v2001_v29 = vpop.f32.mrf.mxu1 }
 0x431   :  { %v2006_v39 = vadd.f32 %v2001_v29, %v1919_v61 }
 0x432   :  { %v1684_v30 = vpop.f32.mrf.mxu2 }
 0x433   :  { %v1688_v46 = vadd.f32 %v1684_v30, %v1599_v43 }
 0x435   :  { %v1916_v37 = vpop.f32.mrf.mxu0  ;;  %v1793_v53 = vadd.f32 %v1789_v33, %v1688_v46 }
 0x437   :  { %v1920_v49 = vadd.f32 %v1916_v37, %v1793_v53 }
 0x438   :  { %v2003_v55 = vpop.f32.mrf.mxu1 }
 0x439   :  { %v2007_v35 = vadd.f32 %v2003_v55, %v1920_v49 }
 0x43a   :  { %v2090_v34 = vpop.f32.mrf.mxu2  ;;  %v5692_v36 = vpop.f32.mrf.mxu3 }
 0x43b   :  { %v2095_v3 = vadd.f32 %v2090_v34, %v2006_v39 }
 0x43d   :  { %v5694_v40 = vpop.f32.mrf.mxu0  ;;  %v2194_v14 = vadd.f32 %v5692_v36, %v2095_v3 }
 0x43f   :  { %v5745_v24 = vadd.f32 %v5694_v40, %v2194_v14 }
 0x440   :  { %v2459_v38 = vpop.f32.mrf.mxu1 }
 0x441   :  { %v2293_v34 = vmul.f32 %v5745_v24, %v5745_v24 }
 0x442   :  { %v2092_v17 = vpop.f32.mrf.mxu2  ;;  %v2191_v42 = vpop.f32.mrf.mxu3 }
 0x443   :  { %v2096_v0 = vadd.f32 %v2092_v17, %v2007_v35 }
 0x445   :  { %v2278_v48 = vpop.f32.mrf.mxu0  ;;  %v2195_v7 = vadd.f32 %v2191_v42, %v2096_v0 }
 0x447   :  { %v5739_v20 = vadd.f32 %v2278_v48, %v2195_v7 }
 0x448   :  { %v2461_v13 = vpop.f32.mrf.mxu1 }
 0x449   :  { %v2294_v29 = vmul.f32 %v5739_v20, %v5739_v20  ;;  %v2285_v37 = vadd.f32 %v5739_v20, %v5745_v24 }
 0x44a   :  { %v2611_v52 = vpop.f32.mrf.mxu3 }
 0x44b   :  { %v2527_v19 = vpop.f32.mrf.mxu2  ;;  %v2286_v41 = vrot.slane %v2285_v37, 4 }
 0x44c   :  { %v2528_v1 = vadd.f32 %v2527_v19, %v2459_v38  ;;  %v2295_v38 = vadd.f32 %v2294_v29, %v2293_v34 }
 0x44d   :  { %v2287_v45 = vadd.f32 %v2286_v41, %v2285_v37 }
 0x44e   :  { %v2616_v8 = vadd.f32 %v2611_v52, %v2528_v1 }
 0x44f   :  { %v2288_v52 = vrot.slane %v2287_v45, 2 }
 0x450   :  { %v2841_v58 = vpop.f32.mrf.mxu1 }
 0x452   :  { %v2613_v63 = vpop.f32.mrf.mxu3 }
 0x453   :  { %v2529_v59 = vpop.f32.mrf.mxu2 }
 0x454   :  { %v2530_v9 = vadd.f32 %v2529_v59, %v2461_v13  ;;  %v2296_v13 = vrot.slane %v2295_v38, 4  ;;  %v2289_v59 = vadd.f32 %v2288_v52, %v2287_v45 }
 0x456   :  { %v2617_v21 = vadd.f32 %v2613_v63, %v2530_v9  ;;  %v2297_v50 = vadd.f32 %v2296_v13, %v2295_v38  ;;  %v2290_v63 = vrot.slane %v2289_v59, 1 }
 0x458   :  { %v2843_v10 = vpop.f32.mrf.mxu1  ;;  %v2298_v57 = vrot.slane %v2297_v50, 2  ;;  %v2291_v3 = vadd.f32 %v2290_v63, %v2289_v59  ;;  %v3559_v63 = vld [vmem:[%s5896_s10] sm:$0xf] }
 0x45a   :  { %v2299_v61 = vadd.f32 %v2298_v57, %v2297_v50 }
 0x45c   :  { %v2300_v1 = vrot.slane %v2299_v61, 1 }
 0x45d   :  { %v2715_v60 = vpop.f32.mrf.mxu0  ;;  %v3015_v22 = vpop.f32.mrf.mxu3 }
 0x45e   :  { %v2720_v15 = vadd.f32 %v2715_v60, %v2616_v8  ;;  %v2301_v7 = vadd.f32 %v2300_v1, %v2299_v61  ;;  %v3536_v61 = vld [vmem:[%s5895_s9] sm:$0xf]  ;;  %v5078_v1 = vld [vmem:[%s5898_s12 + $0x30] sm:$0xff] }
 0x460   :  { %v2846_v26 = vadd.f32 %v2841_v58, %v2720_v15 }
 0x465   :  { %v2717_v11 = vpop.f32.mrf.mxu0  ;;  %v3017_v43 = vpop.f32.mrf.mxu3 }
 0x466   :  { %v2721_v25 = vadd.f32 %v2717_v11, %v2617_v21 }
 0x468   :  { %v2847_v36 = vadd.f32 %v2843_v10, %v2721_v25 }
 0x46b   :  { %v2927_v5 = vpop.f32.mrf.mxu2 }
 0x46c   :  { %v2932_v30 = vadd.f32 %v2927_v5, %v2846_v26 }
 0x46e   :  { %v3020_v40 = vadd.f32 %v3015_v22, %v2932_v30  ;;  %v3288_v30 = vld [vmem:[%s5892_s6] sm:$0x1]  ;;  %s5262_s6 = smov [#allocation14]  }
 0x46f   :  { %s3753_s13 = sshll.u32 %s5262_s6, 4  ;;  %s3754_s13 = int_to_ptr.vmem [resolvable:$true] %s3753_s13 }
 0x470   :  { %v3199_v32 = vpop.f32.mrf.mxu1 }
 0x473   :  { %v2929_v33 = vpop.f32.mrf.mxu2 }
 0x474   :  { %v2933_v17 = vadd.f32 %v2929_v33, %v2847_v36 }
 0x476   :  { %v3021_v19 = vadd.f32 %v3017_v43, %v2933_v17 }
 0x478   :  { %v3201_v48 = vpop.f32.mrf.mxu1 }
 0x47d   :  { %v3113_v55 = vpop.f32.mrf.mxu0 }
 0x47e   :  { %v3118_v42 = vadd.f32 %v3113_v55, %v3020_v40 }
 0x480   :  { %v3204_v46 = vadd.f32 %v3199_v32, %v3118_v42 }
 0x482   :  { %v3217_v27 = vmul.f32 %v3204_v46, %v3204_v46 }
 0x485   :  { %v3115_v44 = vpop.f32.mrf.mxu0 }
 0x486   :  { %v3119_v47 = vadd.f32 %v3115_v44, %v3021_v19 }
 0x488   :  { %v3205_v51 = vadd.f32 %v3201_v48, %v3119_v47 }
 0x48a   :  { %v3209_v53 = vadd.f32 %v3205_v51, %v3204_v46  ;;  %v3218_v56 = vmul.f32 %v3205_v51, %v3205_v51 }
 0x48c   :  { %v3210_v49 = vrot.slane %v3209_v53, 4  ;;  %v3219_v58 = vadd.f32 %v3218_v56, %v3217_v27 }
 0x48e   :  { %v3211_v60 = vadd.f32 %v3210_v49, %v3209_v53  ;;  %v3220_v31 = vrot.slane %v3219_v58, 4 }
 0x490   :  { %v3212_v62 = vrot.slane %v3211_v60, 2  ;;  %v3221_v35 = vadd.f32 %v3220_v31, %v3219_v58  ;;  %v5079_v31 = vld [vmem:[%s5898_s12 + $0x38] sm:$0xff] }
 0x492   :  { %v3213_v16 = vadd.f32 %v3212_v62, %v3211_v60  ;;  %v3222_v39 = vrot.slane %v3221_v35, 2  ;;  %v5071_v60 = vld [vmem:[%s5897_s11 + $0x38] sm:$0xff]  ;;  %v3322_v62 = vld [vmem:[%s5895_s9] sm:$0xf] }
 0x494   :  { %v3214_v0 = vrot.slane %v3213_v16, 1  ;;  %v3223_v2 = vadd.f32 %v3222_v39, %v3221_v35  ;;  %v3346_v35 = vld [vmem:[%s5896_s10] sm:$0xf]  ;;  %v5063_v39 = vld [vmem:[%s5898_s12 + $0x38] sm:$0xff] }
 0x496   :  { %v3215_v4 = vadd.f32 %v3214_v0, %v3213_v16  ;;  %v3224_v5 = vrot.slane %v3223_v2, 1  ;;  %v5055_v16 = vld [vmem:[%s5897_s11 + $0x38] sm:$0xff]  ;;  %v5070_v0 = vld [vmem:[%s5897_s11 + $0x30] sm:$0xff] }
 0x498   :  { %v3216_v6 = vadd.f32 %v3215_v4, %v2291_v3  ;;  %v3225_v8 = vadd.f32 %v3224_v5, %v3223_v2  ;;  %v5054_v2 = vld [vmem:[%s5897_s11 + $0x30] sm:$0xff]  ;;  %v5069_v4 = vld [vmem:[%s5897_s11 + $0x28] sm:$0xff] }
 0x499   :  { %v5062_v3 = vld [vmem:[%s5898_s12 + $0x30] sm:$0xff]  ;;  %v5077_v5 = vld [vmem:[%s5898_s12 + $0x28] sm:$0xff] }
 0x49a   :  { %3259 = vmatmul.f32.vlgmr.msrb.gmra.mxu2 %v3216_v6  ;;  %v3226_v9 = vadd.f32 %v3225_v8, %v2301_v7  ;;  %v5053_v6 = vld [vmem:[%s5897_s11 + $0x28] sm:$0xff]  ;;  %v5068_v8 = vld [vmem:[%s5897_s11 + $0x20] sm:$0xff] }
 0x49b   :  { %v5061_v7 = vld [vmem:[%s5898_s12 + $0x28] sm:$0xff] }
 0x49c   :  { %3279 = vmatmul.f32.vlgmr.msrb.gmra.mxu3 %v3226_v9  ;;  %v5076_v9 = vld [vmem:[%s5898_s12 + $0x20] sm:$0xff] }
 0x51d   :  { %v3260_v10 = vpop.f32.mrf.mxu2 }
 0x51e   :  { %v3283_v11 = vmul.f32 %v3260_v10, %v5535_v54  ;;  %v5052_v10 = vld [vmem:[%s5897_s11 + $0x20] sm:$0xff] }
 0x51f   :  { %v3280_v12 = vpop.f32.mrf.mxu3 }
 0x520   :  { %v3285_v14 = vmul.f32 %v3283_v11, %v3283_v11  ;;  %v3284_v15 = vmul.f32 %v3280_v12, %v5535_v54  ;;  %v3301_v54 = vld [vmem:[%s5893_s7] sm:$0x1]  ;;  %v5067_v12 = vld [vmem:[%s5897_s11 + $0x18] sm:$0xff] }
 0x522   :  { %v3286_v18 = vsub.f32 %v3284_v15, %v3285_v14  ;;  %v5075_v14 = vld [vmem:[%s5898_s12 + $0x18] sm:$0xff] }
 0x523   :  { %v5051_v15 = vld [vmem:[%s5897_s11 + $0x18] sm:$0xff] }
 0x524   :  { %v3287_v21 = vmax.f32 %v3286_v18, 0.0  ;;  %v5059_v18 = vld [vmem:[%s5898_s12 + $0x18] sm:$0xff] }
 0x526   :  { %v3289_v22 = vadd.f32 1e-05, %v3287_v21  ;;  %v5066_v21 = vld [vmem:[%s5897_s11 + $0x10] sm:$0xff] }
 0x528   :  { %5130 = vrsqrt.f32 %v3289_v22  ;;  %vm3296_vm12 = vweird.f32 %v3289_v22 }
 0x52e   :  { %v5131_v23 = vpop.eup %5130 }
 0x52f   :  { %v3291_v25 = vmul.f32 %v5131_v23, %v3289_v22  ;;  %vm3297_vm11 = vweird.f32 %v5131_v23  ;;  %v5074_v22 = vld [vmem:[%s5898_s12 + $0x10] sm:$0xff] }
 0x530   :  { %vm3298_vm13 = vmor %vm3296_vm12, %vm3297_vm11 }
 0x531   :  { %v3292_v26 = vmul.f32 %v5131_v23, %v3291_v25  ;;  %v5058_v25 = vld [vmem:[%s5898_s12 + $0x10] sm:$0xff] }
 0x533   :  { %v3293_v28 = vmul.f32 0.5, %v3292_v26  ;;  %v5065_v26 = vld [vmem:[%s5897_s11 + $0x8] sm:$0xff] }
 0x535   :  { %v3294_v29 = vsub.f32 1.5, %v3293_v28  ;;  %v5073_v28 = vld [vmem:[%s5898_s12 + $0x8] sm:$0xff] }
 0x537   :  { %v3295_v32 = vmul.f32 %v5131_v23, %v3294_v29  ;;  %v5049_v29 = vld [vmem:[%s5897_s11 + $0x8] sm:$0xff] }
 0x539   :  { %v3299_v33 = vsel %vm3298_vm13, %v5131_v23, %v3295_v32  ;;  %v5050_v23 = vld [vmem:[%s5897_s11 + $0x10] sm:$0xff]  ;;  %v5048_v32 = vld [vmem:[%s5897_s11] sm:$0xff] }
 0x53a   :  { %v3300_v55 = vmul.f32 %v3299_v33, %v3288_v30  ;;  %v5057_v30 = vld [vmem:[%s5898_s12 + $0x8] sm:$0xff]  ;;  %v5056_v33 = vld [vmem:[%s5898_s12] sm:$0xff] }
 0x53c   :  { %v3302_v34 = vmul.f32 %v3300_v55, %v3283_v11  ;;  %v3307_v37 = vperm.slane %v3300_v55, 0  ;;  %v5060_v11 = vld [vmem:[%s5898_s12 + $0x20] sm:$0xff] }
 0x53d   :  { %v5064_v55 = vld [vmem:[%s5897_s11] sm:$0xff] }
 0x53e   :  { %v3303_v36 = vsub.f32 %v3301_v54, %v3302_v34  ;;  %v3309_v38 = vmul.f32 %v3307_v37, %v5745_v24  ;;  %v3310_v40 = vmul.f32 %v3307_v37, %v5739_v20  ;;  %v3525_v41 = vmul.f32 %v3307_v37, %v3204_v46  ;;  %v5072_v54 = vld [vmem:[%s5898_s12] sm:$0xff] }
 0x53f   :  { %v3526_v42 = vmul.f32 %v3307_v37, %v3205_v51 }
 0x540   :  { %v3312_v17 = vperm.slane %v3303_v36, 0 }
 0x542   :  { %v3314_v43 = vadd.f32 %v3312_v17, %v3309_v38  ;;  %v3315_v13 = vadd.f32 %v3312_v17, %v3310_v40  ;;  %v3527_v19 = vadd.f32 %v3525_v41, %v3312_v17  ;;  %v3528_v44 = vadd.f32 %v3526_v42, %v3312_v17 }
 0x544   :  { %v3316_v45 = vmax.f32 %v3314_v43, 0.0  ;;  %v3317_v47 = vmax.f32 %v3315_v13, 0.0  ;;  %v3529_v48 = vmax.f32 %v3527_v19, 0.0  ;;  %v3530_v50 = vmax.f32 %v3528_v44, 0.0 }
 0x546   :  { %v3318_v52 = vpack.c.bf16 %v3316_v45, %v3316_v45  ;;  %v3319_v27 = vpack.c.bf16 %v3317_v47, %v3317_v47  ;;  %v3531_v53 = vpack.c.bf16 %v3529_v48, %v3529_v48  ;;  %v3532_v56 = vpack.c.bf16 %v3530_v50, %v3530_v50 }
 0x547   :  { %v5099_v57 = vpack.c.bf16 %v3317_v47, %v3316_v45  ;;  %v5104_v49 = vpack.c.bf16 %v3530_v50, %v3529_v48 }
 0x548   :  { %v3325_v24 = vunpack.c.l.b16 %v3318_v52  ;;  %v3326_v58 = vunpack.c.l.b16 %v3319_v27  ;;  %v3539_v59 = vunpack.c.l.b16 %v3531_v53  ;;  %v3540_v20 = vunpack.c.l.b16 %v3532_v56 }
 0x549   :  { %5100 = vst [vmem:[#allocation13] sm:$0xff] %v5099_v57  }
 0x54a   :  { %v3327_v46 = vpack.c.b16 %v3326_v58, %v3325_v24  ;;  %v3541_v51 = vpack.c.b16 %v3540_v20, %v3539_v59  ;;  %5105 = vst [vmem:[#allocation13 + $0x8] sm:$0xff] %v5104_v49  }
 0x54b   :  { %3748 = dma.vmem_to_hbm [thread:$0]  %s3741_s15, 256, %s3743_s3, [#allocation8], %s5252_s22, %s5252_s22, %s5253_s23  }
 0x54c   :  { %3340 = vmatpush.bf16.msra.mxu0 %v3327_v46  ;;  %3357 = vmatpush.bf16.msra.mxu1 %v3327_v46 }
 0x54d   :  { %3553 = vmatpush.bf16.msra.mxu2 %v3541_v51  ;;  %3570 = vmatpush.bf16.msra.mxu3 %v3541_v51 }
 0x54f   :  { %4692 = vmatmul.msk.bf16.vlgmr.msra.gmra.mxu0 %vm3329_vm14, %v3322_v62  ;;  %4693 = vmatmul.msk.bf16.vlgmr.msra.gmra.mxu1 %vm3329_vm14, %v3346_v35 }
 0x550   :  { %4758 = vmatmul.msk.bf16.vlgmr.msra.gmra.mxu2 %vm3329_vm14, %v3536_v61  ;;  %4759 = vmatmul.msk.bf16.vlgmr.msra.gmra.mxu3 %vm3329_vm14, %v3559_v63 }
 0x551   :  { %3642 = vmatpush.bf16.msrb.mxu2 %v5071_v60  ;;  %3719 = vmatpush.bf16.msrb.mxu3 %v5079_v31 }
 0x552   :  { %3429 = vmatpush.bf16.msrb.mxu0 %v5055_v16  ;;  %3506 = vmatpush.bf16.msrb.mxu1 %v5063_v39 }
 0x555   :  { %3643 = vmatpush.bf16.msrb.mxu2 %v5070_v0  ;;  %3720 = vmatpush.bf16.msrb.mxu3 %v5078_v1 }
 0x556   :  { %3430 = vmatpush.bf16.msrb.mxu0 %v5054_v2  ;;  %3507 = vmatpush.bf16.msrb.mxu1 %v5062_v3 }
 0x559   :  { %3644 = vmatpush.bf16.msrb.mxu2 %v5069_v4  ;;  %3721 = vmatpush.bf16.msrb.mxu3 %v5077_v5 }
 0x55a   :  { %3431 = vmatpush.bf16.msrb.mxu0 %v5053_v6  ;;  %3508 = vmatpush.bf16.msrb.mxu1 %v5061_v7 }
 0x55d   :  { %3645 = vmatpush.bf16.msrb.mxu2 %v5068_v8  ;;  %3722 = vmatpush.bf16.msrb.mxu3 %v5076_v9 }
 0x55e   :  { %3432 = vmatpush.bf16.msrb.mxu0 %v5052_v10  ;;  %3509 = vmatpush.bf16.msrb.mxu1 %v5060_v11 }
 0x561   :  { %3646 = vmatpush.bf16.msrb.mxu2 %v5067_v12  ;;  %3723 = vmatpush.bf16.msrb.mxu3 %v5075_v14 }
 0x562   :  { %3433 = vmatpush.bf16.msrb.mxu0 %v5051_v15  ;;  %3510 = vmatpush.bf16.msrb.mxu1 %v5059_v18 }
 0x565   :  { %3647 = vmatpush.bf16.msrb.mxu2 %v5066_v21  ;;  %3724 = vmatpush.bf16.msrb.mxu3 %v5074_v22 }
 0x566   :  { %3434 = vmatpush.bf16.msrb.mxu0 %v5050_v23  ;;  %3511 = vmatpush.bf16.msrb.mxu1 %v5058_v25 }
 0x569   :  { %3648 = vmatpush.bf16.msrb.mxu2 %v5065_v26  ;;  %3725 = vmatpush.bf16.msrb.mxu3 %v5073_v28 }
 0x56a   :  { %3435 = vmatpush.bf16.msrb.mxu0 %v5049_v29  ;;  %3512 = vmatpush.bf16.msrb.mxu1 %v5057_v30 }
 0x56d   :  { %3649 = vmatpush.bf16.msrb.mxu2 %v5064_v55  ;;  %3726 = vmatpush.bf16.msrb.mxu3 %v5072_v54 }
 0x56e   :  { %3436 = vmatpush.bf16.msrb.mxu0 %v5048_v32  ;;  %3513 = vmatpush.bf16.msrb.mxu1 %v5056_v33 }
 0x5cc   :  { %v3342_v34 = vpop.f32.mrf.mxu0  ;;  %v3359_v37 = vpop.f32.mrf.mxu1 }
 0x5cd   :  { %v3363_v36 = vmax.f32 %v3342_v34, %v3359_v37 }
 0x5cf   :  { %v3364_v38 = vpack.c.bf16 %v3363_v36, %v3363_v36 }
 0x5d1   :  { %3437 = vmatmul.bf16.vlgmr.msrb.gmra.mxu0 %v3364_v38  ;;  %3514 = vmatmul.bf16.vlgmr.msrb.gmra.mxu1 %v3364_v38 }
 0x5d3   :  { %v3555_v17 = vpop.f32.mrf.mxu2  ;;  %v3572_v40 = vpop.f32.mrf.mxu3 }
 0x5d4   :  { %v3576_v41 = vmax.f32 %v3555_v17, %v3572_v40  ;;  %v3344_v42 = vpop.f32.mrf.mxu0  ;;  %v3361_v43 = vpop.f32.mrf.mxu1 }
 0x5d6   :  { %v3577_v13 = vpack.c.bf16 %v3576_v41, %v3576_v41 }
 0x5d8   :  { %3650 = vmatmul.bf16.vlgmr.msrb.gmra.mxu2 %v3577_v13  ;;  %3727 = vmatmul.bf16.vlgmr.msrb.gmra.mxu3 %v3577_v13 }
 0x5db   :  { %v3557_v19 = vpop.f32.mrf.mxu2  ;;  %v3574_v44 = vpop.f32.mrf.mxu3 }
 0x64e   :  { %v3438_v45 = vpop.f32.mrf.mxu0  ;;  %v3515_v47 = vpop.f32.mrf.mxu1 }
 0x64f   :  { %v3519_v48 = vmax.f32 %v3438_v45, %v3515_v47 }
 0x651   :  { %v3520_v50 = vpack.c.bf16 %v3519_v48, %v3519_v48 }
 0x653   :  { %3522 = vst.msk [vmem:[#allocation14] sm:$0xf] %vm3521_vm15, %v3520_v50 }
 0x656   :  { %v3440_v52 = vpop.f32.mrf.mxu0  ;;  %v3517_v27 = vpop.f32.mrf.mxu1 }
 0x65b   :  { %v3651_v53 = vpop.f32.mrf.mxu2  ;;  %v3728_v56 = vpop.f32.mrf.mxu3 }
 0x65c   :  { %v3732_v57 = vmax.f32 %v3651_v53, %v3728_v56 }
 0x65e   :  { %v3733_v49 = vpack.c.bf16 %v3732_v57, %v3732_v57 }
 0x660   :  { %3735 = vst.msk [vmem:[#allocation14 + $0x4] sm:$0xf] %vm3521_vm15, %v3733_v49 }
 0x661   :  { %3761 = dma.vmem_to_hbm [thread:$0]  %s3754_s13, 128, %s3756_s17, [#allocation15], %s5252_s22, %s5252_s22, %s5253_s23  }
 0x663   :  { %v3653_v24 = vpop.f32.mrf.mxu2  ;;  %v3730_v58 = vpop.f32.mrf.mxu3 }
 0x664   :  { %5246 = dma.done.wait [#allocation8], 256  }
 0x665   :  { %5247 = vsyncadd [#allocation8], 4294967040 }
 0x666   :  { %5248 = dma.done.wait [#allocation15], 128  }
 0x667   :  { %5249 = vsyncadd [#allocation15], 4294967168 }
 0x668   :  { %3770 = vsyncpa [#allocation7], 1 }
 0x669   :  { %3771 = vsyncpa [#allocation12], 1 }
 0x66a   :  { %3772 = vsyncpa [#allocation8], 1 }
 0x66b   :  { %3773 = vsyncpa [#allocation15], 1 }
 0x66c   :  { %3774 = vsyncpa [#allocation9], 1 }

</bundles_post_ra>
